<compile_context>
chip_gen: v7x
topology: tpu7x:2x2x1
jax: 0.10.0
libtpu: 0.0.40
codegen_flags: <defaults>
</compile_context>

<pallas_src>
import jax
import jax.numpy as jnp
from jax.experimental import pallas as pl
from jax.experimental.pallas import tpu as pltpu


def _make_temscse_kernel(H, W):
    Wp = W + 2                     # padded width
    P = (H + 2) * Wp               # pixels in the spatially padded image
    PADR = Wp + 1                  # extra zero rows on each side of the flat slab
    # flattened row shift for conv tap (dy, dx), dy/dx in {0,1,2}
    shifts = tuple((dy - 1) * Wp + (dx - 1) for dy in range(3) for dx in range(3))
    inv_hw = 1.0 / float(H * W)

    def kernel(xe_ref, xt_ref, w1_ref, b1_ref, w2_ref, b2_ref,
               ws_ref, bs_ref, k9_ref, bns_ref, bnb_ref, o_ref):
        # xe_ref: (1, P + 2*PADR, C) zero-padded, flattened, channel-last xs
        # xt_ref: (1, P, C)          flattened, channel-last xt (pad rows are 0)
        # o_ref : (1, P, C)
        x = xe_ref[0, PADR:PADR + P, :].astype(jnp.float32)      # (P, C)
        xt = xt_ref[0].astype(jnp.float32)                       # (P, C)

        # ---- cSE: global avg pool (zero pad rows do not perturb the sum)
        #           + Conv1x1 -> ReLU -> Conv1x1 -> Sigmoid  => (1, C) gate
        pooled = jnp.sum(x, axis=0, keepdims=True) * inv_hw                  # (1, C)
        hid = jnp.maximum(
            jnp.dot(pooled, w1_ref[...], preferred_element_type=jnp.float32)
            + b1_ref[...], 0.0)                                              # (1, Cr)
        cse = jax.nn.sigmoid(
            jnp.dot(hid, w2_ref[...], preferred_element_type=jnp.float32)
            + b2_ref[...])                                                   # (1, C)

        # ---- sSE: 1x1 conv (C -> 1) + sigmoid  => per-pixel gate (P, 1)
        sse = jax.nn.sigmoid(
            jnp.dot(x, ws_ref[...], preferred_element_type=jnp.float32)
            + bs_ref[...])                                                   # (P, 1)

        # ---- 3x3 conv (padding=1) as 9 shifted (P,C)x(C,C) MXU matmuls
        acc = jnp.zeros(xt.shape, jnp.float32)
        for i, s in enumerate(shifts):
            win = xe_ref[0, PADR + s:PADR + s + P, :].astype(jnp.float32)
            acc = acc + jnp.dot(win, k9_ref[i],
                                preferred_element_type=jnp.float32)
        conv = jnp.maximum(acc * bns_ref[...] + bnb_ref[...], 0.0)           # (P, C)

        out = xt * cse + xt * sse + conv
        o_ref[0] = out.astype(o_ref.dtype)

    return kernel


def tem_scse_forward(xs, xt, params):
    """Pallas TPU implementation of TemSCSEModule.forward (eval-mode BatchNorm)."""
    N, C, H, W = xs.shape
    assert xt.shape == xs.shape, "xs and xt must share the same NCHW shape"
    Cr = params["cse_w1"].shape[0]
    Wp = W + 2
    P = (H + 2) * Wp
    PADR = Wp + 1
    dtype = xs.dtype

    # ---- one-time layout plumbing: NCHW -> channel-last, spatial zero-pad,
    #      flatten HxW, add PADR zero rows on each end of the flat slab ------
    xs_nhwc = jnp.transpose(xs, (0, 2, 3, 1))
    xt_nhwc = jnp.transpose(xt, (0, 2, 3, 1))
    xs_pad = jnp.pad(xs_nhwc, ((0, 0), (1, 1), (1, 1), (0, 0)))
    xe = jnp.pad(xs_pad.reshape(N, P, C), ((0, 0), (PADR, PADR), (0, 0)))
    xt_flat = jnp.pad(xt_nhwc, ((0, 0), (1, 1), (1, 1), (0, 0))).reshape(N, P, C)

    # ---- fold PyTorch-layout weights into matmul-friendly shapes -----------
    f32 = jnp.float32
    w1 = params["cse_w1"].reshape(Cr, C).T.astype(f32)               # (C, Cr)
    b1 = params["cse_b1"].reshape(1, Cr).astype(f32)
    w2 = params["cse_w2"].reshape(C, Cr).T.astype(f32)               # (Cr, C)
    b2 = params["cse_b2"].reshape(1, C).astype(f32)
    ws = params["sse_w"].reshape(1, C).T.astype(f32)                 # (C, 1)
    bs = params["sse_b"].reshape(1, 1).astype(f32)
    k9 = jnp.transpose(params["conv_w"], (2, 3, 1, 0)).reshape(9, C, C).astype(f32)
    bn_scale = (params["bn_gamma"]
                / jnp.sqrt(params["bn_var"] + params["bn_eps"])).astype(f32)
    bn_bias = (params["bn_beta"] - params["bn_mean"] * bn_scale).astype(f32)
    bns = bn_scale.reshape(1, C)
    bnb = bn_bias.reshape(1, C)

    # ---- VMEM budget: whole image per grid step, double buffered -----------
    itemsize = xs.dtype.itemsize
    per_step = 2 * itemsize * (xe.shape[1] * C + 2 * P * C) + 4 * (9 * C * C + 8 * C)
    compiler_kwargs = dict(dimension_semantics=("parallel",))
    if per_step > 24 * 1024 * 1024:
        # TODO(synk): tile very large images over rows (with a 1-row halo) so
        # per-step VMEM stays bounded instead of whole-image blocks.
        compiler_kwargs["vmem_limit_bytes"] = min(int(1.5 * per_step),
                                                  56 * 1024 * 1024)

    kernel = _make_temscse_kernel(H, W)
    out_flat = pl.pallas_call(
        kernel,
        out_shape=jax.ShapeDtypeStruct((N, P, C), dtype),
        grid_spec=pltpu.PrefetchScalarGridSpec(
            num_scalar_prefetch=0,
            grid=(N,),
            in_specs=[
                pl.BlockSpec((1, P + 2 * PADR, C), lambda n: (n, 0, 0)),   # xs (padded, flat)
                pl.BlockSpec((1, P, C), lambda n: (n, 0, 0)),              # xt (padded, flat)
                pl.BlockSpec((C, Cr), lambda n: (0, 0)),                   # cSE fc1 weight
                pl.BlockSpec((1, Cr), lambda n: (0, 0)),                   # cSE fc1 bias
                pl.BlockSpec((Cr, C), lambda n: (0, 0)),                   # cSE fc2 weight
                pl.BlockSpec((1, C), lambda n: (0, 0)),                    # cSE fc2 bias
                pl.BlockSpec((C, 1), lambda n: (0, 0)),                    # sSE weight
                pl.BlockSpec((1, 1), lambda n: (0, 0)),                    # sSE bias
                pl.BlockSpec((9, C, C), lambda n: (0, 0, 0)),              # 3x3 conv taps
                pl.BlockSpec((1, C), lambda n: (0, 0)),                    # folded BN scale
                pl.BlockSpec((1, C), lambda n: (0, 0)),                    # folded BN bias
            ],
            out_specs=pl.BlockSpec((1, P, C), lambda n: (n, 0, 0)),
        ),
        compiler_params=pltpu.CompilerParams(**compiler_kwargs),
    )(xe, xt_flat, w1, b1, w2, b2, ws, bs, k9, bns, bnb)

    out = out_flat.reshape(N, H + 2, W + 2, C)[:, 1:H + 1, 1:W + 1, :]
    return jnp.transpose(out, (0, 3, 1, 2))


def _ref_forward(xs, xt, p):
    """Pure-JAX reference for TemSCSEModule.forward (eval-mode BatchNorm)."""
    N, C, H, W = xs.shape
    hp = jax.lax.Precision.HIGHEST
    Cr = p["cse_w1"].shape[0]
    pooled = jnp.mean(xs, axis=(2, 3))                                        # (N, C)
    h = jax.nn.relu(jnp.dot(pooled, p["cse_w1"].reshape(Cr, C).T, precision=hp)
                    + p["cse_b1"])
    cse = jax.nn.sigmoid(jnp.dot(h, p["cse_w2"].reshape(C, Cr).T, precision=hp)
                         + p["cse_b2"])[:, :, None, None]                     # (N, C, 1, 1)
    sse = jax.nn.sigmoid(
        jnp.einsum("nchw,c->nhw", xs, p["sse_w"].reshape(C), precision=hp)
        + p["sse_b"][0])[:, None, :, :]                                       # (N, 1, H, W)
    conv = jax.lax.conv_general_dilated(
        xs, p["conv_w"], window_strides=(1, 1), padding=((1, 1), (1, 1)),
        dimension_numbers=("NCHW", "OIHW", "NCHW"), precision=hp)
    bn_scale = p["bn_gamma"] / jnp.sqrt(p["bn_var"] + p["bn_eps"])
    bn_bias = p["bn_beta"] - p["bn_mean"] * bn_scale
    conv = jax.nn.relu(conv * bn_scale[None, :, None, None]
                       + bn_bias[None, :, None, None])
    return xt * cse + xt * sse + conv


if __name__ == "__main__":
    key = jax.random.PRNGKey(0)
    N, C, H, W = 2, 32, 16, 16          # in_channels must be >= reduction
    reduction = 16
    Cr = max(C // reduction, 1)

    keys = jax.random.split(key, 12)

    def _uniform(k, shape, fan_in):
        b = 1.0 / (fan_in ** 0.5)
        return jax.random.uniform(k, shape, jnp.float32, minval=-b, maxval=b)

    params = {
        "cse_w1": _uniform(keys[0], (Cr, C, 1, 1), C),
        "cse_b1": _uniform(keys[1], (Cr,), C),
        "cse_w2": _uniform(keys[2], (C, Cr, 1, 1), Cr),
        "cse_b2": _uniform(keys[3], (C,), Cr),
        "sse_w": _uniform(keys[4], (1, C, 1, 1), C),
        "sse_b": _uniform(keys[5], (1,), C),
        "conv_w": _uniform(keys[6], (C, C, 3, 3), C * 9),   # bias=False (use_batchnorm)
        "bn_gamma": 1.0 + 0.1 * jax.random.normal(keys[7], (C,), jnp.float32),
        "bn_beta": 0.1 * jax.random.normal(keys[8], (C,), jnp.float32),
        "bn_mean": 0.1 * jax.random.normal(keys[9], (C,), jnp.float32),
        "bn_var": jax.random.uniform(keys[10], (C,), jnp.float32, minval=0.5, maxval=1.5),
        "bn_eps": 1e-5,
    }

    xs = jax.random.normal(keys[11], (N, C, H, W), jnp.float32)
    xt = jax.random.normal(jax.random.fold_in(key, 123), (N, C, H, W), jnp.float32)

    out = tem_scse_forward(xs, xt, params)
    out = jax.block_until_ready(out)

    ref = _ref_forward(xs, xt, params)
    assert out.shape == ref.shape and out.dtype == ref.dtype
    max_err = jnp.max(jnp.abs(out - ref))
    assert jnp.allclose(out, ref, atol=1e-2, rtol=1e-2), f"max abs err {max_err}"
    print("KERNEL_OK")
</pallas_src>

<mosaic_0001>
module attributes {stable_mosaic.version = 11 : i64} {
  func.func @kernel(%arg0: i32, %arg1: memref<1x362x32xf32, #tpu.memory_space<vmem>>, %arg2: memref<1x324x32xf32, #tpu.memory_space<vmem>>, %arg3: memref<32x2xf32, #tpu.memory_space<vmem>>, %arg4: memref<1x2xf32, #tpu.memory_space<vmem>>, %arg5: memref<2x32xf32, #tpu.memory_space<vmem>>, %arg6: memref<1x32xf32, #tpu.memory_space<vmem>>, %arg7: memref<32x1xf32, #tpu.memory_space<vmem>>, %arg8: memref<1x1xf32, #tpu.memory_space<vmem>>, %arg9: memref<9x32x32xf32, #tpu.memory_space<vmem>>, %arg10: memref<1x32xf32, #tpu.memory_space<vmem>>, %arg11: memref<1x32xf32, #tpu.memory_space<vmem>>, %arg12: memref<1x324x32xf32, #tpu.memory_space<vmem>>) attributes {dimension_semantics = [#tpu.dimension_semantics<parallel>], iteration_bounds = array<i64: 2>, scalar_prefetch = 0 : i64, scratch_operands = 0 : i64, tpu.core_type = #tpu.core_type<tc>, window_params = [{transform_indices = @transform_0, window_bounds = array<i64: 1, 362, 32>}, {transform_indices = @transform_1, window_bounds = array<i64: 1, 324, 32>}, {pipeline_mode = #tpu.pipeline_mode<synchronous>, transform_indices = @transform_2, window_bounds = array<i64: 32, 2>}, {pipeline_mode = #tpu.pipeline_mode<synchronous>, transform_indices = @transform_3, window_bounds = array<i64: 1, 2>}, {pipeline_mode = #tpu.pipeline_mode<synchronous>, transform_indices = @transform_4, window_bounds = array<i64: 2, 32>}, {pipeline_mode = #tpu.pipeline_mode<synchronous>, transform_indices = @transform_5, window_bounds = array<i64: 1, 32>}, {pipeline_mode = #tpu.pipeline_mode<synchronous>, transform_indices = @transform_6, window_bounds = array<i64: 32, 1>}, {pipeline_mode = #tpu.pipeline_mode<synchronous>, transform_indices = @transform_7, window_bounds = array<i64: 1, 1>}, {pipeline_mode = #tpu.pipeline_mode<synchronous>, transform_indices = @transform_8, window_bounds = array<i64: 9, 32, 32>}, {pipeline_mode = #tpu.pipeline_mode<synchronous>, transform_indices = @transform_9, window_bounds = array<i64: 1, 32>}, {pipeline_mode = #tpu.pipeline_mode<synchronous>, transform_indices = @transform_10, window_bounds = array<i64: 1, 32>}, {transform_indices = @transform_11, window_bounds = array<i64: 1, 324, 32>}]} {
    %c0 = arith.constant 0 : index
    %c19 = arith.constant 19 : index
    %c0_0 = arith.constant 0 : index
    %0 = vector.load %arg1[%c0, %c19, %c0_0] : memref<1x362x32xf32, #tpu.memory_space<vmem>>, vector<1x324x32xf32>
    %1 = vector.shape_cast %0 : vector<1x324x32xf32> to vector<324x32xf32>
    %c0_1 = arith.constant 0 : index
    %c0_2 = arith.constant 0 : index
    %c0_3 = arith.constant 0 : index
    %2 = vector.load %arg2[%c0_1, %c0_2, %c0_3] : memref<1x324x32xf32, #tpu.memory_space<vmem>>, vector<1x324x32xf32>
    %3 = vector.shape_cast %2 : vector<1x324x32xf32> to vector<324x32xf32>
    %cst = arith.constant dense<0.000000e+00> : vector<32xf32>
    %4 = vector.multi_reduction <add>, %1, %cst [0] : vector<324x32xf32> to vector<32xf32>
    %5 = vector.shape_cast %4 : vector<32xf32> to vector<1x32xf32>
    %cst_4 = arith.constant 3.906250e-03 : f32
    %6 = vector.broadcast %cst_4 : f32 to vector<1x32xf32>
    %7 = arith.mulf %5, %6 : vector<1x32xf32>
    %c0_5 = arith.constant 0 : index
    %c0_6 = arith.constant 0 : index
    %8 = vector.load %arg3[%c0_5, %c0_6] : memref<32x2xf32, #tpu.memory_space<vmem>>, vector<32x2xf32>
    %cst_7 = arith.constant dense<0.000000e+00> : vector<1x2xf32>
    %9 = tpu.matmul %7, %8, %cst_7 {dimension_numbers = #tpu.dot_dimension_numbers<[1], [0], [0], [1], [0, 0, 1, 1], [], []>} : vector<1x32xf32>, vector<32x2xf32>, vector<1x2xf32> -> vector<1x2xf32>
    %c0_8 = arith.constant 0 : index
    %c0_9 = arith.constant 0 : index
    %10 = vector.load %arg4[%c0_8, %c0_9] : memref<1x2xf32, #tpu.memory_space<vmem>>, vector<1x2xf32>
    %11 = arith.addf %9, %10 : vector<1x2xf32>
    %cst_10 = arith.constant 0.000000e+00 : f32
    %12 = vector.broadcast %cst_10 : f32 to vector<1x2xf32>
    %13 = arith.maximumf %11, %12 : vector<1x2xf32>
    %c0_11 = arith.constant 0 : index
    %c0_12 = arith.constant 0 : index
    %14 = vector.load %arg5[%c0_11, %c0_12] : memref<2x32xf32, #tpu.memory_space<vmem>>, vector<2x32xf32>
    %cst_13 = arith.constant dense<0.000000e+00> : vector<1x32xf32>
    %15 = tpu.matmul %13, %14, %cst_13 {dimension_numbers = #tpu.dot_dimension_numbers<[1], [0], [0], [1], [0, 0, 1, 1], [], []>} : vector<1x2xf32>, vector<2x32xf32>, vector<1x32xf32> -> vector<1x32xf32>
    %c0_14 = arith.constant 0 : index
    %c0_15 = arith.constant 0 : index
    %16 = vector.load %arg6[%c0_14, %c0_15] : memref<1x32xf32, #tpu.memory_space<vmem>>, vector<1x32xf32>
    %17 = arith.addf %15, %16 : vector<1x32xf32>
    %18 = arith.negf %17 : vector<1x32xf32>
    %19 = math.exp %18 : vector<1x32xf32>
    %cst_16 = arith.constant 1.000000e+00 : f32
    %20 = vector.broadcast %cst_16 : f32 to vector<1x32xf32>
    %21 = arith.addf %20, %19 : vector<1x32xf32>
    %22 = arith.divf %20, %21 : vector<1x32xf32>
    %c0_17 = arith.constant 0 : index
    %c0_18 = arith.constant 0 : index
    %23 = vector.load %arg7[%c0_17, %c0_18] : memref<32x1xf32, #tpu.memory_space<vmem>>, vector<32x1xf32>
    %cst_19 = arith.constant dense<0.000000e+00> : vector<324x1xf32>
    %24 = tpu.matmul %1, %23, %cst_19 {dimension_numbers = #tpu.dot_dimension_numbers<[1], [0], [0], [1], [0, 0, 1, 1], [], []>} : vector<324x32xf32>, vector<32x1xf32>, vector<324x1xf32> -> vector<324x1xf32>
    %c0_20 = arith.constant 0 : index
    %c0_21 = arith.constant 0 : index
    %25 = vector.load %arg8[%c0_20, %c0_21] : memref<1x1xf32, #tpu.memory_space<vmem>>, vector<1x1xf32>
    %26 = vector.broadcast %25 : vector<1x1xf32> to vector<324x1xf32>
    %27 = arith.addf %24, %26 : vector<324x1xf32>
    %28 = arith.negf %27 : vector<324x1xf32>
    %29 = math.exp %28 : vector<324x1xf32>
    %cst_22 = arith.constant 1.000000e+00 : f32
    %30 = vector.broadcast %cst_22 : f32 to vector<324x1xf32>
    %31 = arith.addf %30, %29 : vector<324x1xf32>
    %32 = arith.divf %30, %31 : vector<324x1xf32>
    %cst_23 = arith.constant 0.000000e+00 : f32
    %33 = vector.broadcast %cst_23 : f32 to vector<324x32xf32>
    %c0_24 = arith.constant 0 : index
    %c0_25 = arith.constant 0 : index
    %c0_26 = arith.constant 0 : index
    %34 = vector.load %arg1[%c0_24, %c0_25, %c0_26] : memref<1x362x32xf32, #tpu.memory_space<vmem>>, vector<1x324x32xf32>
    %35 = vector.shape_cast %34 : vector<1x324x32xf32> to vector<324x32xf32>
    %c0_27 = arith.constant 0 : index
    %c0_28 = arith.constant 0 : index
    %c0_29 = arith.constant 0 : index
    %36 = vector.load %arg9[%c0_27, %c0_28, %c0_29] : memref<9x32x32xf32, #tpu.memory_space<vmem>>, vector<1x32x32xf32>
    %37 = vector.shape_cast %36 : vector<1x32x32xf32> to vector<32x32xf32>
    %cst_30 = arith.constant dense<0.000000e+00> : vector<324x32xf32>
    %38 = tpu.matmul %35, %37, %cst_30 {dimension_numbers = #tpu.dot_dimension_numbers<[1], [0], [0], [1], [0, 0, 1, 1], [], []>} : vector<324x32xf32>, vector<32x32xf32>, vector<324x32xf32> -> vector<324x32xf32>
    %39 = arith.addf %33, %38 : vector<324x32xf32>
    %c0_31 = arith.constant 0 : index
    %c1 = arith.constant 1 : index
    %c0_32 = arith.constant 0 : index
    %40 = vector.load %arg1[%c0_31, %c1, %c0_32] : memref<1x362x32xf32, #tpu.memory_space<vmem>>, vector<1x324x32xf32>
    %41 = vector.shape_cast %40 : vector<1x324x32xf32> to vector<324x32xf32>
    %c1_33 = arith.constant 1 : index
    %c0_34 = arith.constant 0 : index
    %c0_35 = arith.constant 0 : index
    %42 = vector.load %arg9[%c1_33, %c0_34, %c0_35] : memref<9x32x32xf32, #tpu.memory_space<vmem>>, vector<1x32x32xf32>
    %43 = vector.shape_cast %42 : vector<1x32x32xf32> to vector<32x32xf32>
    %cst_36 = arith.constant dense<0.000000e+00> : vector<324x32xf32>
    %44 = tpu.matmul %41, %43, %cst_36 {dimension_numbers = #tpu.dot_dimension_numbers<[1], [0], [0], [1], [0, 0, 1, 1], [], []>} : vector<324x32xf32>, vector<32x32xf32>, vector<324x32xf32> -> vector<324x32xf32>
    %45 = arith.addf %39, %44 : vector<324x32xf32>
    %c0_37 = arith.constant 0 : index
    %c2 = arith.constant 2 : index
    %c0_38 = arith.constant 0 : index
    %46 = vector.load %arg1[%c0_37, %c2, %c0_38] : memref<1x362x32xf32, #tpu.memory_space<vmem>>, vector<1x324x32xf32>
    %47 = vector.shape_cast %46 : vector<1x324x32xf32> to vector<324x32xf32>
    %c2_39 = arith.constant 2 : index
    %c0_40 = arith.constant 0 : index
    %c0_41 = arith.constant 0 : index
    %48 = vector.load %arg9[%c2_39, %c0_40, %c0_41] : memref<9x32x32xf32, #tpu.memory_space<vmem>>, vector<1x32x32xf32>
    %49 = vector.shape_cast %48 : vector<1x32x32xf32> to vector<32x32xf32>
    %cst_42 = arith.constant dense<0.000000e+00> : vector<324x32xf32>
    %50 = tpu.matmul %47, %49, %cst_42 {dimension_numbers = #tpu.dot_dimension_numbers<[1], [0], [0], [1], [0, 0, 1, 1], [], []>} : vector<324x32xf32>, vector<32x32xf32>, vector<324x32xf32> -> vector<324x32xf32>
    %51 = arith.addf %45, %50 : vector<324x32xf32>
    %c0_43 = arith.constant 0 : index
    %c18 = arith.constant 18 : index
    %c0_44 = arith.constant 0 : index
    %52 = vector.load %arg1[%c0_43, %c18, %c0_44] : memref<1x362x32xf32, #tpu.memory_space<vmem>>, vector<1x324x32xf32>
    %53 = vector.shape_cast %52 : vector<1x324x32xf32> to vector<324x32xf32>
    %c3 = arith.constant 3 : index
    %c0_45 = arith.constant 0 : index
    %c0_46 = arith.constant 0 : index
    %54 = vector.load %arg9[%c3, %c0_45, %c0_46] : memref<9x32x32xf32, #tpu.memory_space<vmem>>, vector<1x32x32xf32>
    %55 = vector.shape_cast %54 : vector<1x32x32xf32> to vector<32x32xf32>
    %cst_47 = arith.constant dense<0.000000e+00> : vector<324x32xf32>
    %56 = tpu.matmul %53, %55, %cst_47 {dimension_numbers = #tpu.dot_dimension_numbers<[1], [0], [0], [1], [0, 0, 1, 1], [], []>} : vector<324x32xf32>, vector<32x32xf32>, vector<324x32xf32> -> vector<324x32xf32>
    %57 = arith.addf %51, %56 : vector<324x32xf32>
    %c0_48 = arith.constant 0 : index
    %c19_49 = arith.constant 19 : index
    %c0_50 = arith.constant 0 : index
    %58 = vector.load %arg1[%c0_48, %c19_49, %c0_50] : memref<1x362x32xf32, #tpu.memory_space<vmem>>, vector<1x324x32xf32>
    %59 = vector.shape_cast %58 : vector<1x324x32xf32> to vector<324x32xf32>
    %c4 = arith.constant 4 : index
    %c0_51 = arith.constant 0 : index
    %c0_52 = arith.constant 0 : index
    %60 = vector.load %arg9[%c4, %c0_51, %c0_52] : memref<9x32x32xf32, #tpu.memory_space<vmem>>, vector<1x32x32xf32>
    %61 = vector.shape_cast %60 : vector<1x32x32xf32> to vector<32x32xf32>
    %cst_53 = arith.constant dense<0.000000e+00> : vector<324x32xf32>
    %62 = tpu.matmul %59, %61, %cst_53 {dimension_numbers = #tpu.dot_dimension_numbers<[1], [0], [0], [1], [0, 0, 1, 1], [], []>} : vector<324x32xf32>, vector<32x32xf32>, vector<324x32xf32> -> vector<324x32xf32>
    %63 = arith.addf %57, %62 : vector<324x32xf32>
    %c0_54 = arith.constant 0 : index
    %c20 = arith.constant 20 : index
    %c0_55 = arith.constant 0 : index
    %64 = vector.load %arg1[%c0_54, %c20, %c0_55] : memref<1x362x32xf32, #tpu.memory_space<vmem>>, vector<1x324x32xf32>
    %65 = vector.shape_cast %64 : vector<1x324x32xf32> to vector<324x32xf32>
    %c5 = arith.constant 5 : index
    %c0_56 = arith.constant 0 : index
    %c0_57 = arith.constant 0 : index
    %66 = vector.load %arg9[%c5, %c0_56, %c0_57] : memref<9x32x32xf32, #tpu.memory_space<vmem>>, vector<1x32x32xf32>
    %67 = vector.shape_cast %66 : vector<1x32x32xf32> to vector<32x32xf32>
    %cst_58 = arith.constant dense<0.000000e+00> : vector<324x32xf32>
    %68 = tpu.matmul %65, %67, %cst_58 {dimension_numbers = #tpu.dot_dimension_numbers<[1], [0], [0], [1], [0, 0, 1, 1], [], []>} : vector<324x32xf32>, vector<32x32xf32>, vector<324x32xf32> -> vector<324x32xf32>
    %69 = arith.addf %63, %68 : vector<324x32xf32>
    %c0_59 = arith.constant 0 : index
    %c36 = arith.constant 36 : index
    %c0_60 = arith.constant 0 : index
    %70 = vector.load %arg1[%c0_59, %c36, %c0_60] : memref<1x362x32xf32, #tpu.memory_space<vmem>>, vector<1x324x32xf32>
    %71 = vector.shape_cast %70 : vector<1x324x32xf32> to vector<324x32xf32>
    %c6 = arith.constant 6 : index
    %c0_61 = arith.constant 0 : index
    %c0_62 = arith.constant 0 : index
    %72 = vector.load %arg9[%c6, %c0_61, %c0_62] : memref<9x32x32xf32, #tpu.memory_space<vmem>>, vector<1x32x32xf32>
    %73 = vector.shape_cast %72 : vector<1x32x32xf32> to vector<32x32xf32>
    %cst_63 = arith.constant dense<0.000000e+00> : vector<324x32xf32>
    %74 = tpu.matmul %71, %73, %cst_63 {dimension_numbers = #tpu.dot_dimension_numbers<[1], [0], [0], [1], [0, 0, 1, 1], [], []>} : vector<324x32xf32>, vector<32x32xf32>, vector<324x32xf32> -> vector<324x32xf32>
    %75 = arith.addf %69, %74 : vector<324x32xf32>
    %c0_64 = arith.constant 0 : index
    %c37 = arith.constant 37 : index
    %c0_65 = arith.constant 0 : index
    %76 = vector.load %arg1[%c0_64, %c37, %c0_65] : memref<1x362x32xf32, #tpu.memory_space<vmem>>, vector<1x324x32xf32>
    %77 = vector.shape_cast %76 : vector<1x324x32xf32> to vector<324x32xf32>
    %c7 = arith.constant 7 : index
    %c0_66 = arith.constant 0 : index
    %c0_67 = arith.constant 0 : index
    %78 = vector.load %arg9[%c7, %c0_66, %c0_67] : memref<9x32x32xf32, #tpu.memory_space<vmem>>, vector<1x32x32xf32>
    %79 = vector.shape_cast %78 : vector<1x32x32xf32> to vector<32x32xf32>
    %cst_68 = arith.constant dense<0.000000e+00> : vector<324x32xf32>
    %80 = tpu.matmul %77, %79, %cst_68 {dimension_numbers = #tpu.dot_dimension_numbers<[1], [0], [0], [1], [0, 0, 1, 1], [], []>} : vector<324x32xf32>, vector<32x32xf32>, vector<324x32xf32> -> vector<324x32xf32>
    %81 = arith.addf %75, %80 : vector<324x32xf32>
    %c0_69 = arith.constant 0 : index
    %c38 = arith.constant 38 : index
    %c0_70 = arith.constant 0 : index
    %82 = vector.load %arg1[%c0_69, %c38, %c0_70] : memref<1x362x32xf32, #tpu.memory_space<vmem>>, vector<1x324x32xf32>
    %83 = vector.shape_cast %82 : vector<1x324x32xf32> to vector<324x32xf32>
    %c8 = arith.constant 8 : index
    %c0_71 = arith.constant 0 : index
    %c0_72 = arith.constant 0 : index
    %84 = vector.load %arg9[%c8, %c0_71, %c0_72] : memref<9x32x32xf32, #tpu.memory_space<vmem>>, vector<1x32x32xf32>
    %85 = vector.shape_cast %84 : vector<1x32x32xf32> to vector<32x32xf32>
    %cst_73 = arith.constant dense<0.000000e+00> : vector<324x32xf32>
    %86 = tpu.matmul %83, %85, %cst_73 {dimension_numbers = #tpu.dot_dimension_numbers<[1], [0], [0], [1], [0, 0, 1, 1], [], []>} : vector<324x32xf32>, vector<32x32xf32>, vector<324x32xf32> -> vector<324x32xf32>
    %87 = arith.addf %81, %86 : vector<324x32xf32>
    %c0_74 = arith.constant 0 : index
    %c0_75 = arith.constant 0 : index
    %88 = vector.load %arg10[%c0_74, %c0_75] : memref<1x32xf32, #tpu.memory_space<vmem>>, vector<1x32xf32>
    %89 = vector.broadcast %88 : vector<1x32xf32> to vector<324x32xf32>
    %90 = arith.mulf %87, %89 : vector<324x32xf32>
    %c0_76 = arith.constant 0 : index
    %c0_77 = arith.constant 0 : index
    %91 = vector.load %arg11[%c0_76, %c0_77] : memref<1x32xf32, #tpu.memory_space<vmem>>, vector<1x32xf32>
    %92 = vector.broadcast %91 : vector<1x32xf32> to vector<324x32xf32>
    %93 = arith.addf %90, %92 : vector<324x32xf32>
    %cst_78 = arith.constant 0.000000e+00 : f32
    %94 = vector.broadcast %cst_78 : f32 to vector<324x32xf32>
    %95 = arith.maximumf %93, %94 : vector<324x32xf32>
    %96 = vector.broadcast %22 : vector<1x32xf32> to vector<324x32xf32>
    %97 = arith.mulf %3, %96 : vector<324x32xf32>
    %98 = vector.broadcast %32 : vector<324x1xf32> to vector<324x32xf32>
    %99 = arith.mulf %3, %98 : vector<324x32xf32>
    %100 = arith.addf %97, %99 : vector<324x32xf32>
    %101 = arith.addf %100, %95 : vector<324x32xf32>
    %c0_79 = arith.constant 0 : index
    %c0_80 = arith.constant 0 : index
    %c0_81 = arith.constant 0 : index
    %102 = vector.load %arg12[%c0_79, %c0_80, %c0_81] : memref<1x324x32xf32, #tpu.memory_space<vmem>>, vector<1x324x32xf32>
    %103 = vector.shape_cast %102 : vector<1x324x32xf32> to vector<324x32xf32>
    %104 = vector.shape_cast %101 : vector<324x32xf32> to vector<1x324x32xf32>
    tpu.vector_store %arg12[%c0_79, %c0_80, %c0_81], %104 {strides = array<i32>} : memref<1x324x32xf32, #tpu.memory_space<vmem>>, vector<1x324x32xf32>,
    return
  }
  func.func @transform_0(%arg0: i32) -> (i32, i32, i32) {
    %c0_i32 = arith.constant 0 : i32
    %c0_i32_0 = arith.constant 0 : i32
    %c0_i32_1 = arith.constant 0 : i32
    return %arg0, %c0_i32, %c0_i32_0 : i32, i32, i32
  }
  func.func @transform_1(%arg0: i32) -> (i32, i32, i32) {
    %c0_i32 = arith.constant 0 : i32
    %c0_i32_0 = arith.constant 0 : i32
    %c0_i32_1 = arith.constant 0 : i32
    return %arg0, %c0_i32, %c0_i32_0 : i32, i32, i32
  }
  func.func @transform_2(%arg0: i32) -> (i32, i32) {
    %c0_i32 = arith.constant 0 : i32
    %c0_i32_0 = arith.constant 0 : i32
    %c0_i32_1 = arith.constant 0 : i32
    return %c0_i32, %c0_i32_0 : i32, i32
  }
  func.func @transform_3(%arg0: i32) -> (i32, i32) {
    %c0_i32 = arith.constant 0 : i32
    %c0_i32_0 = arith.constant 0 : i32
    %c0_i32_1 = arith.constant 0 : i32
    return %c0_i32, %c0_i32_0 : i32, i32
  }
  func.func @transform_4(%arg0: i32) -> (i32, i32) {
    %c0_i32 = arith.constant 0 : i32
    %c0_i32_0 = arith.constant 0 : i32
    %c0_i32_1 = arith.constant 0 : i32
    return %c0_i32, %c0_i32_0 : i32, i32
  }
  func.func @transform_5(%arg0: i32) -> (i32, i32) {
    %c0_i32 = arith.constant 0 : i32
    %c0_i32_0 = arith.constant 0 : i32
    %c0_i32_1 = arith.constant 0 : i32
    return %c0_i32, %c0_i32_0 : i32, i32
  }
  func.func @transform_6(%arg0: i32) -> (i32, i32) {
    %c0_i32 = arith.constant 0 : i32
    %c0_i32_0 = arith.constant 0 : i32
    %c0_i32_1 = arith.constant 0 : i32
    return %c0_i32, %c0_i32_0 : i32, i32
  }
  func.func @transform_7(%arg0: i32) -> (i32, i32) {
    %c0_i32 = arith.constant 0 : i32
    %c0_i32_0 = arith.constant 0 : i32
    %c0_i32_1 = arith.constant 0 : i32
    return %c0_i32, %c0_i32_0 : i32, i32
  }
  func.func @transform_8(%arg0: i32) -> (i32, i32, i32) {
    %c0_i32 = arith.constant 0 : i32
    %c0_i32_0 = arith.constant 0 : i32
    %c0_i32_1 = arith.constant 0 : i32
    %c0_i32_2 = arith.constant 0 : i32
    return %c0_i32, %c0_i32_0, %c0_i32_1 : i32, i32, i32
  }
  func.func @transform_9(%arg0: i32) -> (i32, i32) {
    %c0_i32 = arith.constant 0 : i32
    %c0_i32_0 = arith.constant 0 : i32
    %c0_i32_1 = arith.constant 0 : i32
    return %c0_i32, %c0_i32_0 : i32, i32
  }
  func.func @transform_10(%arg0: i32) -> (i32, i32) {
    %c0_i32 = arith.constant 0 : i32
    %c0_i32_0 = arith.constant 0 : i32
    %c0_i32_1 = arith.constant 0 : i32
    return %c0_i32, %c0_i32_0 : i32, i32
  }
  func.func @transform_11(%arg0: i32) -> (i32, i32, i32) {
    %c0_i32 = arith.constant 0 : i32
    %c0_i32_0 = arith.constant 0 : i32
    %c0_i32_1 = arith.constant 0 : i32
    return %arg0, %c0_i32, %c0_i32_0 : i32, i32, i32
  }
}

</mosaic_0001>

<bundles_post_ra>
// kernel: tpu_custom_call.1
= control target key start
LH: loop header
LB: loop body
LE: loop exit
PB: predicated region body
PF: predicated region fallthrough
CT: control target
= control target key end

     0   :  { %s9336_s19 = smov 0   ;;  %s12261_s0 = inlined_call_operand.vmem [shape: f32[2,362,32], index: 0, kind: input, shape index: {}]   ;;  %s12262_s1 = inlined_call_operand.vmem [shape: f32[2,324,32], index: 1, kind: input, shape index: {}]   ;;  %s12263_s2 = inlined_call_operand.vmem [shape: f32[32,2], index: 2, kind: input, shape index: {}]   ;;  %s12264_s3 = inlined_call_operand.vmem [shape: f32[1,2], index: 3, kind: input, shape index: {}]   ;;  %s12265_s4 = inlined_call_operand.vmem [shape: f32[2,32], index: 4, kind: input, shape index: {}]   ;;  %s12266_s5 = inlined_call_operand.vmem [shape: f32[1,32], index: 5, kind: input, shape index: {}]   ;;  %s12267_s6 = inlined_call_operand.vmem [shape: f32[32,1], index: 6, kind: input, shape index: {}]   ;;  %s12268_s7 = inlined_call_operand.<no memory space> [shape: f32[1,1], index: 7, kind: input, shape index: {}]   ;;  %s12269_s8 = inlined_call_operand.vmem [shape: f32[9,32,32], index: 8, kind: input, shape index: {}]   ;;  %s12270_s9 = inlined_call_operand.vmem [shape: f32[1,32], index: 9, kind: input, shape index: {}]   ;;  %s12271_s10 = inlined_call_operand.vmem [shape: f32[1,32], index: 10, kind: input, shape index: {}]   ;;  %s12272_s11 = inlined_call_operand.vmem [shape: f32[2,324,32], index: 11, kind: output, shape index: {}]  }
   0x1   :  { %v16_v0 = vstv %s12268_s7 }
   0x2   :  { %17 = vst [vmem:[#allocation2] sm:$0x1] %v16_v0 }
   0x3 LB: > { %s6087_s20 = sadd.s32 4294967295, %s9267_s19   ;;  %p6091_p0 = scmp.ge.s32.totalorder %s9267_s19, 1  ;;  %s9267_s19 = sphi %s9336_s19, %s23_s19  }
   0x4   : > { %p349_p1 = scmp.lt.s32.totalorder %s9267_s19, 3 }
   0x6   : > { %p350_p2 = pnand %p6091_p0, %p349_p1 }
   0x8   : > { %353 = sbr.rel (%p350_p2) target bundleno = 1381 (0x565), region = 64 }
   0xf   : > { %v581_v1 = vld [vmem:[%s12263_s2] sm:$0xff]  ;;  %v582_v2 = vld [vmem:[%s12263_s2 + $0x8] sm:$0xff]  ;;  %v583_v3 = vld [vmem:[%s12263_s2 + $0x10] sm:$0xff]  ;;  %v9269_v4 = vmov 0.0|0.0   ;;  %vm9270_vm0 = vmmov 0   ;;  %v9271_v7 = vmov 0.0  }
  0x10   : > { %8370 = vmatprep.subr.bf16.mxu0 %v9269_v4  ;;  %v8371_v5 = vpack.c.bf16 %v582_v2, %v581_v1  ;;  %v584_v6 = vld [vmem:[%s12263_s2 + $0x18] sm:$0xff]  ;;  %7052 = vmatprep.mubr.msk.f32.mxu0 %vm9270_vm0, %v9271_v7  ;;  %p394_p3 = scmp.lt.s32.totalorder %s6087_s20, 1  ;;  %vm491_vm1 = vcmask 261120   ;;  %vm571_vm2 = vcmask 257024   ;;  %vm666_vm3 = vcmask 1041408  }
  0x11   : > { %7055 = vmatprep.subr.mxu1 %v9271_v7  ;;  %7057 = vmatprep.mubr.msk.f32.mxu1 %vm9270_vm0, %v9271_v7  ;;  %v8374_v8 = vpack.c.bf16 %v584_v6, %v583_v3  ;;  %vm662_vm4 = vcmask 15360  }
  0x12   : > { %8372 = vmatpush3.bf16.msra.mxu0 %v8371_v5  ;;  %s12342_s20 = smov (!%p394_p3, %s6087_s20), 1 }
  0x13   : > { %8373 = vmatprep.subr.bf16.mxu0 %v9269_v4  ;;  %s9051_s28 = smul.u32 368, %s12342_s20 }
  0x14   : > { %s9052_s25 = smul.u32 328, %s12342_s20 }
  0x15   : > { %s9369_s12 = scalar_lea.vmem %s12261_s0, %s9051_s28 }
  0x16   : > { %8375 = vmatpush3.bf16.msra.mxu0 %v8374_v8  ;;  %v9373_v9 = vld [vmem:[%s9369_s12 + $0x13] sm:$0xff]  ;;  %v9376_v10 = vld [vmem:[%s9369_s12 + $0x1b] sm:$0xff]  ;;  %v9379_v11 = vld [vmem:[%s9369_s12 + $0x23] sm:$0xff]  ;;  %s10507_s28 = scalar_lea.vmem %s12262_s1, %s9052_s25  ;;  %s11988_s27 = scalar_lea.vmem %s12272_s11, %s9052_s25 }
  0x17   : > { %8406 = vmatprep.subr.bf16.mxu0 %v9269_v4  ;;  %v9382_v12 = vld [vmem:[%s9369_s12 + $0x2b] sm:$0xff]  ;;  %v492_v13 = vsel %vm491_vm1, %v9373_v9, 0.0  ;;  %v493_v14 = vsel %vm491_vm1, %v9376_v10, 0.0  ;;  %v495_v15 = vsel %vm491_vm1, %v9379_v11, 0.0  ;;  %v9391_v16 = vld [vmem:[%s9369_s12 + $0x33] sm:$0xff]  ;;  %v9396_v19 = vld [vmem:[%s9369_s12 + $0x3b] sm:$0xff] }
  0x18   : > { %v494_v17 = vadd.f32 %v493_v14, %v492_v13  ;;  %v497_v18 = vsel %vm491_vm1, %v9382_v12, 0.0  ;;  %v499_v21 = vsel %vm491_vm1, %v9391_v16, 0.0  ;;  %v9401_v22 = vld [vmem:[%s9369_s12 + $0x43] sm:$0xff]  ;;  %v501_v24 = vsel %vm491_vm1, %v9396_v19, 0.0  ;;  %v9406_v25 = vld [vmem:[%s9369_s12 + $0x4b] sm:$0xff]  ;;  %v9411_v28 = vld [vmem:[%s9369_s12 + $0x53] sm:$0xff] }
  0x19   : > { %v503_v27 = vsel %vm491_vm1, %v9401_v22, 0.0  ;;  %v505_v30 = vsel %vm491_vm1, %v9406_v25, 0.0  ;;  %v9416_v31 = vld [vmem:[%s9369_s12 + $0x5b] sm:$0xff]  ;;  %v507_v33 = vsel %vm491_vm1, %v9411_v28, 0.0  ;;  %v9421_v34 = vld [vmem:[%s9369_s12 + $0x63] sm:$0xff]  ;;  %v9426_v37 = vld [vmem:[%s9369_s12 + $0x6b] sm:$0xff] }
  0x1a   : > { %v496_v20 = vadd.f32 %v495_v15, %v494_v17  ;;  %v509_v36 = vsel %vm491_vm1, %v9416_v31, 0.0  ;;  %v511_v39 = vsel %vm491_vm1, %v9421_v34, 0.0  ;;  %v9431_v40 = vld [vmem:[%s9369_s12 + $0x73] sm:$0xff]  ;;  %v513_v42 = vsel %vm491_vm1, %v9426_v37, 0.0  ;;  %v9436_v43 = vld [vmem:[%s9369_s12 + $0x7b] sm:$0xff]  ;;  %v9441_v46 = vld [vmem:[%s9369_s12 + $0x83] sm:$0xff] }
  0x1b   : > { %v515_v45 = vsel %vm491_vm1, %v9431_v40, 0.0  ;;  %v517_v48 = vsel %vm491_vm1, %v9436_v43, 0.0  ;;  %v9446_v49 = vld [vmem:[%s9369_s12 + $0x8b] sm:$0xff]  ;;  %v519_v51 = vsel %vm491_vm1, %v9441_v46, 0.0  ;;  %v9451_v52 = vld [vmem:[%s9369_s12 + $0x93] sm:$0xff]  ;;  %v9456_v55 = vld [vmem:[%s9369_s12 + $0x9b] sm:$0xff] }
  0x1c   : > { %v498_v23 = vadd.f32 %v497_v18, %v496_v20  ;;  %v521_v54 = vsel %vm491_vm1, %v9446_v49, 0.0  ;;  %v523_v57 = vsel %vm491_vm1, %v9451_v52, 0.0  ;;  %v9461_v58 = vld [vmem:[%s9369_s12 + $0xa3] sm:$0xff]  ;;  %v525_v60 = vsel %vm491_vm1, %v9456_v55, 0.0  ;;  %v9466_v61 = vld [vmem:[%s9369_s12 + $0xab] sm:$0xff]  ;;  %v9471_v0 = vld [vmem:[%s9369_s12 + $0xb3] sm:$0xff] }
  0x1d   : > { %v527_v63 = vsel %vm491_vm1, %v9461_v58, 0.0  ;;  %v529_v2 = vsel %vm491_vm1, %v9466_v61, 0.0  ;;  %v9476_v3 = vld [vmem:[%s9369_s12 + $0xbb] sm:$0xff]  ;;  %v531_v6 = vsel %vm491_vm1, %v9471_v0, 0.0  ;;  %v9481_v8 = vld [vmem:[%s9369_s12 + $0xc3] sm:$0xff]  ;;  %v9486_v15 = vld [vmem:[%s9369_s12 + $0xcb] sm:$0xff] }
  0x1e   : > { %v500_v26 = vadd.f32 %v499_v21, %v498_v23  ;;  %v533_v14 = vsel %vm491_vm1, %v9476_v3, 0.0  ;;  %v535_v18 = vsel %vm491_vm1, %v9481_v8, 0.0  ;;  %v9491_v20 = vld [vmem:[%s9369_s12 + $0xd3] sm:$0xff]  ;;  %v537_v23 = vsel %vm491_vm1, %v9486_v15, 0.0 }
  0x20   : > { %v502_v29 = vadd.f32 %v501_v24, %v500_v26  ;;  %v9496_v24 = vld [vmem:[%s9369_s12 + $0xdb] sm:$0xff] }
  0x22   : > { %v504_v32 = vadd.f32 %v503_v27, %v502_v29  ;;  %v539_v27 = vsel %vm491_vm1, %v9491_v20, 0.0  ;;  %v9501_v29 = vld [vmem:[%s9369_s12 + $0xe3] sm:$0xff] }
  0x24   : > { %v506_v35 = vadd.f32 %v505_v30, %v504_v32  ;;  %v541_v32 = vsel %vm491_vm1, %v9496_v24, 0.0 }
  0x26   : > { %v508_v38 = vadd.f32 %v507_v33, %v506_v35  ;;  %v9506_v33 = vld [vmem:[%s9369_s12 + $0xeb] sm:$0xff] }
  0x28   : > { %v510_v41 = vadd.f32 %v509_v36, %v508_v38  ;;  %v543_v36 = vsel %vm491_vm1, %v9501_v29, 0.0  ;;  %v9511_v38 = vld [vmem:[%s9369_s12 + $0xf3] sm:$0xff] }
  0x2a   : > { %v512_v44 = vadd.f32 %v511_v39, %v510_v41  ;;  %v545_v41 = vsel %vm491_vm1, %v9506_v33, 0.0 }
  0x2c   : > { %v514_v47 = vadd.f32 %v513_v42, %v512_v44  ;;  %v9516_v42 = vld [vmem:[%s9369_s12 + $0xfb] sm:$0xff] }
  0x2e   : > { %v516_v50 = vadd.f32 %v515_v45, %v514_v47  ;;  %v547_v45 = vsel %vm491_vm1, %v9511_v38, 0.0  ;;  %v9521_v47 = vld [vmem:[%s9369_s12 + $0x103] sm:$0xff] }
  0x30   : > { %v518_v53 = vadd.f32 %v517_v48, %v516_v50  ;;  %v549_v50 = vsel %vm491_vm1, %v9516_v42, 0.0 }
  0x32   : > { %v520_v56 = vadd.f32 %v519_v51, %v518_v53  ;;  %v9526_v51 = vld [vmem:[%s9369_s12 + $0x10b] sm:$0xff] }
  0x34   : > { %v522_v59 = vadd.f32 %v521_v54, %v520_v56  ;;  %v551_v54 = vsel %vm491_vm1, %v9521_v47, 0.0  ;;  %v9531_v56 = vld [vmem:[%s9369_s12 + $0x113] sm:$0xff] }
  0x36   : > { %v524_v62 = vadd.f32 %v523_v57, %v522_v59  ;;  %v553_v59 = vsel %vm491_vm1, %v9526_v51, 0.0 }
  0x38   : > { %v526_v1 = vadd.f32 %v525_v60, %v524_v62  ;;  %v9536_v60 = vld [vmem:[%s9369_s12 + $0x11b] sm:$0xff] }
  0x3a   : > { %v528_v5 = vadd.f32 %v527_v63, %v526_v1  ;;  %v555_v63 = vsel %vm491_vm1, %v9531_v56, 0.0  ;;  %v9541_v1 = vld [vmem:[%s9369_s12 + $0x123] sm:$0xff] }
  0x3c   : > { %v530_v13 = vadd.f32 %v529_v2, %v528_v5  ;;  %v557_v5 = vsel %vm491_vm1, %v9536_v60, 0.0 }
  0x3e   : > { %v532_v17 = vadd.f32 %v531_v6, %v530_v13  ;;  %v9546_v6 = vld [vmem:[%s9369_s12 + $0x12b] sm:$0xff] }
  0x40   : > { %v534_v21 = vadd.f32 %v533_v14, %v532_v17  ;;  %v559_v14 = vsel %vm491_vm1, %v9541_v1, 0.0  ;;  %v9551_v17 = vld [vmem:[%s9369_s12 + $0x133] sm:$0xff] }
  0x42   : > { %v536_v26 = vadd.f32 %v535_v18, %v534_v21  ;;  %v561_v21 = vsel %vm491_vm1, %v9546_v6, 0.0 }
  0x44   : > { %v538_v30 = vadd.f32 %v537_v23, %v536_v26  ;;  %v9556_v23 = vld [vmem:[%s9369_s12 + $0x13b] sm:$0xff] }
  0x46   : > { %v540_v35 = vadd.f32 %v539_v27, %v538_v30  ;;  %v563_v27 = vsel %vm491_vm1, %v9551_v17, 0.0  ;;  %v9561_v30 = vld [vmem:[%s9369_s12 + $0x143] sm:$0xff] }
  0x48   : > { %v542_v39 = vadd.f32 %v541_v32, %v540_v35  ;;  %v565_v35 = vsel %vm491_vm1, %v9556_v23, 0.0 }
  0x4a   : > { %v544_v44 = vadd.f32 %v543_v36, %v542_v39  ;;  %v9566_v36 = vld [vmem:[%s9369_s12 + $0x14b] sm:$0xff] }
  0x4c   : > { %v546_v48 = vadd.f32 %v545_v41, %v544_v44  ;;  %v567_v41 = vsel %vm491_vm1, %v9561_v30, 0.0  ;;  %v9571_v44 = vld [vmem:[%s9369_s12 + $0x153] sm:$0xf] }
  0x4e   : > { %v548_v53 = vadd.f32 %v547_v45, %v546_v48  ;;  %v569_v48 = vsel %vm491_vm1, %v9566_v36, 0.0 }
  0x50   : > { %v550_v57 = vadd.f32 %v549_v50, %v548_v53  ;;  %v572_v53 = vsel %vm571_vm2, %v9571_v44, 0.0 }
  0x52   : > { %v552_v62 = vadd.f32 %v551_v54, %v550_v57 }
  0x54   : > { %v554_v2 = vadd.f32 %v553_v59, %v552_v62 }
  0x56   : > { %v556_v13 = vadd.f32 %v555_v63, %v554_v2 }
  0x58   : > { %v558_v18 = vadd.f32 %v557_v5, %v556_v13  ;;  %v6358_v13 = vld [vmem:[%s12269_s8 + $0x80] sm:$0xff] }
  0x5a   : > { %v560_v26 = vadd.f32 %v559_v14, %v558_v18  ;;  %v6359_v14 = vld [vmem:[%s12269_s8 + $0x88] sm:$0xff] }
  0x5c   : > { %v562_v32 = vadd.f32 %v561_v21, %v560_v26  ;;  %v8407_v21 = vpack.c.bf16 %v6359_v14, %v6358_v13  ;;  %v9813_v13 = vld [vmem:[%s9369_s12 + $0x44] sm:$0xff]  ;;  %v9820_v14 = vld [vmem:[%s9369_s12 + $0x4c] sm:$0xff] }
  0x5e   : > { %v564_v39 = vadd.f32 %v563_v27, %v562_v32  ;;  %v6360_v27 = vld [vmem:[%s12269_s8 + $0x90] sm:$0xff]  ;;  %v6361_v32 = vld [vmem:[%s12269_s8 + $0x98] sm:$0xff] }
  0x60   : > { %v566_v45 = vadd.f32 %v565_v35, %v564_v39  ;;  %v8410_v35 = vpack.c.bf16 %v6361_v32, %v6360_v27  ;;  %v6403_v39 = vld [vmem:[%s12269_s8 + $0xa0] sm:$0xff]  ;;  %v9833_v27 = vld [vmem:[%s9369_s12 + $0x54] sm:$0xff] }
  0x61   : > { %v6450_v32 = vld [vmem:[%s12269_s8 + $0xd0] sm:$0xff] }
  0x62   : > { %v568_v50 = vadd.f32 %v567_v41, %v566_v45  ;;  %v6404_v41 = vld [vmem:[%s12269_s8 + $0xa8] sm:$0xff] }
  0x63   : > { %v8413_v45 = vpack.c.bf16 %v6404_v41, %v6403_v39  ;;  %v9847_v41 = vld [vmem:[%s9369_s12 + $0x5c] sm:$0xff] }
  0x64   : > { %v570_v54 = vadd.f32 %v569_v48, %v568_v50  ;;  %v6405_v48 = vld [vmem:[%s12269_s8 + $0xb0] sm:$0xff]  ;;  %v6406_v50 = vld [vmem:[%s12269_s8 + $0xb8] sm:$0xff] }
  0x66   : > { %v573_v57 = vadd.f32 %v572_v53, %v570_v54  ;;  %v8416_v53 = vpack.c.bf16 %v6406_v50, %v6405_v48  ;;  %v660_v54 = vld [vmem:[%s12265_s4] sm:$0x3]  ;;  %v9858_v48 = vld [vmem:[%s9369_s12 + $0x64] sm:$0xff] }
  0x67   : > { %7056 = vmatpush3.msk.msra.mxu1 %vm666_vm3, %v660_v54  ;;  %v746_v50 = vld [vmem:[%s12267_s6] sm:$0xff] }
  0x68   : > { %v574_v59 = vrot.slane %v573_v57, 4  ;;  %8376 = vmatprep.subr.bf16.mxu1 %v9269_v4 }
  0x6a   : > { %v575_v62 = vadd.f32 %v574_v59, %v573_v57  ;;  %v3549_v57 = vld [vmem:[%s9369_s12 + $0x14] sm:$0xff]  ;;  %v3550_v59 = vld [vmem:[%s9369_s12 + $0x1c] sm:$0xff] }
  0x6c   : > { %v576_v63 = vrot.slane %v575_v62, 2 }
  0x6e   : > { %v577_v2 = vadd.f32 %v576_v63, %v575_v62  ;;  %v9785_v62 = vld [vmem:[%s9369_s12 + $0x24] sm:$0xff]  ;;  %v9792_v63 = vld [vmem:[%s9369_s12 + $0x2c] sm:$0xff] }
  0x70   : > { %v578_v5 = vrot.slane %v577_v2, 1 }
  0x72   : > { %v579_v18 = vadd.f32 %v578_v5, %v577_v2  ;;  %v9799_v2 = vld [vmem:[%s9369_s12 + $0x34] sm:$0xff]  ;;  %v9806_v5 = vld [vmem:[%s9369_s12 + $0x3c] sm:$0xff] }
  0x74   : > { %v580_v26 = vmul.f32 0.00390625, %v579_v18  ;;  %v6448_v18 = vld [vmem:[%s12269_s8 + $0xc0] sm:$0xff] }
  0x76   : > { %7053 = vmatmul.mubr.msk.f32.vlgmr.msra.gmra.mrb[0].mxu0 %vm491_vm1, %v580_v26 }
  0x77   : > { %8408 = vmatpush3.bf16.msra.mxu0 %v8407_v21  ;;  %7723 = vmatprep.mubr.msk.f32.mxu0 %vm9270_vm0, %v9271_v7  ;;  %v6449_v21 = vld [vmem:[%s12269_s8 + $0xc8] sm:$0xff] }
  0x78   : > { %8409 = vmatprep.subr.bf16.mxu0 %v9269_v4  ;;  %v8419_v26 = vpack.c.bf16 %v6449_v21, %v6448_v18  ;;  %v9871_v18 = vld [vmem:[%s9369_s12 + $0x6c] sm:$0xff] }
  0x7b   : > { %8411 = vmatpush3.bf16.msra.mxu0 %v8410_v35  ;;  %v6451_v35 = vld [vmem:[%s12269_s8 + $0xd8] sm:$0xff] }
  0x7c   : > { %8412 = vmatprep.subr.bf16.mxu0 %v9269_v4  ;;  %v8422_v39 = vpack.c.bf16 %v6451_v35, %v6450_v32  ;;  %v748_v32 = vld [vmem:[%s12267_s6 + $0x10] sm:$0xff]  ;;  %v749_v35 = vld [vmem:[%s12267_s6 + $0x18] sm:$0xff] }
  0x7e   : > { %7724 = vmatmul.mubr.msk.f32.vlgmr.msra.gmra.mrb[2].mxu0 %vm491_vm1, %v9373_v9 }
  0x7f   : > { %7726 = vmatprep.mubr.msk.f32.mxu0 %vm9270_vm0, %v9271_v7  ;;  %8414 = vmatpush3.bf16.msra.mxu0 %v8413_v45  ;;  %v585_v45 = vld [vmem:[%s12264_s3] sm:$0x1] }
  0x80   : > { %8415 = vmatprep.subr.bf16.mxu0 %v9269_v4 }
  0x82   : > { %7727 = vmatmul.mubr.msk.f32.gmra.mrb[4].mxu0 %vm491_vm1, %v9376_v10 }
  0x83   : > { %7729 = vmatprep.mubr.msk.f32.mxu0 %vm9270_vm0, %v9271_v7  ;;  %8417 = vmatpush3.bf16.msra.mxu0 %v8416_v53  ;;  %v747_v53 = vld [vmem:[%s12267_s6 + $0x8] sm:$0xff] }
  0x84   : > { %8418 = vmatprep.subr.bf16.mxu0 %v9269_v4  ;;  %v8377_v21 = vpack.c.bf16 %v747_v53, %v746_v50  ;;  %v6182_v50 = vld [vmem:[%s12269_s8 + $0x20] sm:$0xff]  ;;  %v6183_v53 = vld [vmem:[%s12269_s8 + $0x28] sm:$0xff] }
  0x86   : > { %7730 = vmatmul.mubr.msk.f32.gmra.mrb[6].mxu0 %vm491_vm1, %v9379_v11 }
  0x87   : > { %7732 = vmatprep.mubr.msk.f32.mxu0 %vm9270_vm0, %v9271_v7 }
  0x8a   : > { %7733 = vmatmul.mubr.msk.f32.gmra.mrb[8].mxu0 %vm491_vm1, %v9382_v12 }
  0x8b   : > { %7735 = vmatprep.mubr.msk.f32.mxu0 %vm9270_vm0, %v9271_v7 }
  0x8e   : > { %7736 = vmatmul.mubr.msk.f32.gmra.mrb[10].mxu0 %vm491_vm1, %v9391_v16 }
  0x8f   : > { %7738 = vmatprep.mubr.msk.f32.mxu0 %vm9270_vm0, %v9271_v7 }
  0x92   : > { %7739 = vmatmul.mubr.msk.f32.gmra.mrb[12].mxu0 %vm491_vm1, %v9396_v19 }
  0x93   : > { %7741 = vmatprep.mubr.msk.f32.mxu0 %vm9270_vm0, %v9271_v7 }
  0x96   : > { %7742 = vmatmul.mubr.msk.f32.gmra.mrb[14].mxu0 %vm491_vm1, %v9401_v22 }
  0x97   : > { %7744 = vmatprep.mubr.msk.f32.mxu0 %vm9270_vm0, %v9271_v7 }
  0x9a   : > { %7745 = vmatmul.mubr.msk.f32.gmra.mrb[16].mxu0 %vm491_vm1, %v9406_v25 }
  0x9b   : > { %7747 = vmatprep.mubr.msk.f32.mxu0 %vm9270_vm0, %v9271_v7 }
  0x9e   : > { %7748 = vmatmul.mubr.msk.f32.gmra.mrb[18].mxu0 %vm491_vm1, %v9411_v28 }
  0x9f   : > { %7750 = vmatprep.mubr.msk.f32.mxu0 %vm9270_vm0, %v9271_v7 }
  0xa2   : > { %7751 = vmatmul.mubr.msk.f32.gmra.mrb[20].mxu0 %vm491_vm1, %v9416_v31 }
  0xa3   : > { %7753 = vmatprep.mubr.msk.f32.mxu0 %vm9270_vm0, %v9271_v7 }
  0xa6   : > { %7754 = vmatmul.mubr.msk.f32.gmra.mrb[22].mxu0 %vm491_vm1, %v9421_v34 }
  0xa7   : > { %7756 = vmatprep.mubr.msk.f32.mxu0 %vm9270_vm0, %v9271_v7 }
  0xaa   : > { %7757 = vmatmul.mubr.msk.f32.gmra.mrb[24].mxu0 %vm491_vm1, %v9426_v37 }
  0xab   : > { %7759 = vmatprep.mubr.msk.f32.mxu0 %vm9270_vm0, %v9271_v7 }
  0xae   : > { %7760 = vmatmul.mubr.msk.f32.gmra.mrb[26].mxu0 %vm491_vm1, %v9431_v40 }
  0xaf   : > { %7762 = vmatprep.mubr.msk.f32.mxu0 %vm9270_vm0, %v9271_v7 }
  0xb2   : > { %7763 = vmatmul.mubr.msk.f32.gmra.mrb[28].mxu0 %vm491_vm1, %v9436_v43 }
  0xb3   : > { %7765 = vmatprep.mubr.msk.f32.mxu0 %vm9270_vm0, %v9271_v7 }
  0xb6   : > { %7766 = vmatmul.mubr.msk.f32.gmra.mrb[30].mxu0 %vm491_vm1, %v9441_v46 }
  0xb7   : > { %7768 = vmatprep.mubr.msk.f32.mxu0 %vm9270_vm0, %v9271_v7 }
  0xba   : > { %7769 = vmatmul.mubr.msk.f32.gmra.mrb[32].mxu0 %vm491_vm1, %v9446_v49 }
  0xbb   : > { %7771 = vmatprep.mubr.msk.f32.mxu0 %vm9270_vm0, %v9271_v7 }
  0xbe   : > { %7772 = vmatmul.mubr.msk.f32.gmra.mrb[34].mxu0 %vm491_vm1, %v9451_v52 }
  0xbf   : > { %7774 = vmatprep.mubr.msk.f32.mxu0 %vm9270_vm0, %v9271_v7 }
  0xc2   : > { %7775 = vmatmul.mubr.msk.f32.gmra.mrb[36].mxu0 %vm491_vm1, %v9456_v55 }
  0xc3   : > { %7777 = vmatprep.mubr.msk.f32.mxu0 %vm9270_vm0, %v9271_v7 }
  0xc6   : > { %7778 = vmatmul.mubr.msk.f32.gmra.mrb[38].mxu0 %vm491_vm1, %v9461_v58 }
  0xc7   : > { %7780 = vmatprep.mubr.msk.f32.mxu0 %vm9270_vm0, %v9271_v7 }
  0xca   : > { %7781 = vmatmul.mubr.msk.f32.gmra.mrb[40].mxu0 %vm491_vm1, %v9466_v61 }
  0xcb   : > { %7783 = vmatprep.mubr.msk.f32.mxu0 %vm9270_vm0, %v9271_v7 }
  0xce   : > { %7784 = vmatmul.mubr.msk.f32.gmra.mrb[42].mxu0 %vm491_vm1, %v9471_v0 }
  0xcf   : > { %7786 = vmatprep.mubr.msk.f32.mxu0 %vm9270_vm0, %v9271_v7 }
  0xd2   : > { %7787 = vmatmul.mubr.msk.f32.gmra.mrb[44].mxu0 %vm491_vm1, %v9476_v3 }
  0xd3   : > { %7789 = vmatprep.mubr.msk.f32.mxu0 %vm9270_vm0, %v9271_v7 }
  0xd6   : > { %7790 = vmatmul.mubr.msk.f32.gmra.mrb[46].mxu0 %vm491_vm1, %v9481_v8 }
  0xd7   : > { %7792 = vmatprep.mubr.msk.f32.mxu0 %vm9270_vm0, %v9271_v7 }
  0xda   : > { %7793 = vmatmul.mubr.msk.f32.gmra.mrb[48].mxu0 %vm491_vm1, %v9486_v15 }
  0xdb   : > { %7795 = vmatprep.mubr.msk.f32.mxu0 %vm9270_vm0, %v9271_v7 }
  0xde   : > { %7796 = vmatmul.mubr.msk.f32.gmra.mrb[50].mxu0 %vm491_vm1, %v9491_v20 }
  0xdf   : > { %7798 = vmatprep.mubr.msk.f32.mxu0 %vm9270_vm0, %v9271_v7 }
  0xe2   : > { %7799 = vmatmul.mubr.msk.f32.gmra.mrb[52].mxu0 %vm491_vm1, %v9496_v24 }
  0xe3   : > { %7801 = vmatprep.mubr.msk.f32.mxu0 %vm9270_vm0, %v9271_v7 }
  0xe6   : > { %7802 = vmatmul.mubr.msk.f32.gmra.mrb[54].mxu0 %vm491_vm1, %v9501_v29 }
  0xe7   : > { %7804 = vmatprep.mubr.msk.f32.mxu0 %vm9270_vm0, %v9271_v7 }
  0xea   : > { %7805 = vmatmul.mubr.msk.f32.gmra.mrb[56].mxu0 %vm491_vm1, %v9506_v33 }
  0xeb   : > { %7807 = vmatprep.mubr.msk.f32.mxu0 %vm9270_vm0, %v9271_v7 }
  0xee   : > { %7808 = vmatmul.mubr.msk.f32.gmra.mrb[58].mxu0 %vm491_vm1, %v9511_v38 }
  0xef   : > { %7810 = vmatprep.mubr.msk.f32.mxu0 %vm9270_vm0, %v9271_v7 }
  0xf2   : > { %7811 = vmatmul.mubr.msk.f32.gmra.mrb[60].mxu0 %vm491_vm1, %v9516_v42 }
  0xf3   : > { %7813 = vmatprep.mubr.msk.f32.mxu0 %vm9270_vm0, %v9271_v7 }
  0xf6   : > { %7814 = vmatmul.mubr.msk.f32.gmra.mrb[62].mxu0 %vm491_vm1, %v9521_v47 }
  0xf7   : > { %7816 = vmatprep.mubr.msk.f32.mxu0 %vm9270_vm0, %v9271_v7 }
  0xfa   : > { %7817 = vmatmul.mubr.msk.f32.gmra.mrb[64].mxu0 %vm491_vm1, %v9526_v51 }
  0xfb   : > { %7819 = vmatprep.mubr.msk.f32.mxu0 %vm9270_vm0, %v9271_v7 }
  0xfe   : > { %7820 = vmatmul.mubr.msk.f32.gmra.mrb[66].mxu0 %vm491_vm1, %v9531_v56 }
  0xff   : > { %7822 = vmatprep.mubr.msk.f32.mxu0 %vm9270_vm0, %v9271_v7 }
 0x102   : > { %7823 = vmatmul.mubr.msk.f32.gmra.mrb[68].mxu0 %vm491_vm1, %v9536_v60 }
 0x103   : > { %7825 = vmatprep.mubr.msk.f32.mxu0 %vm9270_vm0, %v9271_v7 }
 0x106   : > { %7826 = vmatmul.mubr.msk.f32.gmra.mrb[70].mxu0 %vm491_vm1, %v9541_v1 }
 0x107   : > { %7828 = vmatprep.mubr.msk.f32.mxu0 %vm9270_vm0, %v9271_v7 }
 0x10a   : > { %7829 = vmatmul.mubr.msk.f32.gmra.mrb[72].mxu0 %vm491_vm1, %v9546_v6 }
 0x10b   : > { %7831 = vmatprep.mubr.msk.f32.mxu0 %vm9270_vm0, %v9271_v7 }
 0x10e   : > { %7832 = vmatmul.mubr.msk.f32.gmra.mrb[74].mxu0 %vm491_vm1, %v9551_v17 }
 0x10f   : > { %7834 = vmatprep.mubr.msk.f32.mxu0 %vm9270_vm0, %v9271_v7 }
 0x112   : > { %7835 = vmatmul.mubr.msk.f32.gmra.mrb[76].mxu0 %vm491_vm1, %v9556_v23 }
 0x113   : > { %7837 = vmatprep.mubr.msk.f32.mxu0 %vm9270_vm0, %v9271_v7 }
 0x116   : > { %7838 = vmatmul.mubr.msk.f32.gmra.mrb[78].mxu0 %vm491_vm1, %v9561_v30 }
 0x117   : > { %7840 = vmatprep.mubr.msk.f32.mxu0 %vm9270_vm0, %v9271_v7 }
 0x11a   : > { %7841 = vmatmul.mubr.msk.f32.gmra.mrb[80].mxu0 %vm491_vm1, %v9566_v36 }
 0x11b   : > { %7843 = vmatprep.mubr.msk.f32.mxu0 %vm9270_vm0, %v9271_v7 }
 0x11e   : > { %7844 = vmatmul.mubr.msk.f32.gmra.mrb[82].mxu0 %vm491_vm1, %v9571_v44 }
 0x11f   : > { %7854 = vmatprep.mubr.msk.f32.mxu0 %vm9270_vm0, %v9271_v7 }
 0x122   : > { %7855 = vmatmul.mubr.msk.f32.vlgmr.msra.gmra.mrb[2].mxu0 %vm491_vm1, %v3549_v57 }
 0x123   : > { %7857 = vmatprep.mubr.msk.f32.mxu0 %vm9270_vm0, %v9271_v7  ;;  %8420 = vmatpush3.bf16.msra.mxu0 %v8419_v26 }
 0x124   : > { %8421 = vmatprep.subr.bf16.mxu0 %v9269_v4 }
 0x126   : > { %7858 = vmatmul.mubr.msk.f32.gmra.mrb[4].mxu0 %vm491_vm1, %v3550_v59 }
 0x127   : > { %7860 = vmatprep.mubr.msk.f32.mxu0 %vm9270_vm0, %v9271_v7  ;;  %8423 = vmatpush3.bf16.msra.mxu0 %v8422_v39  ;;  %v9884_v39 = vld [vmem:[%s9369_s12 + $0x74] sm:$0xff] }
 0x128   : > { %8424 = vmatprep.subr.bf16.mxu0 %v9269_v4 }
 0x12a   : > { %7861 = vmatmul.mubr.msk.f32.gmra.mrb[6].mxu0 %vm491_vm1, %v9785_v62 }
 0x12b   : > { %7863 = vmatprep.mubr.msk.f32.mxu0 %vm9270_vm0, %v9271_v7 }
 0x12e   : > { %7864 = vmatmul.mubr.msk.f32.gmra.mrb[8].mxu0 %vm491_vm1, %v9792_v63 }
 0x12f   : > { %7866 = vmatprep.mubr.msk.f32.mxu0 %vm9270_vm0, %v9271_v7 }
 0x132   : > { %7867 = vmatmul.mubr.msk.f32.gmra.mrb[10].mxu0 %vm491_vm1, %v9799_v2 }
 0x133   : > { %7869 = vmatprep.mubr.msk.f32.mxu0 %vm9270_vm0, %v9271_v7 }
 0x136   : > { %7870 = vmatmul.mubr.msk.f32.gmra.mrb[12].mxu0 %vm491_vm1, %v9806_v5 }
 0x137   : > { %7872 = vmatprep.mubr.msk.f32.mxu0 %vm9270_vm0, %v9271_v7 }
 0x13a   : > { %7873 = vmatmul.mubr.msk.f32.gmra.mrb[14].mxu0 %vm491_vm1, %v9813_v13 }
 0x13b   : > { %7875 = vmatprep.mubr.msk.f32.mxu0 %vm9270_vm0, %v9271_v7 }
 0x13e   : > { %7876 = vmatmul.mubr.msk.f32.gmra.mrb[16].mxu0 %vm491_vm1, %v9820_v14 }
 0x13f   : > { %7878 = vmatprep.mubr.msk.f32.mxu0 %vm9270_vm0, %v9271_v7 }
 0x142   : > { %7879 = vmatmul.mubr.msk.f32.gmra.mrb[18].mxu0 %vm491_vm1, %v9833_v27 }
 0x143   : > { %7881 = vmatprep.mubr.msk.f32.mxu0 %vm9270_vm0, %v9271_v7 }
 0x146   : > { %7882 = vmatmul.mubr.msk.f32.gmra.mrb[20].mxu0 %vm491_vm1, %v9847_v41 }
 0x147   : > { %7884 = vmatprep.mubr.msk.f32.mxu0 %vm9270_vm0, %v9271_v7 }
 0x149   : > { %v655_v54 = vpop.f32.mrb[0].mxu0 }
 0x14a   : > { %v656_v57 = vadd.f32 %v655_v54, %v585_v45  ;;  %7885 = vmatmul.mubr.msk.f32.gmra.mrb[22].mxu0 %vm491_vm1, %v9858_v48  ;;  %v7054_v59 = vpop.f32.mrb[1].mxu0  ;;  %v8380_v45 = vpack.c.bf16 %v749_v35, %v748_v32  ;;  %v9900_v54 = vld [vmem:[%s9369_s12 + $0x7c] sm:$0xff] }
 0x14b   : > { %7887 = vmatprep.mubr.msk.f32.mxu0 %vm9270_vm0, %v9271_v7  ;;  %v6184_v59 = vld [vmem:[%s12269_s8 + $0x30] sm:$0xff] }
 0x14c   : > { %v659_v26 = vmax.f32 %v656_v57, 0.0  ;;  %v8383_v57 = vpack.c.bf16 %v6183_v53, %v6182_v50  ;;  %v1452_v50 = vld [vmem:[%s9369_s12 + $0x59] sm:$0xff] }
 0x14e   : > { %7888 = vmatmul.mubr.msk.f32.gmra.mrb[24].mxu0 %vm491_vm1, %v9871_v18  ;;  %7058 = vmatmul.mubr.msk.f32.vlgmr.msra.gmra.mrb[0].mxu1 %vm662_vm4, %v659_v26  ;;  %v9916_v26 = vld [vmem:[%s9369_s12 + $0x84] sm:$0xff] }
 0x14f   : > { %8378 = vmatpush3.bf16.msra.mxu1 %v8377_v21  ;;  %7890 = vmatprep.mubr.msk.f32.mxu0 %vm9270_vm0, %v9271_v7  ;;  %v6185_v21 = vld [vmem:[%s12269_s8 + $0x38] sm:$0xff] }
 0x150   : > { %8379 = vmatprep.subr.bf16.mxu1 %v9269_v4  ;;  %7068 = vmatprep.mubr.msk.f32.mxu1 %vm9270_vm0, %v9271_v7  ;;  %v8386_v32 = vpack.c.bf16 %v6185_v21, %v6184_v59 }
 0x152   : > { %7891 = vmatmul.mubr.msk.f32.gmra.mrb[26].mxu0 %vm491_vm1, %v9884_v39 }
 0x153   : > { %8381 = vmatpush3.bf16.msra.mxu1 %v8380_v45  ;;  %7893 = vmatprep.mubr.msk.f32.mxu0 %vm9270_vm0, %v9271_v7 }
 0x154   : > { %8382 = vmatprep.subr.bf16.mxu1 %v9269_v4 }
 0x156   : > { %7069 = vmatmul.mubr.msk.f32.vlgmr.msra.gmra.mrb[2].mxu1 %vm491_vm1, %v9373_v9  ;;  %7894 = vmatmul.mubr.msk.f32.gmra.mrb[28].mxu0 %vm491_vm1, %v9900_v54  ;;  %v9930_v9 = vld [vmem:[%s9369_s12 + $0x8c] sm:$0xff] }
 0x157   : > { %8384 = vmatpush3.bf16.msra.mxu1 %v8383_v57  ;;  %7071 = vmatprep.mubr.msk.f32.mxu1 %vm9270_vm0, %v9271_v7  ;;  %v1453_v57 = vld [vmem:[%s9369_s12 + $0x61] sm:$0xff] }
 0x158   : > { %7896 = vmatprep.mubr.msk.f32.mxu0 %vm9270_vm0, %v9271_v7  ;;  %8385 = vmatprep.subr.bf16.mxu1 %v9269_v4 }
 0x15a   : > { %7072 = vmatmul.mubr.msk.f32.gmra.mrb[4].mxu1 %vm491_vm1, %v9376_v10  ;;  %7897 = vmatmul.mubr.msk.f32.gmra.mrb[30].mxu0 %vm491_vm1, %v9916_v26  ;;  %v9942_v10 = vld [vmem:[%s9369_s12 + $0x94] sm:$0xff] }
 0x15b   : > { %7074 = vmatprep.mubr.msk.f32.mxu1 %vm9270_vm0, %v9271_v7  ;;  %7899 = vmatprep.mubr.msk.f32.mxu0 %vm9270_vm0, %v9271_v7 }
 0x15c   : > { %8387 = vmatpush3.bf16.msra.mxu1 %v8386_v32  ;;  %v1454_v32 = vld [vmem:[%s9369_s12 + $0x69] sm:$0xff] }
 0x15d   : > { %8388 = vmatprep.subr.bf16.mxu1 %v9269_v4 }
 0x15e   : > { %7075 = vmatmul.mubr.msk.f32.gmra.mrb[6].mxu1 %vm491_vm1, %v9379_v11  ;;  %7900 = vmatmul.mubr.msk.f32.gmra.mrb[32].mxu0 %vm491_vm1, %v9930_v9  ;;  %v9953_v11 = vld [vmem:[%s9369_s12 + $0x9c] sm:$0xff] }
 0x15f   : > { %7077 = vmatprep.mubr.msk.f32.mxu1 %vm9270_vm0, %v9271_v7  ;;  %7902 = vmatprep.mubr.msk.f32.mxu0 %vm9270_vm0, %v9271_v7 }
 0x162   : > { %7078 = vmatmul.mubr.msk.f32.gmra.mrb[8].mxu1 %vm491_vm1, %v9382_v12  ;;  %7903 = vmatmul.mubr.msk.f32.gmra.mrb[34].mxu0 %vm491_vm1, %v9942_v10  ;;  %v9964_v12 = vld [vmem:[%s9369_s12 + $0xa4] sm:$0xff] }
 0x163   : > { %7080 = vmatprep.mubr.msk.f32.mxu1 %vm9270_vm0, %v9271_v7  ;;  %7905 = vmatprep.mubr.msk.f32.mxu0 %vm9270_vm0, %v9271_v7 }
 0x166   : > { %7081 = vmatmul.mubr.msk.f32.gmra.mrb[10].mxu1 %vm491_vm1, %v9391_v16  ;;  %7906 = vmatmul.mubr.msk.f32.gmra.mrb[36].mxu0 %vm491_vm1, %v9953_v11  ;;  %v9975_v16 = vld [vmem:[%s9369_s12 + $0xac] sm:$0xff] }
 0x167   : > { %7083 = vmatprep.mubr.msk.f32.mxu1 %vm9270_vm0, %v9271_v7  ;;  %7908 = vmatprep.mubr.msk.f32.mxu0 %vm9270_vm0, %v9271_v7 }
 0x16a   : > { %7084 = vmatmul.mubr.msk.f32.gmra.mrb[12].mxu1 %vm491_vm1, %v9396_v19  ;;  %7909 = vmatmul.mubr.msk.f32.gmra.mrb[38].mxu0 %vm491_vm1, %v9964_v12  ;;  %v9986_v19 = vld [vmem:[%s9369_s12 + $0xb4] sm:$0xff] }
 0x16b   : > { %7086 = vmatprep.mubr.msk.f32.mxu1 %vm9270_vm0, %v9271_v7  ;;  %7911 = vmatprep.mubr.msk.f32.mxu0 %vm9270_vm0, %v9271_v7 }
 0x16e   : > { %7087 = vmatmul.mubr.msk.f32.gmra.mrb[14].mxu1 %vm491_vm1, %v9401_v22  ;;  %7912 = vmatmul.mubr.msk.f32.gmra.mrb[40].mxu0 %vm491_vm1, %v9975_v16  ;;  %v9997_v22 = vld [vmem:[%s9369_s12 + $0xbc] sm:$0xff] }
 0x16f   : > { %7089 = vmatprep.mubr.msk.f32.mxu1 %vm9270_vm0, %v9271_v7  ;;  %7914 = vmatprep.mubr.msk.f32.mxu0 %vm9270_vm0, %v9271_v7 }
 0x172   : > { %7090 = vmatmul.mubr.msk.f32.gmra.mrb[16].mxu1 %vm491_vm1, %v9406_v25  ;;  %7915 = vmatmul.mubr.msk.f32.gmra.mrb[42].mxu0 %vm491_vm1, %v9986_v19  ;;  %v10008_v25 = vld [vmem:[%s9369_s12 + $0xc4] sm:$0xff] }
 0x173   : > { %7092 = vmatprep.mubr.msk.f32.mxu1 %vm9270_vm0, %v9271_v7  ;;  %7917 = vmatprep.mubr.msk.f32.mxu0 %vm9270_vm0, %v9271_v7 }
 0x176   : > { %7093 = vmatmul.mubr.msk.f32.gmra.mrb[18].mxu1 %vm491_vm1, %v9411_v28  ;;  %7918 = vmatmul.mubr.msk.f32.gmra.mrb[44].mxu0 %vm491_vm1, %v9997_v22  ;;  %v10019_v28 = vld [vmem:[%s9369_s12 + $0xcc] sm:$0xff] }
 0x177   : > { %7095 = vmatprep.mubr.msk.f32.mxu1 %vm9270_vm0, %v9271_v7  ;;  %7920 = vmatprep.mubr.msk.f32.mxu0 %vm9270_vm0, %v9271_v7 }
 0x17a   : > { %7096 = vmatmul.mubr.msk.f32.gmra.mrb[20].mxu1 %vm491_vm1, %v9416_v31  ;;  %7921 = vmatmul.mubr.msk.f32.gmra.mrb[46].mxu0 %vm491_vm1, %v10008_v25  ;;  %v10030_v31 = vld [vmem:[%s9369_s12 + $0xd4] sm:$0xff] }
 0x17b   : > { %7098 = vmatprep.mubr.msk.f32.mxu1 %vm9270_vm0, %v9271_v7  ;;  %7923 = vmatprep.mubr.msk.f32.mxu0 %vm9270_vm0, %v9271_v7 }
 0x17e   : > { %7099 = vmatmul.mubr.msk.f32.gmra.mrb[22].mxu1 %vm491_vm1, %v9421_v34  ;;  %7924 = vmatmul.mubr.msk.f32.gmra.mrb[48].mxu0 %vm491_vm1, %v10019_v28  ;;  %v10041_v34 = vld [vmem:[%s9369_s12 + $0xdc] sm:$0xff] }
 0x17f   : > { %7101 = vmatprep.mubr.msk.f32.mxu1 %vm9270_vm0, %v9271_v7  ;;  %7926 = vmatprep.mubr.msk.f32.mxu0 %vm9270_vm0, %v9271_v7 }
 0x182   : > { %7102 = vmatmul.mubr.msk.f32.gmra.mrb[24].mxu1 %vm491_vm1, %v9426_v37  ;;  %7927 = vmatmul.mubr.msk.f32.gmra.mrb[50].mxu0 %vm491_vm1, %v10030_v31  ;;  %v10052_v37 = vld [vmem:[%s9369_s12 + $0xe4] sm:$0xff] }
 0x183   : > { %7104 = vmatprep.mubr.msk.f32.mxu1 %vm9270_vm0, %v9271_v7  ;;  %7929 = vmatprep.mubr.msk.f32.mxu0 %vm9270_vm0, %v9271_v7 }
 0x186   : > { %7105 = vmatmul.mubr.msk.f32.gmra.mrb[26].mxu1 %vm491_vm1, %v9431_v40  ;;  %7930 = vmatmul.mubr.msk.f32.gmra.mrb[52].mxu0 %vm491_vm1, %v10041_v34  ;;  %v10063_v40 = vld [vmem:[%s9369_s12 + $0xec] sm:$0xff] }
 0x187   : > { %7107 = vmatprep.mubr.msk.f32.mxu1 %vm9270_vm0, %v9271_v7  ;;  %7932 = vmatprep.mubr.msk.f32.mxu0 %vm9270_vm0, %v9271_v7 }
 0x18a   : > { %7108 = vmatmul.mubr.msk.f32.gmra.mrb[28].mxu1 %vm491_vm1, %v9436_v43  ;;  %7933 = vmatmul.mubr.msk.f32.gmra.mrb[54].mxu0 %vm491_vm1, %v10052_v37  ;;  %v10074_v43 = vld [vmem:[%s9369_s12 + $0xf4] sm:$0xff] }
 0x18b   : > { %7110 = vmatprep.mubr.msk.f32.mxu1 %vm9270_vm0, %v9271_v7  ;;  %7935 = vmatprep.mubr.msk.f32.mxu0 %vm9270_vm0, %v9271_v7 }
 0x18e   : > { %7111 = vmatmul.mubr.msk.f32.gmra.mrb[30].mxu1 %vm491_vm1, %v9441_v46  ;;  %7936 = vmatmul.mubr.msk.f32.gmra.mrb[56].mxu0 %vm491_vm1, %v10063_v40  ;;  %v10085_v46 = vld [vmem:[%s9369_s12 + $0xfc] sm:$0xff] }
 0x18f   : > { %7113 = vmatprep.mubr.msk.f32.mxu1 %vm9270_vm0, %v9271_v7  ;;  %7938 = vmatprep.mubr.msk.f32.mxu0 %vm9270_vm0, %v9271_v7 }
 0x192   : > { %7114 = vmatmul.mubr.msk.f32.gmra.mrb[32].mxu1 %vm491_vm1, %v9446_v49  ;;  %7939 = vmatmul.mubr.msk.f32.gmra.mrb[58].mxu0 %vm491_vm1, %v10074_v43  ;;  %v10096_v49 = vld [vmem:[%s9369_s12 + $0x104] sm:$0xff] }
 0x193   : > { %7116 = vmatprep.mubr.msk.f32.mxu1 %vm9270_vm0, %v9271_v7  ;;  %7941 = vmatprep.mubr.msk.f32.mxu0 %vm9270_vm0, %v9271_v7 }
 0x196   : > { %7117 = vmatmul.mubr.msk.f32.gmra.mrb[34].mxu1 %vm491_vm1, %v9451_v52  ;;  %7942 = vmatmul.mubr.msk.f32.gmra.mrb[60].mxu0 %vm491_vm1, %v10085_v46  ;;  %v10107_v52 = vld [vmem:[%s9369_s12 + $0x10c] sm:$0xff] }
 0x197   : > { %7119 = vmatprep.mubr.msk.f32.mxu1 %vm9270_vm0, %v9271_v7  ;;  %7944 = vmatprep.mubr.msk.f32.mxu0 %vm9270_vm0, %v9271_v7 }
 0x19a   : > { %7120 = vmatmul.mubr.msk.f32.gmra.mrb[36].mxu1 %vm491_vm1, %v9456_v55  ;;  %7945 = vmatmul.mubr.msk.f32.gmra.mrb[62].mxu0 %vm491_vm1, %v10096_v49  ;;  %v10118_v55 = vld [vmem:[%s9369_s12 + $0x114] sm:$0xff] }
 0x19b   : > { %7122 = vmatprep.mubr.msk.f32.mxu1 %vm9270_vm0, %v9271_v7  ;;  %7947 = vmatprep.mubr.msk.f32.mxu0 %vm9270_vm0, %v9271_v7 }
 0x19e   : > { %7123 = vmatmul.mubr.msk.f32.gmra.mrb[38].mxu1 %vm491_vm1, %v9461_v58  ;;  %7948 = vmatmul.mubr.msk.f32.gmra.mrb[64].mxu0 %vm491_vm1, %v10107_v52  ;;  %v10129_v58 = vld [vmem:[%s9369_s12 + $0x11c] sm:$0xff] }
 0x19f   : > { %7125 = vmatprep.mubr.msk.f32.mxu1 %vm9270_vm0, %v9271_v7  ;;  %7950 = vmatprep.mubr.msk.f32.mxu0 %vm9270_vm0, %v9271_v7 }
 0x1a2   : > { %7126 = vmatmul.mubr.msk.f32.gmra.mrb[40].mxu1 %vm491_vm1, %v9466_v61  ;;  %7951 = vmatmul.mubr.msk.f32.gmra.mrb[66].mxu0 %vm491_vm1, %v10118_v55  ;;  %v10140_v61 = vld [vmem:[%s9369_s12 + $0x124] sm:$0xff] }
 0x1a3   : > { %7128 = vmatprep.mubr.msk.f32.mxu1 %vm9270_vm0, %v9271_v7  ;;  %7953 = vmatprep.mubr.msk.f32.mxu0 %vm9270_vm0, %v9271_v7 }
 0x1a6   : > { %7129 = vmatmul.mubr.msk.f32.gmra.mrb[42].mxu1 %vm491_vm1, %v9471_v0  ;;  %7954 = vmatmul.mubr.msk.f32.gmra.mrb[68].mxu0 %vm491_vm1, %v10129_v58  ;;  %v10151_v0 = vld [vmem:[%s9369_s12 + $0x12c] sm:$0xff] }
 0x1a7   : > { %7131 = vmatprep.mubr.msk.f32.mxu1 %vm9270_vm0, %v9271_v7  ;;  %7956 = vmatprep.mubr.msk.f32.mxu0 %vm9270_vm0, %v9271_v7 }
 0x1aa   : > { %7132 = vmatmul.mubr.msk.f32.gmra.mrb[44].mxu1 %vm491_vm1, %v9476_v3  ;;  %7957 = vmatmul.mubr.msk.f32.gmra.mrb[70].mxu0 %vm491_vm1, %v10140_v61  ;;  %v10162_v3 = vld [vmem:[%s9369_s12 + $0x134] sm:$0xff] }
 0x1ab   : > { %7134 = vmatprep.mubr.msk.f32.mxu1 %vm9270_vm0, %v9271_v7  ;;  %7959 = vmatprep.mubr.msk.f32.mxu0 %vm9270_vm0, %v9271_v7 }
 0x1ae   : > { %7135 = vmatmul.mubr.msk.f32.gmra.mrb[46].mxu1 %vm491_vm1, %v9481_v8  ;;  %7960 = vmatmul.mubr.msk.f32.gmra.mrb[72].mxu0 %vm491_vm1, %v10151_v0  ;;  %v10173_v8 = vld [vmem:[%s9369_s12 + $0x13c] sm:$0xff] }
 0x1af   : > { %7137 = vmatprep.mubr.msk.f32.mxu1 %vm9270_vm0, %v9271_v7  ;;  %7962 = vmatprep.mubr.msk.f32.mxu0 %vm9270_vm0, %v9271_v7 }
 0x1b2   : > { %7138 = vmatmul.mubr.msk.f32.gmra.mrb[48].mxu1 %vm491_vm1, %v9486_v15  ;;  %7963 = vmatmul.mubr.msk.f32.gmra.mrb[74].mxu0 %vm491_vm1, %v10162_v3  ;;  %v10184_v15 = vld [vmem:[%s9369_s12 + $0x144] sm:$0xff] }
 0x1b3   : > { %7140 = vmatprep.mubr.msk.f32.mxu1 %vm9270_vm0, %v9271_v7  ;;  %7965 = vmatprep.mubr.msk.f32.mxu0 %vm9270_vm0, %v9271_v7 }
 0x1b6   : > { %7141 = vmatmul.mubr.msk.f32.gmra.mrb[50].mxu1 %vm491_vm1, %v9491_v20  ;;  %7966 = vmatmul.mubr.msk.f32.gmra.mrb[76].mxu0 %vm491_vm1, %v10173_v8  ;;  %v10195_v20 = vld [vmem:[%s9369_s12 + $0x14c] sm:$0xff] }
 0x1b7   : > { %7143 = vmatprep.mubr.msk.f32.mxu1 %vm9270_vm0, %v9271_v7  ;;  %7968 = vmatprep.mubr.msk.f32.mxu0 %vm9270_vm0, %v9271_v7 }
 0x1ba   : > { %7144 = vmatmul.mubr.msk.f32.gmra.mrb[52].mxu1 %vm491_vm1, %v9496_v24  ;;  %7969 = vmatmul.mubr.msk.f32.gmra.mrb[78].mxu0 %vm491_vm1, %v10184_v15  ;;  %v3589_v24 = vld [vmem:[%s9369_s12 + $0x154] sm:$0xf] }
 0x1bb   : > { %7146 = vmatprep.mubr.msk.f32.mxu1 %vm9270_vm0, %v9271_v7  ;;  %7971 = vmatprep.mubr.msk.f32.mxu0 %vm9270_vm0, %v9271_v7 }
 0x1be   : > { %7147 = vmatmul.mubr.msk.f32.gmra.mrb[54].mxu1 %vm491_vm1, %v9501_v29  ;;  %7972 = vmatmul.mubr.msk.f32.gmra.mrb[80].mxu0 %vm491_vm1, %v10195_v20  ;;  %v9272_v29 = vmov 0  }
 0x1bf   : > { %7149 = vmatprep.mubr.msk.f32.mxu1 %vm9270_vm0, %v9271_v7  ;;  %7974 = vmatprep.mubr.msk.f32.mxu0 %vm9270_vm0, %v9271_v7 }
 0x1c0   : > { %9065 = vset.pattern.permute.xlu0 %v9272_v29  ;;  %9066 = vset.pattern.permute.xlu1 %v9272_v29 }
 0x1c2   : > { %7150 = vmatmul.mubr.msk.f32.gmra.mrb[56].mxu1 %vm491_vm1, %v9506_v33  ;;  %7975 = vmatmul.mubr.msk.f32.gmra.mrb[82].mxu0 %vm491_vm1, %v3589_v24  ;;  %v6493_v33 = vld [vmem:[%s12269_s8 + $0xe0] sm:$0xff] }
 0x1c3   : > { %7152 = vmatprep.mubr.msk.f32.mxu1 %vm9270_vm0, %v9271_v7  ;;  %7985 = vmatprep.mubr.msk.f32.mxu0 %vm9270_vm0, %v9271_v7 }
 0x1c6   : > { %7153 = vmatmul.mubr.msk.f32.gmra.mrb[58].mxu1 %vm491_vm1, %v9511_v38  ;;  %7986 = vmatmul.mubr.msk.f32.vlgmr.msra.gmra.mrb[2].mxu0 %vm491_vm1, %v9785_v62  ;;  %v6494_v38 = vld [vmem:[%s12269_s8 + $0xe8] sm:$0xff]  ;;  %v1443_v62 = vld [vmem:[%s9369_s12 + $0x11] sm:$0xff] }
 0x1c7   : > { %7155 = vmatprep.mubr.msk.f32.mxu1 %vm9270_vm0, %v9271_v7  ;;  %7988 = vmatprep.mubr.msk.f32.mxu0 %vm9270_vm0, %v9271_v7 }
 0x1ca   : > { %7156 = vmatmul.mubr.msk.f32.gmra.mrb[60].mxu1 %vm491_vm1, %v9516_v42  ;;  %7989 = vmatmul.mubr.msk.f32.gmra.mrb[4].mxu0 %vm491_vm1, %v9792_v63  ;;  %v8425_v42 = vpack.c.bf16 %v6494_v38, %v6493_v33  ;;  %v1444_v63 = vld [vmem:[%s9369_s12 + $0x19] sm:$0xff] }
 0x1cb   : > { %7158 = vmatprep.mubr.msk.f32.mxu1 %vm9270_vm0, %v9271_v7  ;;  %7991 = vmatprep.mubr.msk.f32.mxu0 %vm9270_vm0, %v9271_v7 }
 0x1cc   : > { %8426 = vmatpush3.bf16.msra.mxu0 %v8425_v42 }
 0x1cd   : > { %8427 = vmatprep.subr.bf16.mxu0 %v9269_v4 }
 0x1ce   : > { %7159 = vmatmul.mubr.msk.f32.gmra.mrb[62].mxu1 %vm491_vm1, %v9521_v47  ;;  %7992 = vmatmul.mubr.msk.f32.gmra.mrb[6].mxu0 %vm491_vm1, %v9799_v2  ;;  %v6495_v47 = vld [vmem:[%s12269_s8 + $0xf0] sm:$0xff]  ;;  %v1445_v2 = vld [vmem:[%s9369_s12 + $0x21] sm:$0xff] }
 0x1cf   : > { %7161 = vmatprep.mubr.msk.f32.mxu1 %vm9270_vm0, %v9271_v7  ;;  %7994 = vmatprep.mubr.msk.f32.mxu0 %vm9270_vm0, %v9271_v7 }
 0x1d2   : > { %7162 = vmatmul.mubr.msk.f32.gmra.mrb[64].mxu1 %vm491_vm1, %v9526_v51  ;;  %7995 = vmatmul.mubr.msk.f32.gmra.mrb[8].mxu0 %vm491_vm1, %v9806_v5  ;;  %v6496_v51 = vld [vmem:[%s12269_s8 + $0xf8] sm:$0xff]  ;;  %v1446_v5 = vld [vmem:[%s9369_s12 + $0x29] sm:$0xff] }
 0x1d3   : > { %7164 = vmatprep.mubr.msk.f32.mxu1 %vm9270_vm0, %v9271_v7  ;;  %7997 = vmatprep.mubr.msk.f32.mxu0 %vm9270_vm0, %v9271_v7 }
 0x1d6   : > { %7165 = vmatmul.mubr.msk.f32.gmra.mrb[66].mxu1 %vm491_vm1, %v9531_v56  ;;  %7998 = vmatmul.mubr.msk.f32.gmra.mrb[10].mxu0 %vm491_vm1, %v9813_v13  ;;  %v8428_v56 = vpack.c.bf16 %v6496_v51, %v6495_v47  ;;  %v1447_v13 = vld [vmem:[%s9369_s12 + $0x31] sm:$0xff] }
 0x1d7   : > { %7167 = vmatprep.mubr.msk.f32.mxu1 %vm9270_vm0, %v9271_v7  ;;  %8000 = vmatprep.mubr.msk.f32.mxu0 %vm9270_vm0, %v9271_v7 }
 0x1d8   : > { %8429 = vmatpush3.bf16.msra.mxu0 %v8428_v56 }
 0x1d9   : > { %8430 = vmatprep.subr.bf16.mxu0 %v9269_v4 }
 0x1da   : > { %7168 = vmatmul.mubr.msk.f32.gmra.mrb[68].mxu1 %vm491_vm1, %v9536_v60  ;;  %8001 = vmatmul.mubr.msk.f32.gmra.mrb[12].mxu0 %vm491_vm1, %v9820_v14  ;;  %v1437_v60 = vld [vmem:[%s12269_s8] sm:$0xff] }
 0x1db   : > { %7170 = vmatprep.mubr.msk.f32.mxu1 %vm9270_vm0, %v9271_v7  ;;  %8003 = vmatprep.mubr.msk.f32.mxu0 %vm9270_vm0, %v9271_v7  ;;  %v1448_v14 = vld [vmem:[%s9369_s12 + $0x39] sm:$0xff] }
 0x1de   : > { %7171 = vmatmul.mubr.msk.f32.gmra.mrb[70].mxu1 %vm491_vm1, %v9541_v1  ;;  %8004 = vmatmul.mubr.msk.f32.gmra.mrb[14].mxu0 %vm491_vm1, %v9833_v27  ;;  %v1438_v1 = vld [vmem:[%s12269_s8 + $0x8] sm:$0xff] }
 0x1df   : > { %7173 = vmatprep.mubr.msk.f32.mxu1 %vm9270_vm0, %v9271_v7  ;;  %8006 = vmatprep.mubr.msk.f32.mxu0 %vm9270_vm0, %v9271_v7  ;;  %v1449_v27 = vld [vmem:[%s9369_s12 + $0x41] sm:$0xff] }
 0x1e2   : > { %7174 = vmatmul.mubr.msk.f32.gmra.mrb[72].mxu1 %vm491_vm1, %v9546_v6  ;;  %8007 = vmatmul.mubr.msk.f32.gmra.mrb[16].mxu0 %vm491_vm1, %v9847_v41  ;;  %v1441_v6 = vld [vmem:[%s9369_s12 + $0x1] sm:$0xff]  ;;  %v1450_v41 = vld [vmem:[%s9369_s12 + $0x49] sm:$0xff] }
 0x1e3   : > { %7176 = vmatprep.mubr.msk.f32.mxu1 %vm9270_vm0, %v9271_v7  ;;  %8009 = vmatprep.mubr.msk.f32.mxu0 %vm9270_vm0, %v9271_v7 }
 0x1e6   : > { %7177 = vmatmul.mubr.msk.f32.gmra.mrb[74].mxu1 %vm491_vm1, %v9551_v17  ;;  %8010 = vmatmul.mubr.msk.f32.gmra.mrb[18].mxu0 %vm491_vm1, %v9858_v48  ;;  %v8389_v17 = vpack.c.bf16 %v1438_v1, %v1437_v60  ;;  %v661_v48 = vld [vmem:[%s12266_s5] sm:$0x1] }
 0x1e7   : > { %7179 = vmatprep.mubr.msk.f32.mxu1 %vm9270_vm0, %v9271_v7  ;;  %8012 = vmatprep.mubr.msk.f32.mxu0 %vm9270_vm0, %v9271_v7 }
 0x1ea   : > { %7180 = vmatmul.mubr.msk.f32.gmra.mrb[76].mxu1 %vm491_vm1, %v9556_v23  ;;  %8013 = vmatmul.mubr.msk.f32.gmra.mrb[20].mxu0 %vm491_vm1, %v9871_v18  ;;  %v1439_v23 = vld [vmem:[%s12269_s8 + $0x10] sm:$0xff] }
 0x1eb   : > { %7182 = vmatprep.mubr.msk.f32.mxu1 %vm9270_vm0, %v9271_v7  ;;  %8015 = vmatprep.mubr.msk.f32.mxu0 %vm9270_vm0, %v9271_v7  ;;  %v1451_v18 = vld [vmem:[%s9369_s12 + $0x51] sm:$0xff] }
 0x1ee   : > { %7183 = vmatmul.mubr.msk.f32.gmra.mrb[78].mxu1 %vm491_vm1, %v9561_v30  ;;  %8016 = vmatmul.mubr.msk.f32.gmra.mrb[22].mxu0 %vm491_vm1, %v9884_v39  ;;  %v1440_v30 = vld [vmem:[%s12269_s8 + $0x18] sm:$0xff] }
 0x1ef   : > { %7185 = vmatprep.mubr.msk.f32.mxu1 %vm9270_vm0, %v9271_v7  ;;  %8018 = vmatprep.mubr.msk.f32.mxu0 %vm9270_vm0, %v9271_v7 }
 0x1f2   : > { %7186 = vmatmul.mubr.msk.f32.gmra.mrb[80].mxu1 %vm491_vm1, %v9566_v36  ;;  %8019 = vmatmul.mubr.msk.f32.gmra.mrb[24].mxu0 %vm491_vm1, %v9900_v54  ;;  %v1442_v36 = vld [vmem:[%s9369_s12 + $0x9] sm:$0xff]  ;;  %v10440_v54 = vld [vmem:[#allocation2] ss:$0 sm:$0xff] }
 0x1f3   : > { %7188 = vmatprep.mubr.msk.f32.mxu1 %vm9270_vm0, %v9271_v7  ;;  %8021 = vmatprep.mubr.msk.f32.mxu0 %vm9270_vm0, %v9271_v7 }
 0x1f6   : > { %7189 = vmatmul.mubr.msk.f32.gmra.mrb[82].mxu1 %vm491_vm1, %v9571_v44  ;;  %8022 = vmatmul.mubr.msk.f32.gmra.mrb[26].mxu0 %vm491_vm1, %v9916_v26  ;;  %v8392_v44 = vpack.c.bf16 %v1440_v30, %v1439_v23 }
 0x1f7   : > { %7199 = vmatprep.mubr.msk.f32.mxu1 %vm9270_vm0, %v9271_v7  ;;  %8024 = vmatprep.mubr.msk.f32.mxu0 %vm9270_vm0, %v9271_v7 }
 0x1fa   : > { %7200 = vmatmul.mubr.msk.f32.vlgmr.msra.gmra.mrb[84].mxu1 %vm491_vm1, %v1441_v6  ;;  %8025 = vmatmul.mubr.msk.f32.gmra.mrb[28].mxu0 %vm491_vm1, %v9930_v9 }
 0x1fb   : > { %8390 = vmatpush3.bf16.msra.mxu1 %v8389_v17  ;;  %7202 = vmatprep.mubr.msk.f32.mxu1 %vm9270_vm0, %v9271_v7 }
 0x1fc   : > { %8027 = vmatprep.mubr.msk.f32.mxu0 %vm9270_vm0, %v9271_v7  ;;  %8391 = vmatprep.subr.bf16.mxu1 %v9269_v4 }
 0x1fe   : > { %7203 = vmatmul.mubr.msk.f32.gmra.mrb[86].mxu1 %vm491_vm1, %v1442_v36  ;;  %8028 = vmatmul.mubr.msk.f32.gmra.mrb[30].mxu0 %vm491_vm1, %v9942_v10 }
 0x1ff   : > { %7205 = vmatprep.mubr.msk.f32.mxu1 %vm9270_vm0, %v9271_v7  ;;  %8030 = vmatprep.mubr.msk.f32.mxu0 %vm9270_vm0, %v9271_v7 }
 0x200   : > { %8393 = vmatpush3.bf16.msra.mxu1 %v8392_v44 }
 0x201   : > { %8394 = vmatprep.subr.bf16.mxu1 %v9269_v4 }
 0x202   : > { %7206 = vmatmul.mubr.msk.f32.gmra.mrb[88].mxu1 %vm491_vm1, %v1443_v62  ;;  %8031 = vmatmul.mubr.msk.f32.gmra.mrb[32].mxu0 %vm491_vm1, %v9953_v11 }
 0x203   : > { %7208 = vmatprep.mubr.msk.f32.mxu1 %vm9270_vm0, %v9271_v7  ;;  %8033 = vmatprep.mubr.msk.f32.mxu0 %vm9270_vm0, %v9271_v7 }
 0x206   : > { %7209 = vmatmul.mubr.msk.f32.gmra.mrb[90].mxu1 %vm491_vm1, %v1444_v63  ;;  %8034 = vmatmul.mubr.msk.f32.gmra.mrb[34].mxu0 %vm491_vm1, %v9964_v12  ;;  %v1459_v63 = vld [vmem:[%s9369_s12 + $0x91] sm:$0xff] }
 0x207   : > { %7211 = vmatprep.mubr.msk.f32.mxu1 %vm9270_vm0, %v9271_v7  ;;  %8036 = vmatprep.mubr.msk.f32.mxu0 %vm9270_vm0, %v9271_v7 }
 0x20a   : > { %7212 = vmatmul.mubr.msk.f32.gmra.mrb[92].mxu1 %vm491_vm1, %v1445_v2  ;;  %8037 = vmatmul.mubr.msk.f32.gmra.mrb[36].mxu0 %vm491_vm1, %v9975_v16  ;;  %v1455_v16 = vld [vmem:[%s9369_s12 + $0x71] sm:$0xff] }
 0x20b   : > { %7214 = vmatprep.mubr.msk.f32.mxu1 %vm9270_vm0, %v9271_v7  ;;  %8039 = vmatprep.mubr.msk.f32.mxu0 %vm9270_vm0, %v9271_v7 }
 0x20e   : > { %7215 = vmatmul.mubr.msk.f32.gmra.mrb[94].mxu1 %vm491_vm1, %v1446_v5  ;;  %8040 = vmatmul.mubr.msk.f32.gmra.mrb[38].mxu0 %vm491_vm1, %v9986_v19 }
 0x20f   : > { %7217 = vmatprep.mubr.msk.f32.mxu1 %vm9270_vm0, %v9271_v7  ;;  %8042 = vmatprep.mubr.msk.f32.mxu0 %vm9270_vm0, %v9271_v7 }
 0x212   : > { %7218 = vmatmul.mubr.msk.f32.gmra.mrb[96].mxu1 %vm491_vm1, %v1447_v13  ;;  %8043 = vmatmul.mubr.msk.f32.gmra.mrb[40].mxu0 %vm491_vm1, %v9997_v22 }
 0x213   : > { %7220 = vmatprep.mubr.msk.f32.mxu1 %vm9270_vm0, %v9271_v7  ;;  %8045 = vmatprep.mubr.msk.f32.mxu0 %vm9270_vm0, %v9271_v7 }
 0x216   : > { %7221 = vmatmul.mubr.msk.f32.gmra.mrb[98].mxu1 %vm491_vm1, %v1448_v14  ;;  %8046 = vmatmul.mubr.msk.f32.gmra.mrb[42].mxu0 %vm491_vm1, %v10008_v25 }
 0x217   : > { %7223 = vmatprep.mubr.msk.f32.mxu1 %vm9270_vm0, %v9271_v7  ;;  %8048 = vmatprep.mubr.msk.f32.mxu0 %vm9270_vm0, %v9271_v7 }
 0x21a   : > { %7224 = vmatmul.mubr.msk.f32.gmra.mrb[100].mxu1 %vm491_vm1, %v1449_v27  ;;  %8049 = vmatmul.mubr.msk.f32.gmra.mrb[44].mxu0 %vm491_vm1, %v10019_v28 }
 0x21b   : > { %7226 = vmatprep.mubr.msk.f32.mxu1 %vm9270_vm0, %v9271_v7  ;;  %8051 = vmatprep.mubr.msk.f32.mxu0 %vm9270_vm0, %v9271_v7 }
 0x21e   : > { %7227 = vmatmul.mubr.msk.f32.gmra.mrb[102].mxu1 %vm491_vm1, %v1450_v41  ;;  %8052 = vmatmul.mubr.msk.f32.gmra.mrb[46].mxu0 %vm491_vm1, %v10030_v31 }
 0x21f   : > { %7229 = vmatprep.mubr.msk.f32.mxu1 %vm9270_vm0, %v9271_v7  ;;  %8054 = vmatprep.mubr.msk.f32.mxu0 %vm9270_vm0, %v9271_v7 }
 0x221   : > { %v736_v35 = vpop.f32.mrb[0].mxu1 }
 0x222   : > { %v737_v39 = vadd.f32 %v736_v35, %v661_v48  ;;  %7230 = vmatmul.mubr.msk.f32.gmra.mrb[104].mxu1 %vm491_vm1, %v1451_v18  ;;  %8055 = vmatmul.mubr.msk.f32.gmra.mrb[48].mxu0 %vm491_vm1, %v10041_v34  ;;  %v7059_v45 = vpop.f32.mrb[1].mxu1  ;;  %v466_v48 = vld [vmem:[%s10507_s28 + $0x80] sm:$0xff]  ;;  %v467_v35 = vld [vmem:[%s10507_s28 + $0x88] sm:$0xff] }
 0x223   : > { %7232 = vmatprep.mubr.msk.f32.mxu1 %vm9270_vm0, %v9271_v7  ;;  %8057 = vmatprep.mubr.msk.f32.mxu0 %vm9270_vm0, %v9271_v7  ;;  %v1460_v18 = vld [vmem:[%s9369_s12 + $0x99] sm:$0xff] }
 0x224   : > { %v6098_v53 = vmul.f32 -1.442695, %v737_v39  ;;  %v468_v39 = vld [vmem:[%s10507_s28 + $0x90] sm:$0xff] }
 0x226   : > { %9067 = vpow2.f32 %v6098_v53  ;;  %7233 = vmatmul.mubr.msk.f32.gmra.mrb[106].mxu1 %vm491_vm1, %v1452_v50  ;;  %8058 = vmatmul.mubr.msk.f32.gmra.mrb[50].mxu0 %vm491_vm1, %v10052_v37  ;;  %v1456_v37 = vld [vmem:[%s9369_s12 + $0x79] sm:$0xff] }
 0x227   : > { %7235 = vmatprep.mubr.msk.f32.mxu1 %vm9270_vm0, %v9271_v7  ;;  %8060 = vmatprep.mubr.msk.f32.mxu0 %vm9270_vm0, %v9271_v7  ;;  %v469_v53 = vld [vmem:[%s10507_s28 + $0x98] sm:$0xff] }
 0x229   : > { %v946_v59 = vpop.f32.mrb[2].mxu1 }
 0x22a   : > { %v947_v21 = vadd.f32 %v10440_v54, %v946_v59  ;;  %v7070_v26 = vpop.f32.mrb[3].mxu1  ;;  %7236 = vmatmul.mubr.msk.f32.gmra.mrb[108].mxu1 %vm491_vm1, %v1453_v57  ;;  %8061 = vmatmul.mubr.msk.f32.gmra.mrb[52].mxu0 %vm491_vm1, %v10063_v40  ;;  %v470_v57 = vld [vmem:[%s10507_s28 + $0xa0] sm:$0xff] }
 0x22b   : > { %7238 = vmatprep.mubr.msk.f32.mxu1 %vm9270_vm0, %v9271_v7  ;;  %8063 = vmatprep.mubr.msk.f32.mxu0 %vm9270_vm0, %v9271_v7 }
 0x22c   : > { %v6141_v9 = vmul.f32 -1.442695, %v947_v21 }
 0x22d   : > { %v951_v10 = vpop.f32.mrb[4].mxu1 }
 0x22e   : > { %9069 = vpow2.f32 %v6141_v9  ;;  %v952_v11 = vadd.f32 %v10440_v54, %v951_v10  ;;  %v7073_v12 = vpop.f32.mrb[5].mxu1  ;;  %7239 = vmatmul.mubr.msk.f32.gmra.mrb[110].mxu1 %vm491_vm1, %v1454_v32  ;;  %8064 = vmatmul.mubr.msk.f32.gmra.mrb[54].mxu0 %vm491_vm1, %v10074_v43  ;;  %v5606_v43 = vlaneseq  ;;  %v472_v9 = vld [vmem:[%s10507_s28 + $0xb0] sm:$0xff]  ;;  %v473_v10 = vld [vmem:[%s10507_s28 + $0xb8] sm:$0xff] }
 0x22f   : > { %7241 = vmatprep.mubr.msk.f32.mxu1 %vm9270_vm0, %v9271_v7  ;;  %8066 = vmatprep.mubr.msk.f32.mxu0 %vm9270_vm0, %v9271_v7 }
 0x230   : > { %v9068_v19 = vpop.eup %9067  ;;  %v6142_v22 = vmul.f32 -1.442695, %v952_v11  ;;  %v5607_v47 = vshrl.u32 %v5606_v43, 7  ;;  %v474_v11 = vld [vmem:[%s10507_s28 + $0xc0] sm:$0xff] }
 0x231   : > { %v743_v25 = vadd.f32 1.0, %v9068_v19  ;;  %v956_v28 = vpop.f32.mrb[6].mxu1  ;;  %v478_v43 = vld [vmem:[%s10507_s28 + $0xe0] sm:$0xff] }
 0x232   : > { %9071 = vpow2.f32 %v6142_v22  ;;  %v957_v31 = vadd.f32 %v10440_v54, %v956_v28  ;;  %v7076_v34 = vpop.f32.mrb[7].mxu1  ;;  %7242 = vmatmul.mubr.msk.f32.gmra.mrb[112].mxu1 %vm491_vm1, %v1455_v16  ;;  %8067 = vmatmul.mubr.msk.f32.gmra.mrb[56].mxu0 %vm491_vm1, %v10085_v46  ;;  %v1457_v46 = vld [vmem:[%s9369_s12 + $0x81] sm:$0xff]  ;;  %v5608_v23 = vsub.s32 0, %v5607_v47  ;;  %v476_v28 = vld [vmem:[%s10507_s28 + $0xd0] sm:$0xff] }
 0x233   : > { %7244 = vmatprep.mubr.msk.f32.mxu1 %vm9270_vm0, %v9271_v7  ;;  %8069 = vmatprep.mubr.msk.f32.mxu0 %vm9270_vm0, %v9271_v7  ;;  %9073 = vrcp.f32 %v743_v25  ;;  %v475_v25 = vld [vmem:[%s10507_s28 + $0xc8] sm:$0xff]  ;;  %v480_v47 = vld [vmem:[%s10507_s28 + $0xf0] sm:$0xff] }
 0x234   : > { %v6143_v40 = vmul.f32 -1.442695, %v957_v31  ;;  %v477_v31 = vld [vmem:[%s10507_s28 + $0xd8] sm:$0xff]  ;;  %v1461_v34 = vld [vmem:[%s9369_s12 + $0xa1] sm:$0xff] }
 0x235   : > { %v961_v24 = vpop.f32.mrb[8].mxu1 }
 0x236   : > { %9075 = vpow2.f32 %v6143_v40  ;;  %v962_v29 = vadd.f32 %v10440_v54, %v961_v24  ;;  %v7079_v33 = vpop.f32.mrb[9].mxu1  ;;  %7245 = vmatmul.mubr.msk.f32.gmra.mrb[114].mxu1 %vm491_vm1, %v1456_v37  ;;  %8070 = vmatmul.mubr.msk.f32.gmra.mrb[58].mxu0 %vm491_vm1, %v10096_v49  ;;  %v1458_v49 = vld [vmem:[%s9369_s12 + $0x89] sm:$0xff] }
 0x237   : > { %7247 = vmatprep.mubr.msk.f32.mxu1 %vm9270_vm0, %v9271_v7  ;;  %8072 = vmatprep.mubr.msk.f32.mxu0 %vm9270_vm0, %v9271_v7  ;;  %v479_v24 = vld [vmem:[%s10507_s28 + $0xe8] sm:$0xff] }
 0x238   : > { %v9070_v38 = vpop.eup %9069  ;;  %v6144_v42 = vmul.f32 -1.442695, %v962_v29 }
 0x239   : > { %v1273_v51 = vadd.f32 1.0, %v9070_v38  ;;  %v966_v56 = vpop.f32.mrb[10].mxu1 }
 0x23a   : > { %9077 = vpow2.f32 %v6144_v42  ;;  %v967_v60 = vadd.f32 %v10440_v54, %v966_v56  ;;  %v7082_v1 = vpop.f32.mrb[11].mxu1  ;;  %7248 = vmatmul.mubr.msk.f32.gmra.mrb[116].mxu1 %vm491_vm1, %v1457_v46  ;;  %8073 = vmatmul.mubr.msk.f32.gmra.mrb[60].mxu0 %vm491_vm1, %v10107_v52  ;;  %v482_v56 = vld [vmem:[%s10507_s28 + $0x100] sm:$0xff] }
 0x23b   : > { %9079 = vrcp.f32 %v1273_v51  ;;  %7250 = vmatprep.mubr.msk.f32.mxu1 %vm9270_vm0, %v9271_v7  ;;  %8075 = vmatprep.mubr.msk.f32.mxu0 %vm9270_vm0, %v9271_v7  ;;  %v481_v51 = vld [vmem:[%s10507_s28 + $0xf8] sm:$0xff] }
 0x23c   : > { %v9072_v6 = vpop.eup %9071  ;;  %v6145_v17 = vmul.f32 -1.442695, %v967_v60 }
 0x23d   : > { %v1274_v30 = vadd.f32 1.0, %v9072_v6  ;;  %v971_v36 = vpop.f32.mrb[12].mxu1  ;;  %v9074_v44 = vpop.eup %9073 }
 0x23e   : > { %9081 = vpow2.f32 %v6145_v17  ;;  %v972_v52 = vadd.f32 %v10440_v54, %v971_v36  ;;  %v7085_v62 = vpop.f32.mrb[13].mxu1  ;;  %7251 = vmatmul.mubr.msk.f32.gmra.mrb[118].mxu1 %vm491_vm1, %v1458_v49  ;;  %8076 = vmatmul.mubr.msk.f32.gmra.mrb[62].mxu0 %vm491_vm1, %v10118_v55  ;;  %v10509_v5 = vrot.slane %v9074_v44, %v5608_v23  ;;  %v484_v36 = vld [vmem:[%s10507_s28 + $0x110] sm:$0xff]  ;;  %v485_v44 = vld [vmem:[%s10507_s28 + $0x118] sm:$0xff] }
 0x23f   : > { %9083 = vrcp.f32 %v1274_v30  ;;  %7253 = vmatprep.mubr.msk.f32.mxu1 %vm9270_vm0, %v9271_v7  ;;  %8078 = vmatprep.mubr.msk.f32.mxu0 %vm9270_vm0, %v9271_v7  ;;  %v483_v30 = vld [vmem:[%s10507_s28 + $0x108] sm:$0xff] }
 0x240   : > { %v9076_v2 = vpop.eup %9075  ;;  %v6146_v55 = vmul.f32 -1.442695, %v972_v52  ;;  %v10527_v32 = vmul.f32 %v10509_v5, %v466_v48  ;;  %v10537_v19 = vmul.f32 %v10509_v5, %v467_v35  ;;  %v10540_v22 = vmul.f32 %v10509_v5, %v468_v39  ;;  %v490_v35 = vld [vmem:[%s10507_s28 + $0x140] sm:$0xf] }
 0x241   : > { %v1275_v13 = vadd.f32 1.0, %v9076_v2  ;;  %v976_v14 = vpop.f32.mrb[14].mxu1  ;;  %v10552_v37 = vmul.f32 %v10509_v5, %v470_v57  ;;  %v10562_v46 = vmul.f32 %v10509_v5, %v472_v9  ;;  %v10565_v38 = vmul.f32 %v10509_v5, %v473_v10 }
 0x242   : > { %9085 = vpow2.f32 %v6146_v55  ;;  %v977_v27 = vadd.f32 %v10440_v54, %v976_v14  ;;  %v7088_v41 = vpop.f32.mrb[15].mxu1  ;;  %7254 = vmatmul.mubr.msk.f32.gmra.mrb[120].mxu1 %vm491_vm1, %v1459_v63  ;;  %8079 = vmatmul.mubr.msk.f32.gmra.mrb[64].mxu0 %vm491_vm1, %v10129_v58  ;;  %v471_v58 = vld [vmem:[%s10507_s28 + $0xa8] sm:$0xff]  ;;  %v10568_v42 = vmul.f32 %v10509_v5, %v474_v11  ;;  %v10574_v6 = vmul.f32 %v10509_v5, %v475_v25  ;;  %v486_v55 = vld [vmem:[%s10507_s28 + $0x120] sm:$0xff]  ;;  %v488_v14 = vld [vmem:[%s10507_s28 + $0x130] sm:$0xff] }
 0x243   : > { %9087 = vrcp.f32 %v1275_v13  ;;  %7256 = vmatprep.mubr.msk.f32.mxu1 %vm9270_vm0, %v9271_v7  ;;  %8081 = vmatprep.mubr.msk.f32.mxu0 %vm9270_vm0, %v9271_v7  ;;  %v10555_v40 = vmul.f32 %v10509_v5, %v471_v58  ;;  %v10577_v17 = vmul.f32 %v10509_v5, %v476_v28  ;;  %v10580_v23 = vmul.f32 %v10509_v5, %v477_v31  ;;  %v487_v13 = vld [vmem:[%s10507_s28 + $0x128] sm:$0xff]  ;;  %v1463_v28 = vld [vmem:[%s9369_s12 + $0xb1] sm:$0xff] }
 0x244   : > { %v9078_v45 = vpop.eup %9077  ;;  %v6147_v50 = vmul.f32 -1.442695, %v977_v27  ;;  %v10590_v63 = vmul.f32 %v10509_v5, %v478_v43  ;;  %v10593_v2 = vmul.f32 %v10509_v5, %v479_v24  ;;  %v1462_v27 = vld [vmem:[%s9369_s12 + $0xa9] sm:$0xff]  ;;  %v10602_v41 = vmul.f32 %v10509_v5, %v480_v47  ;;  %v1464_v47 = vld [vmem:[%s9369_s12 + $0xb9] sm:$0xff] }
 0x245   : > { %v9080_v59 = vpop.eup %9079  ;;  %v1276_v21 = vadd.f32 1.0, %v9078_v45  ;;  %v981_v26 = vpop.f32.mrb[16].mxu1  ;;  %v10608_v48 = vmul.f32 %v10509_v5, %v482_v56  ;;  %v10621_v57 = vmul.f32 %v10509_v5, %v485_v44  ;;  %v10627_v9 = vmul.f32 %v10509_v5, %v487_v13 }
 0x246   : > { %9089 = vpow2.f32 %v6147_v50  ;;  %v982_v12 = vadd.f32 %v10440_v54, %v981_v26  ;;  %7257 = vmatmul.mubr.msk.f32.gmra.mrb[122].mxu1 %vm491_vm1, %v1460_v18  ;;  %8082 = vmatmul.mubr.msk.f32.gmra.mrb[66].mxu0 %vm491_vm1, %v10140_v61  ;;  %v7091_v16 = vpop.f32.mrb[17].mxu1  ;;  %v10549_v61 = vmul.f32 %v10509_v5, %v469_v53  ;;  %v489_v18 = vld [vmem:[%s10507_s28 + $0x138] sm:$0xff]  ;;  %v10615_v50 = vmul.f32 %v10509_v5, %v483_v30 }
 0x247   : > { %9091 = vrcp.f32 %v1276_v21  ;;  %5653 = vperm.xlu0 %9065, %v9080_v59   ;;  %7259 = vmatprep.mubr.msk.f32.mxu1 %vm9270_vm0, %v9271_v7  ;;  %v10618_v53 = vmul.f32 %v10509_v5, %v484_v36  ;;  %v10624_v26 = vmul.f32 %v10509_v5, %v486_v55  ;;  %v10630_v10 = vmul.f32 %v10509_v5, %v488_v14  ;;  %v1465_v36 = vld [vmem:[%s9369_s12 + $0xc1] sm:$0xff] }
 0x248   : > { %v9082_v29 = vpop.eup %9081  ;;  %v6148_v33 = vmul.f32 -1.442695, %v982_v12  ;;  %8084 = vmatprep.mubr.msk.f32.mxu0 %vm9270_vm0, %v9271_v7  ;;  %v10637_v16 = vmul.f32 %v10509_v5, %v489_v18  ;;  %v10640_v25 = vmul.f32 %v10509_v5, %v490_v35  ;;  %v4067_v18 = vld [vmem:[%s9369_s12 + $0x154] sm:$0xff] }
 0x249   : > { %v9084_v60 = vpop.eup %9083  ;;  %v1277_v1 = vadd.f32 1.0, %v9082_v29  ;;  %v986_v49 = vpop.f32.mrb[18].mxu1 }
 0x24a   : > { %9093 = vpow2.f32 %v6148_v33  ;;  %v987_v52 = vadd.f32 %v10440_v54, %v986_v49  ;;  %7260 = vmatmul.mubr.msk.f32.gmra.mrb[124].mxu1 %vm491_vm1, %v1461_v34  ;;  %8085 = vmatmul.mubr.msk.f32.gmra.mrb[68].mxu0 %vm491_vm1, %v10151_v0  ;;  %v7094_v62 = vpop.f32.mrb[19].mxu1  ;;  %v10605_v0 = vmul.f32 %v10509_v5, %v481_v51 }
 0x24b   : > { %9095 = vrcp.f32 %v1277_v1  ;;  %5658 = vperm.xlu0 %9065, %v9084_v60   ;;  %7262 = vmatprep.mubr.msk.f32.mxu1 %vm9270_vm0, %v9271_v7 }
 0x24c   : > { %v9086_v39 = vpop.eup %9085  ;;  %v6149_v45 = vmul.f32 -1.442695, %v987_v52  ;;  %8087 = vmatprep.mubr.msk.f32.mxu0 %vm9270_vm0, %v9271_v7 }
 0x24d   : > { %v9088_v58 = vpop.eup %9087  ;;  %v1278_v59 = vadd.f32 1.0, %v9086_v39  ;;  %v991_v21 = vpop.f32.mrb[20].mxu1 }
 0x24e   : > { %9097 = vpow2.f32 %v6149_v45  ;;  %v992_v11 = vadd.f32 %v10440_v54, %v991_v21  ;;  %7263 = vmatmul.mubr.msk.f32.gmra.mrb[126].mxu1 %vm491_vm1, %v1462_v27  ;;  %8088 = vmatmul.mubr.msk.f32.gmra.mrb[70].mxu0 %vm491_vm1, %v10162_v3  ;;  %v7097_v12 = vpop.f32.mrb[21].mxu1  ;;  %v1466_v27 = vld [vmem:[%s9369_s12 + $0xc9] sm:$0xff] }
 0x24f   : > { %9099 = vrcp.f32 %v1278_v59  ;;  %5663 = vperm.xlu1 %9066, %v9088_v58   ;;  %7265 = vmatprep.mubr.msk.f32.mxu1 %vm9270_vm0, %v9271_v7  ;;  %v4068_v12 = vld [vmem:[%s9369_s12 + $0x15c] sm:$0xff] }
 0x250   : > { %v9090_v31 = vpop.eup %9089  ;;  %v6150_v34 = vmul.f32 -1.442695, %v992_v11  ;;  %8090 = vmatprep.mubr.msk.f32.mxu0 %vm9270_vm0, %v9271_v7  ;;  %v1467_v11 = vld [vmem:[%s9369_s12 + $0xd1] sm:$0xff] }
 0x251   : > { %v9092_v3 = vpop.eup %9091  ;;  %v1279_v43 = vadd.f32 1.0, %v9090_v31  ;;  %v996_v24 = vpop.f32.mrb[22].mxu1 }
 0x252   : > { %9101 = vpow2.f32 %v6150_v34  ;;  %v997_v29 = vadd.f32 %v10440_v54, %v996_v24  ;;  %7266 = vmatmul.mubr.msk.f32.gmra.mrb[128].mxu1 %vm491_vm1, %v1463_v28  ;;  %8091 = vmatmul.mubr.msk.f32.gmra.mrb[72].mxu0 %vm491_vm1, %v10173_v8  ;;  %v7100_v33 = vpop.f32.mrb[23].mxu1 }
 0x253   : > { %9103 = vrcp.f32 %v1279_v43  ;;  %5668 = vperm.xlu1 %9066, %v9092_v3   ;;  %7268 = vmatprep.mubr.msk.f32.mxu1 %vm9270_vm0, %v9271_v7  ;;  %v1468_v33 = vld [vmem:[%s9369_s12 + $0xd9] sm:$0xff] }
 0x254   : > { %v9094_v51 = vpop.eup %9093  ;;  %v6151_v56 = vmul.f32 -1.442695, %v997_v29  ;;  %8093 = vmatprep.mubr.msk.f32.mxu0 %vm9270_vm0, %v9271_v7 }
 0x255   : > { %v9096_v60 = vpop.eup %9095  ;;  %v1280_v1 = vadd.f32 1.0, %v9094_v51  ;;  %v1001_v49 = vpop.f32.mrb[24].mxu1 }
 0x256   : > { %9105 = vpow2.f32 %v6151_v56  ;;  %v1002_v30 = vadd.f32 %v10440_v54, %v1001_v49  ;;  %7269 = vmatmul.mubr.msk.f32.gmra.mrb[130].mxu1 %vm491_vm1, %v1464_v47  ;;  %8094 = vmatmul.mubr.msk.f32.gmra.mrb[74].mxu0 %vm491_vm1, %v10184_v15  ;;  %v7103_v8 = vpop.f32.mrb[25].mxu1  ;;  %v4069_v47 = vld [vmem:[%s9369_s12 + $0x164] sm:$0xf] }
 0x257   : > { %9107 = vrcp.f32 %v1280_v1  ;;  %5673 = vperm.xlu0 %9065, %v9096_v60   ;;  %7271 = vmatprep.mubr.msk.f32.mxu1 %vm9270_vm0, %v9271_v7 }
 0x258   : > { %v9098_v44 = vpop.eup %9097  ;;  %v6152_v52 = vmul.f32 -1.442695, %v1002_v30  ;;  %8096 = vmatprep.mubr.msk.f32.mxu0 %vm9270_vm0, %v9271_v7 }
 0x259   : > { %v9100_v62 = vpop.eup %9099  ;;  %v1281_v55 = vadd.f32 1.0, %v9098_v44  ;;  %v1006_v13 = vpop.f32.mrb[26].mxu1  ;;  %v4509_v44 = vld [vmem:[%s9369_s12 + $0x25] sm:$0xff] }
 0x25a   : > { %9109 = vpow2.f32 %v6152_v52  ;;  %v1007_v15 = vadd.f32 %v10440_v54, %v1006_v13  ;;  %7272 = vmatmul.mubr.msk.f32.gmra.mrb[132].mxu1 %vm491_vm1, %v1465_v36  ;;  %8097 = vmatmul.mubr.msk.f32.gmra.mrb[76].mxu0 %vm491_vm1, %v10195_v20  ;;  %v7106_v14 = vpop.f32.mrb[27].mxu1  ;;  %v1469_v36 = vld [vmem:[%s9369_s12 + $0xe1] sm:$0xff] }
 0x25b   : > { %9111 = vrcp.f32 %v1281_v55  ;;  %5678 = vperm.xlu1 %9066, %v9100_v62   ;;  %7274 = vmatprep.mubr.msk.f32.mxu1 %vm9270_vm0, %v9271_v7 }
 0x25c   : > { %v9102_v35 = vpop.eup %9101  ;;  %v6153_v39 = vmul.f32 -1.442695, %v1007_v15  ;;  %8099 = vmatprep.mubr.msk.f32.mxu0 %vm9270_vm0, %v9271_v7 }
 0x25d   : > { %v9104_v45 = vpop.eup %9103  ;;  %v1282_v58 = vadd.f32 1.0, %v9102_v35  ;;  %v1011_v59 = vpop.f32.mrb[28].mxu1  ;;  %v4510_v35 = vld [vmem:[%s9369_s12 + $0x2d] sm:$0xff] }
 0x25e   : > { %9113 = vpow2.f32 %v6153_v39  ;;  %v1012_v20 = vadd.f32 %v10440_v54, %v1011_v59  ;;  %7275 = vmatmul.mubr.msk.f32.gmra.mrb[134].mxu1 %vm491_vm1, %v1466_v27  ;;  %8100 = vmatmul.mubr.msk.f32.gmra.mrb[78].mxu0 %vm491_vm1, %v4067_v18  ;;  %v7109_v21 = vpop.f32.mrb[29].mxu1  ;;  %v1470_v18 = vld [vmem:[%s9369_s12 + $0xe9] sm:$0xff] }
 0x25f   : > { %9115 = vrcp.f32 %v1282_v58  ;;  %5683 = vperm.xlu0 %9065, %v9104_v45   ;;  %7277 = vmatprep.mubr.msk.f32.mxu1 %vm9270_vm0, %v9271_v7 }
 0x260   : > { %v9106_v28 = vpop.eup %9105  ;;  %v6154_v31 = vmul.f32 -1.442695, %v1012_v20  ;;  %8102 = vmatprep.mubr.msk.f32.mxu0 %vm9270_vm0, %v9271_v7 }
 0x261   : > { %v9108_v34 = vpop.eup %9107  ;;  %v1283_v3 = vadd.f32 1.0, %v9106_v28  ;;  %v1016_v43 = vpop.f32.mrb[30].mxu1  ;;  %v4511_v28 = vld [vmem:[%s9369_s12 + $0x35] sm:$0xff] }
 0x262   : > { %9117 = vpow2.f32 %v6154_v31  ;;  %v1017_v24 = vadd.f32 %v10440_v54, %v1016_v43  ;;  %7278 = vmatmul.mubr.msk.f32.gmra.mrb[136].mxu1 %vm491_vm1, %v1467_v11  ;;  %8103 = vmatmul.mubr.msk.f32.gmra.mrb[80].mxu0 %vm491_vm1, %v4068_v12  ;;  %v7112_v29 = vpop.f32.mrb[31].mxu1  ;;  %v1471_v12 = vld [vmem:[%s9369_s12 + $0xf1] sm:$0xff] }
 0x263   : > { %9119 = vrcp.f32 %v1283_v3  ;;  %5688 = vperm.xlu1 %9066, %v9108_v34   ;;  %7280 = vmatprep.mubr.msk.f32.mxu1 %vm9270_vm0, %v9271_v7 }
 0x264   : > { %v9110_v51 = vpop.eup %9109  ;;  %v6155_v56 = vmul.f32 -1.442695, %v1017_v24  ;;  %8105 = vmatprep.mubr.msk.f32.mxu0 %vm9270_vm0, %v9271_v7 }
 0x265   : > { %v9112_v60 = vpop.eup %9111  ;;  %v1284_v1 = vadd.f32 1.0, %v9110_v51  ;;  %v1021_v49 = vpop.f32.mrb[32].mxu1  ;;  %v4512_v51 = vld [vmem:[%s9369_s12 + $0x3d] sm:$0xff] }
 0x266   : > { %9121 = vpow2.f32 %v6155_v56  ;;  %v1022_v30 = vadd.f32 %v10440_v54, %v1021_v49  ;;  %7281 = vmatmul.mubr.msk.f32.gmra.mrb[138].mxu1 %vm491_vm1, %v1468_v33  ;;  %8106 = vmatmul.mubr.msk.f32.gmra.mrb[82].mxu0 %vm491_vm1, %v4069_v47  ;;  %v7115_v8 = vpop.f32.mrb[33].mxu1  ;;  %v1472_v47 = vld [vmem:[%s9369_s12 + $0xf9] sm:$0xff] }
 0x267   : > { %9123 = vrcp.f32 %v1284_v1  ;;  %5693 = vperm.xlu0 %9065, %v9112_v60   ;;  %7283 = vmatprep.mubr.msk.f32.mxu1 %vm9270_vm0, %v9271_v7 }
 0x268   : > { %v9114_v52 = vpop.eup %9113  ;;  %v6156_v62 = vmul.f32 -1.442695, %v1022_v30  ;;  %8116 = vmatprep.mubr.msk.f32.mxu0 %vm9270_vm0, %v9271_v7 }
 0x269   : > { %v9116_v55 = vpop.eup %9115  ;;  %v1285_v13 = vadd.f32 1.0, %v9114_v52  ;;  %v1026_v15 = vpop.f32.mrb[34].mxu1  ;;  %v4513_v52 = vld [vmem:[%s9369_s12 + $0x45] sm:$0xff] }
 0x26a   : > { %9125 = vpow2.f32 %v6156_v62  ;;  %v1027_v14 = vadd.f32 %v10440_v54, %v1026_v15  ;;  %7284 = vmatmul.mubr.msk.f32.gmra.mrb[140].mxu1 %vm491_vm1, %v1469_v36  ;;  %8117 = vmatmul.mubr.msk.f32.vlgmr.msra.gmra.mrb[2].mxu0 %vm491_vm1, %v4509_v44  ;;  %v7118_v27 = vpop.f32.mrb[35].mxu1  ;;  %v1473_v44 = vld [vmem:[%s9369_s12 + $0x101] sm:$0xff] }
 0x26b   : > { %9127 = vrcp.f32 %v1285_v13  ;;  %5698 = vperm.xlu1 %9066, %v9116_v55   ;;  %7286 = vmatprep.mubr.msk.f32.mxu1 %vm9270_vm0, %v9271_v7 }
 0x26c   : > { %v9118_v39 = vpop.eup %9117  ;;  %v6157_v45 = vmul.f32 -1.442695, %v1027_v14  ;;  %8119 = vmatprep.mubr.msk.f32.mxu0 %vm9270_vm0, %v9271_v7 }
 0x26d   : > { %v9120_v58 = vpop.eup %9119  ;;  %v1286_v59 = vadd.f32 1.0, %v9118_v39  ;;  %v1031_v20 = vpop.f32.mrb[36].mxu1  ;;  %v4514_v39 = vld [vmem:[%s9369_s12 + $0x4d] sm:$0xff] }
 0x26e   : > { %9129 = vpow2.f32 %v6157_v45  ;;  %v1032_v21 = vadd.f32 %v10440_v54, %v1031_v20  ;;  %7287 = vmatmul.mubr.msk.f32.gmra.mrb[142].mxu1 %vm491_vm1, %v1470_v18  ;;  %8120 = vmatmul.mubr.msk.f32.gmra.mrb[4].mxu0 %vm491_vm1, %v4510_v35  ;;  %v7121_v11 = vpop.f32.mrb[37].mxu1  ;;  %v1474_v35 = vld [vmem:[%s9369_s12 + $0x109] sm:$0xff] }
 0x26f   : > { %9131 = vrcp.f32 %v1286_v59  ;;  %5703 = vperm.xlu0 %9065, %v9120_v58   ;;  %7289 = vmatprep.mubr.msk.f32.mxu1 %vm9270_vm0, %v9271_v7 }
 0x270   : > { %v9122_v31 = vpop.eup %9121  ;;  %v6158_v34 = vmul.f32 -1.442695, %v1032_v21  ;;  %8122 = vmatprep.mubr.msk.f32.mxu0 %vm9270_vm0, %v9271_v7 }
 0x271   : > { %v9124_v3 = vpop.eup %9123  ;;  %v1287_v43 = vadd.f32 1.0, %v9122_v31  ;;  %v1036_v24 = vpop.f32.mrb[38].mxu1  ;;  %v4515_v31 = vld [vmem:[%s9369_s12 + $0x55] sm:$0xff] }
 0x272   : > { %9133 = vpow2.f32 %v6158_v34  ;;  %v1037_v29 = vadd.f32 %v10440_v54, %v1036_v24  ;;  %7290 = vmatmul.mubr.msk.f32.gmra.mrb[144].mxu1 %vm491_vm1, %v1471_v12  ;;  %8123 = vmatmul.mubr.msk.f32.gmra.mrb[6].mxu0 %vm491_vm1, %v4511_v28  ;;  %v7124_v33 = vpop.f32.mrb[39].mxu1  ;;  %v1475_v28 = vld [vmem:[%s9369_s12 + $0x111] sm:$0xff] }
 0x273   : > { %9135 = vrcp.f32 %v1287_v43  ;;  %5708 = vperm.xlu1 %9066, %v9124_v3   ;;  %7292 = vmatprep.mubr.msk.f32.mxu1 %vm9270_vm0, %v9271_v7 }
 0x274   : > { %v9126_v56 = vpop.eup %9125  ;;  %v6159_v60 = vmul.f32 -1.442695, %v1037_v29  ;;  %8125 = vmatprep.mubr.msk.f32.mxu0 %vm9270_vm0, %v9271_v7 }
 0x275   : > { %v9128_v1 = vpop.eup %9127  ;;  %v1288_v49 = vadd.f32 1.0, %v9126_v56  ;;  %v1041_v30 = vpop.f32.mrb[40].mxu1  ;;  %v4516_v56 = vld [vmem:[%s9369_s12 + $0x5d] sm:$0xff] }
 0x276   : > { %9137 = vpow2.f32 %v6159_v60  ;;  %v1042_v8 = vadd.f32 %v10440_v54, %v1041_v30  ;;  %7293 = vmatmul.mubr.msk.f32.gmra.mrb[146].mxu1 %vm491_vm1, %v1472_v47  ;;  %8126 = vmatmul.mubr.msk.f32.gmra.mrb[8].mxu0 %vm491_vm1, %v4512_v51  ;;  %v7127_v36 = vpop.f32.mrb[41].mxu1  ;;  %v1476_v51 = vld [vmem:[%s9369_s12 + $0x119] sm:$0xff] }
 0x277   : > { %9139 = vrcp.f32 %v1288_v49  ;;  %5713 = vperm.xlu0 %9065, %v9128_v1   ;;  %7295 = vmatprep.mubr.msk.f32.mxu1 %vm9270_vm0, %v9271_v7 }
 0x278   : > { %v9130_v62 = vpop.eup %9129  ;;  %v6160_v55 = vmul.f32 -1.442695, %v1042_v8  ;;  %8128 = vmatprep.mubr.msk.f32.mxu0 %vm9270_vm0, %v9271_v7 }
 0x279   : > { %v9132_v13 = vpop.eup %9131  ;;  %v1289_v15 = vadd.f32 1.0, %v9130_v62  ;;  %v1046_v14 = vpop.f32.mrb[42].mxu1  ;;  %v4517_v62 = vld [vmem:[%s9369_s12 + $0x65] sm:$0xff] }
 0x27a   : > { %9141 = vpow2.f32 %v6160_v55  ;;  %v1047_v27 = vadd.f32 %v10440_v54, %v1046_v14  ;;  %7296 = vmatmul.mubr.msk.f32.gmra.mrb[148].mxu1 %vm491_vm1, %v1473_v44  ;;  %8129 = vmatmul.mubr.msk.f32.gmra.mrb[10].mxu0 %vm491_vm1, %v4513_v52  ;;  %v7130_v18 = vpop.f32.mrb[43].mxu1  ;;  %v1477_v52 = vld [vmem:[%s9369_s12 + $0x121] sm:$0xff] }
 0x27b   : > { %9143 = vrcp.f32 %v1289_v15  ;;  %5718 = vperm.xlu1 %9066, %v9132_v13   ;;  %7298 = vmatprep.mubr.msk.f32.mxu1 %vm9270_vm0, %v9271_v7  ;;  %v6538_v15 = vld [vmem:[%s12269_s8 + $0x100] sm:$0xff]  ;;  %v6539_v14 = vld [vmem:[%s12269_s8 + $0x108] sm:$0xff] }
 0x27c   : > { %v9134_v45 = vpop.eup %9133  ;;  %v6161_v58 = vmul.f32 -1.442695, %v1047_v27  ;;  %8131 = vmatprep.mubr.msk.f32.mxu0 %vm9270_vm0, %v9271_v7 }
 0x27d   : > { %v9136_v59 = vpop.eup %9135  ;;  %v1290_v20 = vadd.f32 1.0, %v9134_v45  ;;  %v1051_v21 = vpop.f32.mrb[44].mxu1 }
 0x27e   : > { %9145 = vpow2.f32 %v6161_v58  ;;  %v1052_v11 = vadd.f32 %v10440_v54, %v1051_v21  ;;  %7299 = vmatmul.mubr.msk.f32.gmra.mrb[150].mxu1 %vm491_vm1, %v1474_v35  ;;  %8132 = vmatmul.mubr.msk.f32.gmra.mrb[12].mxu0 %vm491_vm1, %v4514_v39  ;;  %v7133_v12 = vpop.f32.mrb[45].mxu1  ;;  %v8431_v39 = vpack.c.bf16 %v6539_v14, %v6538_v15 }
 0x27f   : > { %9147 = vrcp.f32 %v1290_v20  ;;  %5723 = vperm.xlu0 %9065, %v9136_v59   ;;  %7301 = vmatprep.mubr.msk.f32.mxu1 %vm9270_vm0, %v9271_v7  ;;  %v1478_v59 = vld [vmem:[%s9369_s12 + $0x129] sm:$0xff] }
 0x280   : > { %v9138_v34 = vpop.eup %9137  ;;  %v6162_v3 = vmul.f32 -1.442695, %v1052_v11  ;;  %8134 = vmatprep.mubr.msk.f32.mxu0 %vm9270_vm0, %v9271_v7  ;;  %v4518_v20 = vld [vmem:[%s9369_s12 + $0x6d] sm:$0xff]  ;;  %8432 = vmatpush3.bf16.msra.mxu0 %v8431_v39 }
 0x281   : > { %v9140_v43 = vpop.eup %9139  ;;  %v1291_v24 = vadd.f32 1.0, %v9138_v34  ;;  %v1056_v29 = vpop.f32.mrb[46].mxu1  ;;  %8433 = vmatprep.subr.bf16.mxu0 %v9269_v4  ;;  %v6540_v34 = vld [vmem:[%s12269_s8 + $0x110] sm:$0xff] }
 0x282   : > { %9149 = vpow2.f32 %v6162_v3  ;;  %v1057_v33 = vadd.f32 %v10440_v54, %v1056_v29  ;;  %7302 = vmatmul.mubr.msk.f32.gmra.mrb[152].mxu1 %vm491_vm1, %v1475_v28  ;;  %8135 = vmatmul.mubr.msk.f32.gmra.mrb[14].mxu0 %vm491_vm1, %v4515_v31  ;;  %v7136_v47 = vpop.f32.mrb[47].mxu1  ;;  %v1479_v29 = vld [vmem:[%s9369_s12 + $0x131] sm:$0xff] }
 0x283   : > { %9151 = vrcp.f32 %v1291_v24  ;;  %5728 = vperm.xlu1 %9066, %v9140_v43   ;;  %7304 = vmatprep.mubr.msk.f32.mxu1 %vm9270_vm0, %v9271_v7  ;;  %v6541_v24 = vld [vmem:[%s12269_s8 + $0x118] sm:$0xff] }
 0x284   : > { %v9142_v60 = vpop.eup %9141  ;;  %v6163_v1 = vmul.f32 -1.442695, %v1057_v33  ;;  %8137 = vmatprep.mubr.msk.f32.mxu0 %vm9270_vm0, %v9271_v7  ;;  %v4519_v33 = vld [vmem:[%s9369_s12 + $0x75] sm:$0xff]  ;;  %v8434_v47 = vpack.c.bf16 %v6541_v24, %v6540_v34  ;;  %v4522_v34 = vld [vmem:[%s9369_s12 + $0x8d] sm:$0xff] }
 0x285   : > { %v9144_v49 = vpop.eup %9143  ;;  %v1292_v30 = vadd.f32 1.0, %v9142_v60  ;;  %v1061_v8 = vpop.f32.mrb[48].mxu1 }
 0x286   : > { %9153 = vpow2.f32 %v6163_v1  ;;  %v1062_v36 = vadd.f32 %v10440_v54, %v1061_v8  ;;  %7305 = vmatmul.mubr.msk.f32.gmra.mrb[154].mxu1 %vm491_vm1, %v1476_v51  ;;  %8138 = vmatmul.mubr.msk.f32.gmra.mrb[16].mxu0 %vm491_vm1, %v4516_v56  ;;  %v7139_v44 = vpop.f32.mrb[49].mxu1 }
 0x287   : > { %9155 = vrcp.f32 %v1292_v30  ;;  %5733 = vperm.xlu0 %9065, %v9144_v49   ;;  %7307 = vmatprep.mubr.msk.f32.mxu1 %vm9270_vm0, %v9271_v7  ;;  %v4520_v44 = vld [vmem:[%s9369_s12 + $0x7d] sm:$0xff] }
 0x288   : > { %v9146_v55 = vpop.eup %9145  ;;  %v6164_v13 = vmul.f32 -1.442695, %v1062_v36  ;;  %8140 = vmatprep.mubr.msk.f32.mxu0 %vm9270_vm0, %v9271_v7  ;;  %8435 = vmatpush3.bf16.msra.mxu0 %v8434_v47  ;;  %v1480_v36 = vld [vmem:[%s9369_s12 + $0x139] sm:$0xff] }
 0x289   : > { %v9148_v27 = vpop.eup %9147  ;;  %v1293_v18 = vadd.f32 1.0, %v9146_v55  ;;  %v1066_v35 = vpop.f32.mrb[50].mxu1 }
 0x28a   : > { %9157 = vpow2.f32 %v6164_v13  ;;  %v1067_v45 = vadd.f32 %v10440_v54, %v1066_v35  ;;  %7308 = vmatmul.mubr.msk.f32.gmra.mrb[156].mxu1 %vm491_vm1, %v1477_v52  ;;  %8141 = vmatmul.mubr.msk.f32.gmra.mrb[18].mxu0 %vm491_vm1, %v4517_v62  ;;  %v7142_v58 = vpop.f32.mrb[51].mxu1  ;;  %v4521_v35 = vld [vmem:[%s9369_s12 + $0x85] sm:$0xff] }
 0x28b   : > { %9159 = vrcp.f32 %v1293_v18  ;;  %5738 = vperm.xlu1 %9066, %v9148_v27   ;;  %7310 = vmatprep.mubr.msk.f32.mxu1 %vm9270_vm0, %v9271_v7  ;;  %v1481_v18 = vld [vmem:[%s9369_s12 + $0x141] sm:$0xf] }
 0x28c   : > { %v9150_v21 = vpop.eup %9149  ;;  %v6165_v11 = vmul.f32 -1.442695, %v1067_v45  ;;  %8143 = vmatprep.mubr.msk.f32.mxu0 %vm9270_vm0, %v9271_v7  ;;  %v6268_v58 = vld [vmem:[%s12269_s8 + $0x40] sm:$0xff] }
 0x28d   : > { %v9152_v12 = vpop.eup %9151  ;;  %v1294_v28 = vadd.f32 1.0, %v9150_v21  ;;  %v1071_v31 = vpop.f32.mrb[52].mxu1 }
 0x28e   : > { %9161 = vpow2.f32 %v6165_v11  ;;  %v1072_v3 = vadd.f32 %v10440_v54, %v1071_v31  ;;  %7311 = vmatmul.mubr.msk.f32.gmra.mrb[158].mxu1 %vm491_vm1, %v1478_v59  ;;  %8144 = vmatmul.mubr.msk.f32.gmra.mrb[20].mxu0 %vm491_vm1, %v4518_v20  ;;  %v7145_v43 = vpop.f32.mrb[53].mxu1  ;;  %v6269_v59 = vld [vmem:[%s12269_s8 + $0x48] sm:$0xff]  ;;  %v1396_v31 = vld [vmem:[%s9369_s12] sm:$0xff] }
 0x28f   : > { %9163 = vrcp.f32 %v1294_v28  ;;  %5743 = vperm.xlu0 %9065, %v9152_v12   ;;  %7313 = vmatprep.mubr.msk.f32.mxu1 %vm9270_vm0, %v9271_v7 }
 0x290   : > { %v9154_v51 = vpop.eup %9153  ;;  %v6166_v56 = vmul.f32 -1.442695, %v1072_v3  ;;  %8146 = vmatprep.mubr.msk.f32.mxu0 %vm9270_vm0, %v9271_v7  ;;  %v8395_v3 = vpack.c.bf16 %v6269_v59, %v6268_v58 }
 0x291   : > { %v9156_v60 = vpop.eup %9155  ;;  %v1295_v1 = vadd.f32 1.0, %v9154_v51  ;;  %v1076_v49 = vpop.f32.mrb[54].mxu1  ;;  %v6270_v51 = vld [vmem:[%s12269_s8 + $0x50] sm:$0xff] }
 0x292   : > { %9165 = vpow2.f32 %v6166_v56  ;;  %v1077_v30 = vadd.f32 %v10440_v54, %v1076_v49  ;;  %7314 = vmatmul.mubr.msk.f32.gmra.mrb[160].mxu1 %vm491_vm1, %v1479_v29  ;;  %8147 = vmatmul.mubr.msk.f32.gmra.mrb[22].mxu0 %vm491_vm1, %v4519_v33  ;;  %v7148_v8 = vpop.f32.mrb[55].mxu1  ;;  %v6271_v56 = vld [vmem:[%s12269_s8 + $0x58] sm:$0xff]  ;;  %v1397_v49 = vld [vmem:[%s9369_s12 + $0x8] sm:$0xff] }
 0x293   : > { %9167 = vrcp.f32 %v1295_v1  ;;  %5748 = vperm.xlu1 %9066, %v9156_v60   ;;  %7316 = vmatprep.mubr.msk.f32.mxu1 %vm9270_vm0, %v9271_v7 }
 0x294   : > { %v9158_v52 = vpop.eup %9157  ;;  %v6167_v62 = vmul.f32 -1.442695, %v1077_v30  ;;  %8149 = vmatprep.mubr.msk.f32.mxu0 %vm9270_vm0, %v9271_v7  ;;  %v4523_v30 = vld [vmem:[%s9369_s12 + $0x95] sm:$0xff] }
 0x295   : > { %v9160_v55 = vpop.eup %9159  ;;  %v1296_v13 = vadd.f32 1.0, %v9158_v52  ;;  %v1081_v15 = vpop.f32.mrb[56].mxu1 }
 0x296   : > { %9169 = vpow2.f32 %v6167_v62  ;;  %v1082_v14 = vadd.f32 %v10440_v54, %v1081_v15  ;;  %7317 = vmatmul.mubr.msk.f32.gmra.mrb[162].mxu1 %vm491_vm1, %v1480_v36  ;;  %8150 = vmatmul.mubr.msk.f32.gmra.mrb[24].mxu0 %vm491_vm1, %v4520_v44  ;;  %v7151_v27 = vpop.f32.mrb[57].mxu1 }
 0x297   : > { %9171 = vrcp.f32 %v1296_v13  ;;  %5753 = vperm.xlu0 %9065, %v9160_v55   ;;  %7319 = vmatprep.mubr.msk.f32.mxu1 %vm9270_vm0, %v9271_v7  ;;  %v10854_v55 = vld [vmem:[#allocation2] ss:$0 sm:$0xff] }
 0x298   : > { %v9162_v39 = vpop.eup %9161  ;;  %v6168_v45 = vmul.f32 -1.442695, %v1082_v14  ;;  %8152 = vmatprep.mubr.msk.f32.mxu0 %vm9270_vm0, %v9271_v7  ;;  %v1398_v14 = vld [vmem:[%s9369_s12 + $0x10] sm:$0xff]  ;;  %v4524_v27 = vld [vmem:[%s9369_s12 + $0x9d] sm:$0xff] }
 0x299   : > { %v9164_v20 = vpop.eup %9163  ;;  %v1297_v21 = vadd.f32 1.0, %v9162_v39  ;;  %v1086_v11 = vpop.f32.mrb[58].mxu1 }
 0x29a   : > { %9173 = vpow2.f32 %v6168_v45  ;;  %v1087_v12 = vadd.f32 %v10440_v54, %v1086_v11  ;;  %7320 = vmatmul.mubr.msk.f32.gmra.mrb[164].mxu1 %vm491_vm1, %v1481_v18  ;;  %8153 = vmatmul.mubr.msk.f32.gmra.mrb[26].mxu0 %vm491_vm1, %v4521_v35  ;;  %v7154_v28 = vpop.f32.mrb[59].mxu1  ;;  %v4525_v11 = vld [vmem:[%s9369_s12 + $0xa5] sm:$0xff] }
 0x29b   : > { %9175 = vrcp.f32 %v1297_v21  ;;  %5758 = vperm.xlu1 %9066, %v9164_v20   ;;  %7330 = vmatprep.mubr.msk.f32.mxu1 %vm9270_vm0, %v9271_v7  ;;  %v1399_v21 = vld [vmem:[%s9369_s12 + $0x18] sm:$0xff] }
 0x29c   : > { %v9166_v43 = vpop.eup %9165  ;;  %v6169_v24 = vmul.f32 -1.442695, %v1087_v12  ;;  %8155 = vmatprep.mubr.msk.f32.mxu0 %vm9270_vm0, %v9271_v7 }
 0x29d   : > { %v9168_v29 = vpop.eup %9167  ;;  %v1298_v33 = vadd.f32 1.0, %v9166_v43  ;;  %v1091_v47 = vpop.f32.mrb[60].mxu1 }
 0x29e   : > { %9177 = vpow2.f32 %v6169_v24  ;;  %v1092_v60 = vadd.f32 %v10440_v54, %v1091_v47  ;;  %7331 = vmatmul.mubr.msk.f32.vlgmr.msra.gmra.mrb[84].mxu1 %vm491_vm1, %v1396_v31  ;;  %8156 = vmatmul.mubr.msk.f32.gmra.mrb[28].mxu0 %vm491_vm1, %v4522_v34  ;;  %v7157_v1 = vpop.f32.mrb[61].mxu1  ;;  %v8398_v54 = vpack.c.bf16 %v6271_v56, %v6270_v51 }
 0x29f   : > { %9179 = vrcp.f32 %v1298_v33  ;;  %5763 = vperm.xlu0 %9065, %v9168_v29   ;;  %8396 = vmatpush3.bf16.msra.mxu1 %v8395_v3  ;;  %v1400_v29 = vld [vmem:[%s9369_s12 + $0x20] sm:$0xff]  ;;  %v4526_v33 = vld [vmem:[%s9369_s12 + $0xad] sm:$0xff] }
 0x2a0   : > { %v9170_v8 = vpop.eup %9169  ;;  %v6170_v36 = vmul.f32 -1.442695, %v1092_v60  ;;  %7333 = vmatprep.mubr.msk.f32.mxu1 %vm9270_vm0, %v9271_v7  ;;  %8158 = vmatprep.mubr.msk.f32.mxu0 %vm9270_vm0, %v9271_v7 }
 0x2a1   : > { %v9172_v44 = vpop.eup %9171  ;;  %v1299_v52 = vadd.f32 1.0, %v9170_v8  ;;  %v1096_v62 = vpop.f32.mrb[62].mxu1  ;;  %8397 = vmatprep.subr.bf16.mxu1 %v9269_v4  ;;  %v1401_v8 = vld [vmem:[%s9369_s12 + $0x28] sm:$0xff] }
 0x2a2   : > { %9181 = vpow2.f32 %v6170_v36  ;;  %v1097_v13 = vadd.f32 %v10854_v55, %v1096_v62  ;;  %7334 = vmatmul.mubr.msk.f32.gmra.mrb[86].mxu1 %vm491_vm1, %v1397_v49  ;;  %8159 = vmatmul.mubr.msk.f32.gmra.mrb[30].mxu0 %vm491_vm1, %v4523_v30  ;;  %v7160_v15 = vpop.f32.mrb[63].mxu1  ;;  %v4527_v36 = vld [vmem:[%s9369_s12 + $0xb5] sm:$0xff] }
 0x2a3   : > { %9183 = vrcp.f32 %v1299_v52  ;;  %5768 = vperm.xlu1 %9066, %v9172_v44   ;;  %7336 = vmatprep.mubr.msk.f32.mxu1 %vm9270_vm0, %v9271_v7 }
 0x2a4   : > { %v9174_v18 = vpop.eup %9173  ;;  %v6171_v35 = vmul.f32 -1.442695, %v1097_v13  ;;  %8161 = vmatprep.mubr.msk.f32.mxu0 %vm9270_vm0, %v9271_v7  ;;  %8399 = vmatpush3.bf16.msra.mxu1 %v8398_v54 }
 0x2a5   : > { %v9176_v39 = vpop.eup %9175  ;;  %v1300_v45 = vadd.f32 1.0, %v9174_v18  ;;  %v1101_v58 = vpop.f32.mrb[64].mxu1  ;;  %8400 = vmatprep.subr.bf16.mxu1 %v9269_v4  ;;  %v4528_v18 = vld [vmem:[%s9369_s12 + $0xbd] sm:$0xff] }
 0x2a6   : > { %9185 = vpow2.f32 %v6171_v35  ;;  %v1102_v59 = vadd.f32 %v10854_v55, %v1101_v58  ;;  %7337 = vmatmul.mubr.msk.f32.gmra.mrb[88].mxu1 %vm491_vm1, %v1398_v14  ;;  %8162 = vmatmul.mubr.msk.f32.gmra.mrb[32].mxu0 %vm491_vm1, %v4524_v27  ;;  %v7163_v20 = vpop.f32.mrb[65].mxu1  ;;  %v1402_v27 = vld [vmem:[%s9369_s12 + $0x30] sm:$0xff] }
 0x2a7   : > { %9187 = vrcp.f32 %v1300_v45  ;;  %5773 = vperm.xlu0 %9065, %v9176_v39   ;;  %7339 = vmatprep.mubr.msk.f32.mxu1 %vm9270_vm0, %v9271_v7 }
 0x2a8   : > { %v9178_v12 = vpop.eup %9177  ;;  %v6172_v28 = vmul.f32 -1.442695, %v1102_v59  ;;  %8164 = vmatprep.mubr.msk.f32.mxu0 %vm9270_vm0, %v9271_v7 }
 0x2a9   : > { %v9180_v31 = vpop.eup %9179  ;;  %v1301_v34 = vadd.f32 1.0, %v9178_v12  ;;  %v1106_v3 = vpop.f32.mrb[66].mxu1  ;;  %v4529_v12 = vld [vmem:[%s9369_s12 + $0xc5] sm:$0xff] }
 0x2aa   : > { %9189 = vpow2.f32 %v6172_v28  ;;  %v1107_v43 = vadd.f32 %v10854_v55, %v1106_v3  ;;  %7340 = vmatmul.mubr.msk.f32.gmra.mrb[90].mxu1 %vm491_vm1, %v1399_v21  ;;  %8165 = vmatmul.mubr.msk.f32.gmra.mrb[34].mxu0 %vm491_vm1, %v4525_v11  ;;  %v7166_v24 = vpop.f32.mrb[67].mxu1  ;;  %v1403_v11 = vld [vmem:[%s9369_s12 + $0x38] sm:$0xff] }
 0x2ab   : > { %9191 = vrcp.f32 %v1301_v34  ;;  %5778 = vperm.xlu1 %9066, %v9180_v31   ;;  %7342 = vmatprep.mubr.msk.f32.mxu1 %vm9270_vm0, %v9271_v7 }
 0x2ac   : > { %v9182_v47 = vpop.eup %9181  ;;  %v6173_v51 = vmul.f32 -1.442695, %v1107_v43  ;;  %8167 = vmatprep.mubr.msk.f32.mxu0 %vm9270_vm0, %v9271_v7 }
 0x2ad   : > { %v9184_v56 = vpop.eup %9183  ;;  %v1302_v60 = vadd.f32 1.0, %v9182_v47  ;;  %v1111_v1 = vpop.f32.mrb[68].mxu1  ;;  %v4530_v47 = vld [vmem:[%s9369_s12 + $0xcd] sm:$0xff] }
 0x2ae   : > { %9193 = vpow2.f32 %v6173_v51  ;;  %v1112_v49 = vadd.f32 %v10854_v55, %v1111_v1  ;;  %7343 = vmatmul.mubr.msk.f32.gmra.mrb[92].mxu1 %vm491_vm1, %v1400_v29  ;;  %8168 = vmatmul.mubr.msk.f32.gmra.mrb[36].mxu0 %vm491_vm1, %v4526_v33  ;;  %v7169_v30 = vpop.f32.mrb[69].mxu1  ;;  %v1404_v33 = vld [vmem:[%s9369_s12 + $0x40] sm:$0xff] }
 0x2af   : > { %9195 = vrcp.f32 %v1302_v60  ;;  %5783 = vperm.xlu0 %9065, %v9184_v56   ;;  %7345 = vmatprep.mubr.msk.f32.mxu1 %vm9270_vm0, %v9271_v7 }
 0x2b0   : > { %v9186_v54 = vpop.eup %9185  ;;  %v6174_v44 = vmul.f32 -1.442695, %v1112_v49  ;;  %8170 = vmatprep.mubr.msk.f32.mxu0 %vm9270_vm0, %v9271_v7 }
 0x2b1   : > { %v9188_v52 = vpop.eup %9187  ;;  %v1303_v62 = vadd.f32 1.0, %v9186_v54  ;;  %v1116_v13 = vpop.f32.mrb[70].mxu1  ;;  %v4531_v54 = vld [vmem:[%s9369_s12 + $0xd5] sm:$0xff] }
 0x2b2   : > { %9197 = vpow2.f32 %v6174_v44  ;;  %v1117_v15 = vadd.f32 %v10854_v55, %v1116_v13  ;;  %7346 = vmatmul.mubr.msk.f32.gmra.mrb[94].mxu1 %vm491_vm1, %v1401_v8  ;;  %8171 = vmatmul.mubr.msk.f32.gmra.mrb[38].mxu0 %vm491_vm1, %v4527_v36  ;;  %v7172_v14 = vpop.f32.mrb[71].mxu1  ;;  %v1405_v36 = vld [vmem:[%s9369_s12 + $0x48] sm:$0xff] }
 0x2b3   : > { %9199 = vrcp.f32 %v1303_v62  ;;  %5788 = vperm.xlu1 %9066, %v9188_v52   ;;  %7348 = vmatprep.mubr.msk.f32.mxu1 %vm9270_vm0, %v9271_v7 }
 0x2b4   : > { %v9190_v35 = vpop.eup %9189  ;;  %v6175_v39 = vmul.f32 -1.442695, %v1117_v15  ;;  %8173 = vmatprep.mubr.msk.f32.mxu0 %vm9270_vm0, %v9271_v7 }
 0x2b5   : > { %v9192_v45 = vpop.eup %9191  ;;  %v1304_v58 = vadd.f32 1.0, %v9190_v35  ;;  %v1121_v59 = vpop.f32.mrb[72].mxu1  ;;  %v4532_v35 = vld [vmem:[%s9369_s12 + $0xdd] sm:$0xff] }
 0x2b6   : > { %9201 = vpow2.f32 %v6175_v39  ;;  %v1122_v20 = vadd.f32 %v10854_v55, %v1121_v59  ;;  %7349 = vmatmul.mubr.msk.f32.gmra.mrb[96].mxu1 %vm491_vm1, %v1402_v27  ;;  %8174 = vmatmul.mubr.msk.f32.gmra.mrb[40].mxu0 %vm491_vm1, %v4528_v18  ;;  %v7175_v21 = vpop.f32.mrb[73].mxu1  ;;  %v1406_v18 = vld [vmem:[%s9369_s12 + $0x50] sm:$0xff] }
 0x2b7   : > { %9203 = vrcp.f32 %v1304_v58  ;;  %5793 = vperm.xlu0 %9065, %v9192_v45   ;;  %7351 = vmatprep.mubr.msk.f32.mxu1 %vm9270_vm0, %v9271_v7 }
 0x2b8   : > { %v9194_v28 = vpop.eup %9193  ;;  %v6176_v31 = vmul.f32 -1.442695, %v1122_v20  ;;  %8176 = vmatprep.mubr.msk.f32.mxu0 %vm9270_vm0, %v9271_v7 }
 0x2b9   : > { %v9196_v34 = vpop.eup %9195  ;;  %v1305_v3 = vadd.f32 1.0, %v9194_v28  ;;  %v1126_v43 = vpop.f32.mrb[74].mxu1  ;;  %v4533_v28 = vld [vmem:[%s9369_s12 + $0xe5] sm:$0xff] }
 0x2ba   : > { %9205 = vpow2.f32 %v6176_v31  ;;  %v1127_v24 = vadd.f32 %v10854_v55, %v1126_v43  ;;  %7352 = vmatmul.mubr.msk.f32.gmra.mrb[98].mxu1 %vm491_vm1, %v1403_v11  ;;  %8177 = vmatmul.mubr.msk.f32.gmra.mrb[42].mxu0 %vm491_vm1, %v4529_v12  ;;  %v7178_v29 = vpop.f32.mrb[75].mxu1  ;;  %v1407_v12 = vld [vmem:[%s9369_s12 + $0x58] sm:$0xff] }
 0x2bb   : > { %9207 = vrcp.f32 %v1305_v3  ;;  %5798 = vperm.xlu1 %9066, %v9196_v34   ;;  %7354 = vmatprep.mubr.msk.f32.mxu1 %vm9270_vm0, %v9271_v7 }
 0x2bc   : > { %v9198_v51 = vpop.eup %9197  ;;  %v6177_v56 = vmul.f32 -1.442695, %v1127_v24  ;;  %8179 = vmatprep.mubr.msk.f32.mxu0 %vm9270_vm0, %v9271_v7 }
 0x2bd   : > { %v9200_v60 = vpop.eup %9199  ;;  %v1306_v1 = vadd.f32 1.0, %v9198_v51  ;;  %v1131_v49 = vpop.f32.mrb[76].mxu1  ;;  %v4534_v51 = vld [vmem:[%s9369_s12 + $0xed] sm:$0xff] }
 0x2be   : > { %9209 = vpow2.f32 %v6177_v56  ;;  %v1132_v30 = vadd.f32 %v10854_v55, %v1131_v49  ;;  %7355 = vmatmul.mubr.msk.f32.gmra.mrb[100].mxu1 %vm491_vm1, %v1404_v33  ;;  %8180 = vmatmul.mubr.msk.f32.gmra.mrb[44].mxu0 %vm491_vm1, %v4530_v47  ;;  %v7181_v8 = vpop.f32.mrb[77].mxu1  ;;  %v1408_v47 = vld [vmem:[%s9369_s12 + $0x60] sm:$0xff]  ;;  %v1409_v49 = vld [vmem:[%s9369_s12 + $0x68] sm:$0xff] }
 0x2bf   : > { %9211 = vrcp.f32 %v1306_v1  ;;  %5803 = vperm.xlu0 %9065, %v9200_v60   ;;  %7357 = vmatprep.mubr.msk.f32.mxu1 %vm9270_vm0, %v9271_v7 }
 0x2c0   : > { %v9202_v44 = vpop.eup %9201  ;;  %v6178_v52 = vmul.f32 -1.442695, %v1132_v30  ;;  %8182 = vmatprep.mubr.msk.f32.mxu0 %vm9270_vm0, %v9271_v7  ;;  %v4535_v30 = vld [vmem:[%s9369_s12 + $0xf5] sm:$0xff] }
 0x2c1   : > { %v9204_v62 = vpop.eup %9203  ;;  %v1307_v13 = vadd.f32 1.0, %v9202_v44  ;;  %v1136_v15 = vpop.f32.mrb[78].mxu1  ;;  %v1410_v44 = vld [vmem:[%s9369_s12 + $0x70] sm:$0xff] }
 0x2c2   : > { %9213 = vpow2.f32 %v6178_v52  ;;  %v1137_v14 = vadd.f32 %v10854_v55, %v1136_v15  ;;  %7358 = vmatmul.mubr.msk.f32.gmra.mrb[102].mxu1 %vm491_vm1, %v1405_v36  ;;  %8183 = vmatmul.mubr.msk.f32.gmra.mrb[46].mxu0 %vm491_vm1, %v4531_v54  ;;  %v7184_v27 = vpop.f32.mrb[79].mxu1  ;;  %v4536_v52 = vld [vmem:[%s9369_s12 + $0xfd] sm:$0xff] }
 0x2c3   : > { %9215 = vrcp.f32 %v1307_v13  ;;  %5808 = vperm.xlu1 %9066, %v9204_v62   ;;  %7360 = vmatprep.mubr.msk.f32.mxu1 %vm9270_vm0, %v9271_v7  ;;  %v4537_v27 = vld [vmem:[%s9369_s12 + $0x105] sm:$0xff] }
 0x2c4   : > { %v9206_v39 = vpop.eup %9205  ;;  %v6179_v45 = vmul.f32 -1.442695, %v1137_v14  ;;  %8185 = vmatprep.mubr.msk.f32.mxu0 %vm9270_vm0, %v9271_v7  ;;  %v1411_v14 = vld [vmem:[%s9369_s12 + $0x78] sm:$0xff] }
 0x2c5   : > { %v9208_v58 = vpop.eup %9207  ;;  %v1308_v59 = vadd.f32 1.0, %v9206_v39  ;;  %v1141_v20 = vpop.f32.mrb[80].mxu1 }
 0x2c6   : > { %9217 = vpow2.f32 %v6179_v45  ;;  %v1142_v21 = vadd.f32 %v10854_v55, %v1141_v20  ;;  %7361 = vmatmul.mubr.msk.f32.gmra.mrb[104].mxu1 %vm491_vm1, %v1406_v18  ;;  %8186 = vmatmul.mubr.msk.f32.gmra.mrb[48].mxu0 %vm491_vm1, %v4532_v35  ;;  %v7187_v11 = vpop.f32.mrb[81].mxu1  ;;  %v1412_v45 = vld [vmem:[%s9369_s12 + $0x80] sm:$0xff]  ;;  %v1413_v20 = vld [vmem:[%s9369_s12 + $0x88] sm:$0xff] }
 0x2c7   : > { %9219 = vrcp.f32 %v1308_v59  ;;  %5813 = vperm.xlu0 %9065, %v9208_v58   ;;  %7363 = vmatprep.mubr.msk.f32.mxu1 %vm9270_vm0, %v9271_v7  ;;  %v4538_v58 = vld [vmem:[%s9369_s12 + $0x10d] sm:$0xff] }
 0x2c8   : > { %v9210_v31 = vpop.eup %9209  ;;  %v6180_v34 = vmul.f32 -1.442695, %v1142_v21  ;;  %8188 = vmatprep.mubr.msk.f32.mxu0 %vm9270_vm0, %v9271_v7  ;;  %v4539_v21 = vld [vmem:[%s9369_s12 + $0x115] sm:$0xff] }
 0x2c9   : > { %v9212_v3 = vpop.eup %9211  ;;  %v1309_v43 = vadd.f32 1.0, %v9210_v31  ;;  %v1146_v24 = vpop.f32.mrb[82].mxu1 }
 0x2ca   : > { %9221 = vpow2.f32 %v6180_v34  ;;  %v1147_v29 = vadd.f32 %v10854_v55, %v1146_v24  ;;  %7364 = vmatmul.mubr.msk.f32.gmra.mrb[106].mxu1 %vm491_vm1, %v1407_v12  ;;  %8189 = vmatmul.mubr.msk.f32.gmra.mrb[50].mxu0 %vm491_vm1, %v4533_v28  ;;  %v7190_v33 = vpop.f32.mrb[83].mxu1  ;;  %v1414_v12 = vld [vmem:[%s9369_s12 + $0x90] sm:$0xff]  ;;  %v4540_v28 = vld [vmem:[%s9369_s12 + $0x11d] sm:$0xff]  ;;  %v11002_v31 = vpop.permute.xlu0 %5653 }
 0x2cb   : > { %9223 = vrcp.f32 %v1309_v43  ;;  %5818 = vperm.xlu1 %9066, %v9212_v3   ;;  %7366 = vmatprep.mubr.msk.f32.mxu1 %vm9270_vm0, %v9271_v7  ;;  %v1415_v3 = vld [vmem:[%s9369_s12 + $0x98] sm:$0xff]  ;;  %v4541_v43 = vld [vmem:[%s9369_s12 + $0x125] sm:$0xff] }
 0x2cc   : > { %v9214_v56 = vpop.eup %9213  ;;  %v6181_v60 = vmul.f32 -1.442695, %v1147_v29  ;;  %8191 = vmatprep.mubr.msk.f32.mxu0 %vm9270_vm0, %v9271_v7  ;;  %v1416_v33 = vld [vmem:[%s9369_s12 + $0xa0] sm:$0xff] }
 0x2cd   : > { %v9216_v55 = vpop.eup %9215  ;;  %v1310_v1 = vadd.f32 1.0, %v9214_v56 }
 0x2ce   : > { %9225 = vpow2.f32 %v6181_v60  ;;  %7367 = vmatmul.mubr.msk.f32.gmra.mrb[108].mxu1 %vm491_vm1, %v1408_v47  ;;  %8192 = vmatmul.mubr.msk.f32.gmra.mrb[52].mxu0 %vm491_vm1, %v4534_v51  ;;  %v11012_v24 = vpop.permute.xlu1 %5663  ;;  %v11016_v29 = vpop.permute.xlu0 %5658  ;;  %v4542_v47 = vld [vmem:[%s9369_s12 + $0x12d] sm:$0xff] }
 0x2cf   : > { %9227 = vrcp.f32 %v1310_v1  ;;  %5823 = vperm.xlu0 %9065, %v9216_v55   ;;  %7369 = vmatprep.mubr.msk.f32.mxu1 %vm9270_vm0, %v9271_v7  ;;  %v1417_v60 = vld [vmem:[%s9369_s12 + $0xa8] sm:$0xff]  ;;  %v4543_v55 = vld [vmem:[%s9369_s12 + $0x135] sm:$0xff] }
 0x2d0   : > { %v9218_v8 = vpop.eup %9217  ;;  %8194 = vmatprep.mubr.msk.f32.mxu0 %vm9270_vm0, %v9271_v7 }
 0x2d1   : > { %v9220_v36 = vpop.eup %9219  ;;  %v1311_v54 = vadd.f32 1.0, %v9218_v8  ;;  %v4544_v8 = vld [vmem:[%s9369_s12 + $0x13d] sm:$0xff] }
 0x2d2   : > { %7370 = vmatmul.mubr.msk.f32.gmra.mrb[110].mxu1 %vm491_vm1, %v1409_v49  ;;  %8195 = vmatmul.mubr.msk.f32.gmra.mrb[54].mxu0 %vm491_vm1, %v4535_v30  ;;  %v11026_v51 = vpop.permute.xlu1 %5668  ;;  %v1418_v30 = vld [vmem:[%s9369_s12 + $0xb0] sm:$0xff] }
 0x2d3   : > { %9229 = vrcp.f32 %v1311_v54  ;;  %5828 = vperm.xlu1 %9066, %v9220_v36   ;;  %7372 = vmatprep.mubr.msk.f32.mxu1 %vm9270_vm0, %v9271_v7 }
 0x2d4   : > { %v9222_v62 = vpop.eup %9221  ;;  %8197 = vmatprep.mubr.msk.f32.mxu0 %vm9270_vm0, %v9271_v7 }
 0x2d5   : > { %v9224_v13 = vpop.eup %9223  ;;  %v1312_v15 = vadd.f32 1.0, %v9222_v62 }
 0x2d6   : > { %7373 = vmatmul.mubr.msk.f32.gmra.mrb[112].mxu1 %vm491_vm1, %v1410_v44  ;;  %8198 = vmatmul.mubr.msk.f32.gmra.mrb[56].mxu0 %vm491_vm1, %v4536_v52  ;;  %v11028_v56 = vpop.permute.xlu0 %5673  ;;  %v1419_v44 = vld [vmem:[%s9369_s12 + $0xb8] sm:$0xff]  ;;  %v4545_v52 = vld [vmem:[%s9369_s12 + $0x145] sm:$0xff] }
 0x2d7   : > { %9231 = vrcp.f32 %v1312_v15  ;;  %5833 = vperm.xlu0 %9065, %v9224_v13   ;;  %7375 = vmatprep.mubr.msk.f32.mxu1 %vm9270_vm0, %v9271_v7  ;;  %v1420_v15 = vld [vmem:[%s9369_s12 + $0xc0] sm:$0xff] }
 0x2d8   : > { %v9226_v18 = vpop.eup %9225  ;;  %8200 = vmatprep.mubr.msk.f32.mxu0 %vm9270_vm0, %v9271_v7 }
 0x2d9   : > { %v9228_v35 = vpop.eup %9227  ;;  %v1313_v39 = vadd.f32 1.0, %v9226_v18 }
 0x2da   : > { %7376 = vmatmul.mubr.msk.f32.gmra.mrb[114].mxu1 %vm491_vm1, %v1411_v14  ;;  %8201 = vmatmul.mubr.msk.f32.gmra.mrb[58].mxu0 %vm491_vm1, %v4537_v27  ;;  %v11038_v1 = vpop.permute.xlu1 %5678  ;;  %v4546_v14 = vld [vmem:[%s9369_s12 + $0x14d] sm:$0xff] }
 0x2db   : > { %9233 = vrcp.f32 %v1313_v39  ;;  %5838 = vperm.xlu1 %9066, %v9228_v35   ;;  %7378 = vmatprep.mubr.msk.f32.mxu1 %vm9270_vm0, %v9271_v7  ;;  %v1421_v35 = vld [vmem:[%s9369_s12 + $0xc8] sm:$0xff]  ;;  %v4547_v39 = vld [vmem:[%s9369_s12 + $0x155] sm:$0xff] }
 0x2dc   : > { %8203 = vmatprep.mubr.msk.f32.mxu0 %vm9270_vm0, %v9271_v7 }
 0x2dd   : > { %v9230_v59 = vpop.eup %9229 }
 0x2de   : > { %7379 = vmatmul.mubr.msk.f32.gmra.mrb[116].mxu1 %vm491_vm1, %v1412_v45  ;;  %8204 = vmatmul.mubr.msk.f32.gmra.mrb[60].mxu0 %vm491_vm1, %v4538_v58  ;;  %v11040_v49 = vpop.permute.xlu0 %5683 }
 0x2df   : > { %5843 = vperm.xlu0 %9065, %v9230_v59   ;;  %7381 = vmatprep.mubr.msk.f32.mxu1 %vm9270_vm0, %v9271_v7  ;;  %v1422_v59 = vld [vmem:[%s9369_s12 + $0xd0] sm:$0xff] }
 0x2e0   : > { %8206 = vmatprep.mubr.msk.f32.mxu0 %vm9270_vm0, %v9271_v7 }
 0x2e1   : > { %v9232_v11 = vpop.eup %9231 }
 0x2e2   : > { %7382 = vmatmul.mubr.msk.f32.gmra.mrb[118].mxu1 %vm491_vm1, %v1413_v20  ;;  %8207 = vmatmul.mubr.msk.f32.gmra.mrb[62].mxu0 %vm491_vm1, %v4539_v21  ;;  %v11050_v36 = vpop.permute.xlu1 %5688  ;;  %v4548_v20 = vld [vmem:[%s9369_s12 + $0x15d] sm:$0xff] }
 0x2e3   : > { %5848 = vperm.xlu1 %9066, %v9232_v11   ;;  %7384 = vmatprep.mubr.msk.f32.mxu1 %vm9270_vm0, %v9271_v7 }
 0x2e4   : > { %8209 = vmatprep.mubr.msk.f32.mxu0 %vm9270_vm0, %v9271_v7 }
 0x2e5   : > { %v9234_v34 = vpop.eup %9233 }
 0x2e6   : > { %7385 = vmatmul.mubr.msk.f32.gmra.mrb[120].mxu1 %vm491_vm1, %v1414_v12  ;;  %8210 = vmatmul.mubr.msk.f32.gmra.mrb[64].mxu0 %vm491_vm1, %v4540_v28  ;;  %v11052_v54 = vpop.permute.xlu0 %5693  ;;  %v9236_v12 = vld [vmem:[%s10507_s28 + $0x80] sm:$0xff] }
 0x2e7   : > { %5853 = vperm.xlu0 %9065, %v9234_v34   ;;  %7387 = vmatprep.mubr.msk.f32.mxu1 %vm9270_vm0, %v9271_v7  ;;  %v1423_v34 = vld [vmem:[%s9369_s12 + $0xd8] sm:$0xff] }
 0x2e8   : > { %8212 = vmatprep.mubr.msk.f32.mxu0 %vm9270_vm0, %v9271_v7 }
 0x2ea   : > { %7388 = vmatmul.mubr.msk.f32.gmra.mrb[122].mxu1 %vm491_vm1, %v1415_v3  ;;  %8213 = vmatmul.mubr.msk.f32.gmra.mrb[66].mxu0 %vm491_vm1, %v4541_v43  ;;  %v11062_v62 = vpop.permute.xlu1 %5698  ;;  %v4549_v3 = vld [vmem:[%s9369_s12 + $0x165] sm:$0xf] }
 0x2eb   : > { %7390 = vmatprep.mubr.msk.f32.mxu1 %vm9270_vm0, %v9271_v7  ;;  %8215 = vmatprep.mubr.msk.f32.mxu0 %vm9270_vm0, %v9271_v7 }
 0x2ee   : > { %7391 = vmatmul.mubr.msk.f32.gmra.mrb[124].mxu1 %vm491_vm1, %v1416_v33  ;;  %8216 = vmatmul.mubr.msk.f32.gmra.mrb[68].mxu0 %vm491_vm1, %v4542_v47  ;;  %v11064_v13 = vpop.permute.xlu0 %5703  ;;  %v9237_v47 = vld [vmem:[%s10507_s28 + $0x88] sm:$0xff] }
 0x2ef   : > { %7393 = vmatprep.mubr.msk.f32.mxu1 %vm9270_vm0, %v9271_v7  ;;  %8218 = vmatprep.mubr.msk.f32.mxu0 %vm9270_vm0, %v9271_v7 }
 0x2f2   : > { %7394 = vmatmul.mubr.msk.f32.gmra.mrb[126].mxu1 %vm491_vm1, %v1417_v60  ;;  %8219 = vmatmul.mubr.msk.f32.gmra.mrb[70].mxu0 %vm491_vm1, %v4543_v55  ;;  %v11074_v27 = vpop.permute.xlu1 %5708  ;;  %v1424_v55 = vld [vmem:[%s9369_s12 + $0xe0] sm:$0xff] }
 0x2f3   : > { %7396 = vmatprep.mubr.msk.f32.mxu1 %vm9270_vm0, %v9271_v7  ;;  %8221 = vmatprep.mubr.msk.f32.mxu0 %vm9270_vm0, %v9271_v7 }
 0x2f6   : > { %7397 = vmatmul.mubr.msk.f32.gmra.mrb[128].mxu1 %vm491_vm1, %v1418_v30  ;;  %8222 = vmatmul.mubr.msk.f32.gmra.mrb[72].mxu0 %vm491_vm1, %v4544_v8  ;;  %v11076_v18 = vpop.permute.xlu0 %5713  ;;  %v4989_v30 = vld [vmem:[%s9369_s12 + $0x26] sm:$0xff] }
 0x2f7   : > { %7399 = vmatprep.mubr.msk.f32.mxu1 %vm9270_vm0, %v9271_v7  ;;  %8224 = vmatprep.mubr.msk.f32.mxu0 %vm9270_vm0, %v9271_v7 }
 0x2fa   : > { %7400 = vmatmul.mubr.msk.f32.gmra.mrb[130].mxu1 %vm491_vm1, %v1419_v44  ;;  %8225 = vmatmul.mubr.msk.f32.gmra.mrb[74].mxu0 %vm491_vm1, %v4545_v52  ;;  %v11086_v45 = vpop.permute.xlu1 %5718  ;;  %v9238_v44 = vld [vmem:[%s10507_s28 + $0x90] sm:$0xff] }
 0x2fb   : > { %7402 = vmatprep.mubr.msk.f32.mxu1 %vm9270_vm0, %v9271_v7  ;;  %8227 = vmatprep.mubr.msk.f32.mxu0 %vm9270_vm0, %v9271_v7 }
 0x2fe   : > { %7403 = vmatmul.mubr.msk.f32.gmra.mrb[132].mxu1 %vm491_vm1, %v1420_v15  ;;  %8228 = vmatmul.mubr.msk.f32.gmra.mrb[76].mxu0 %vm491_vm1, %v4546_v14  ;;  %v11088_v58 = vpop.permute.xlu0 %5723  ;;  %v1425_v15 = vld [vmem:[%s9369_s12 + $0xe8] sm:$0xff] }
 0x2ff   : > { %7405 = vmatprep.mubr.msk.f32.mxu1 %vm9270_vm0, %v9271_v7  ;;  %8230 = vmatprep.mubr.msk.f32.mxu0 %vm9270_vm0, %v9271_v7  ;;  %v4990_v14 = vld [vmem:[%s9369_s12 + $0x2e] sm:$0xff] }
 0x302   : > { %7406 = vmatmul.mubr.msk.f32.gmra.mrb[134].mxu1 %vm491_vm1, %v1421_v35  ;;  %8231 = vmatmul.mubr.msk.f32.gmra.mrb[78].mxu0 %vm491_vm1, %v4547_v39  ;;  %v11098_v21 = vpop.permute.xlu1 %5728  ;;  %v9239_v39 = vld [vmem:[%s10507_s28 + $0x98] sm:$0xff] }
 0x303   : > { %7408 = vmatprep.mubr.msk.f32.mxu1 %vm9270_vm0, %v9271_v7  ;;  %8233 = vmatprep.mubr.msk.f32.mxu0 %vm9270_vm0, %v9271_v7 }
 0x306   : > { %v5734_v11 = vpop.permute.xlu0 %5733  ;;  %7409 = vmatmul.mubr.msk.f32.gmra.mrb[136].mxu1 %vm491_vm1, %v1422_v59  ;;  %8234 = vmatmul.mubr.msk.f32.gmra.mrb[80].mxu0 %vm491_vm1, %v4548_v20  ;;  %v1426_v20 = vld [vmem:[%s9369_s12 + $0xf0] sm:$0xff] }
 0x307   : > { %v5872_v28 = vmul.f32 %v9236_v12, %v5734_v11  ;;  %7411 = vmatprep.mubr.msk.f32.mxu1 %vm9270_vm0, %v9271_v7  ;;  %8236 = vmatprep.mubr.msk.f32.mxu0 %vm9270_vm0, %v9271_v7  ;;  %v4991_v11 = vld [vmem:[%s9369_s12 + $0x36] sm:$0xff] }
 0x309   : > { %v11110_v43 = vadd.f32 %v5872_v28, %v10527_v32  ;;  %v9240_v28 = vld [vmem:[%s10507_s28 + $0xa0] sm:$0xff] }
 0x30a   : > { %v5739_v33 = vpop.permute.xlu1 %5738  ;;  %7412 = vmatmul.mubr.msk.f32.gmra.mrb[138].mxu1 %vm491_vm1, %v1423_v34  ;;  %8237 = vmatmul.mubr.msk.f32.gmra.mrb[82].mxu0 %vm491_vm1, %v4549_v3  ;;  %v1427_v3 = vld [vmem:[%s9369_s12 + $0xf8] sm:$0xff] }
 0x30b   : > { %v5873_v60 = vmul.f32 %v9237_v47, %v5739_v33  ;;  %7414 = vmatprep.mubr.msk.f32.mxu1 %vm9270_vm0, %v9271_v7  ;;  %8247 = vmatprep.mubr.msk.f32.mxu0 %vm9270_vm0, %v9271_v7  ;;  %v4992_v33 = vld [vmem:[%s9369_s12 + $0x3e] sm:$0xff] }
 0x30d   : > { %v11122_v32 = vadd.f32 %v5873_v60, %v10537_v19  ;;  %v9241_v60 = vld [vmem:[%s10507_s28 + $0xa8] sm:$0xff] }
 0x30e   : > { %v5744_v8 = vpop.permute.xlu0 %5743  ;;  %7415 = vmatmul.mubr.msk.f32.gmra.mrb[140].mxu1 %vm491_vm1, %v1424_v55  ;;  %8248 = vmatmul.mubr.msk.f32.vlgmr.msra.gmra.mrb[2].mxu0 %vm491_vm1, %v4989_v30  ;;  %v1428_v30 = vld [vmem:[%s9369_s12 + $0x100] sm:$0xff] }
 0x30f   : > { %12273 = vst [vmem:[#allocation3_spill] sm:$0xff] %v11122_v32  ;;  %v5874_v52 = vmul.f32 %v9238_v44, %v5744_v8  ;;  %7417 = vmatprep.mubr.msk.f32.mxu1 %vm9270_vm0, %v9271_v7  ;;  %8250 = vmatprep.mubr.msk.f32.mxu0 %vm9270_vm0, %v9271_v7  ;;  %v4993_v8 = vld [vmem:[%s9369_s12 + $0x46] sm:$0xff] }
 0x311   : > { %v11134_v19 = vadd.f32 %v5874_v52, %v10540_v22  ;;  %v9242_v52 = vld [vmem:[%s10507_s28 + $0xb0] sm:$0xff] }
 0x312   : > { %v5749_v35 = vpop.permute.xlu1 %5748  ;;  %7418 = vmatmul.mubr.msk.f32.gmra.mrb[142].mxu1 %vm491_vm1, %v1425_v15  ;;  %8251 = vmatmul.mubr.msk.f32.gmra.mrb[4].mxu0 %vm491_vm1, %v4990_v14  ;;  %v1429_v14 = vld [vmem:[%s9369_s12 + $0x108] sm:$0xff] }
 0x313   : > { %12274 = vst [vmem:[#allocation4_spill] sm:$0xff] %v11134_v19  ;;  %v5875_v59 = vmul.f32 %v9239_v39, %v5749_v35  ;;  %7420 = vmatprep.mubr.msk.f32.mxu1 %vm9270_vm0, %v9271_v7  ;;  %8253 = vmatprep.mubr.msk.f32.mxu0 %vm9270_vm0, %v9271_v7  ;;  %v4994_v35 = vld [vmem:[%s9369_s12 + $0x4e] sm:$0xff] }
 0x315   : > { %v11146_v22 = vadd.f32 %v5875_v59, %v10549_v61  ;;  %v9243_v59 = vld [vmem:[%s10507_s28 + $0xb8] sm:$0xff] }
 0x316   : > { %v5754_v12 = vpop.permute.xlu0 %5753  ;;  %7421 = vmatmul.mubr.msk.f32.gmra.mrb[144].mxu1 %vm491_vm1, %v1426_v20  ;;  %8254 = vmatmul.mubr.msk.f32.gmra.mrb[6].mxu0 %vm491_vm1, %v4991_v11  ;;  %v1430_v11 = vld [vmem:[%s9369_s12 + $0x110] sm:$0xff] }
 0x317   : > { %12275 = vst [vmem:[#allocation5_spill] sm:$0xff] %v11146_v22  ;;  %v5876_v34 = vmul.f32 %v9240_v28, %v5754_v12  ;;  %7423 = vmatprep.mubr.msk.f32.mxu1 %vm9270_vm0, %v9271_v7  ;;  %8256 = vmatprep.mubr.msk.f32.mxu0 %vm9270_vm0, %v9271_v7  ;;  %v4995_v12 = vld [vmem:[%s9369_s12 + $0x56] sm:$0xff] }
 0x319   : > { %v11158_v61 = vadd.f32 %v5876_v34, %v10552_v37  ;;  %v9244_v34 = vld [vmem:[%s10507_s28 + $0xc0] sm:$0xff] }
 0x31a   : > { %v5759_v47 = vpop.permute.xlu1 %5758  ;;  %7424 = vmatmul.mubr.msk.f32.gmra.mrb[146].mxu1 %vm491_vm1, %v1427_v3  ;;  %8257 = vmatmul.mubr.msk.f32.gmra.mrb[8].mxu0 %vm491_vm1, %v4992_v33  ;;  %v1431_v33 = vld [vmem:[%s9369_s12 + $0x118] sm:$0xff] }
 0x31b   : > { %12276 = vst [vmem:[#allocation6_spill] sm:$0xff] %v11158_v61  ;;  %v5877_v55 = vmul.f32 %v9241_v60, %v5759_v47  ;;  %7426 = vmatprep.mubr.msk.f32.mxu1 %vm9270_vm0, %v9271_v7  ;;  %8259 = vmatprep.mubr.msk.f32.mxu0 %vm9270_vm0, %v9271_v7  ;;  %v4996_v47 = vld [vmem:[%s9369_s12 + $0x5e] sm:$0xff] }
 0x31d   : > { %v11170_v37 = vadd.f32 %v5877_v55, %v10555_v40  ;;  %v9245_v55 = vld [vmem:[%s10507_s28 + $0xc8] sm:$0xff] }
 0x31e   : > { %v5764_v44 = vpop.permute.xlu0 %5763  ;;  %7427 = vmatmul.mubr.msk.f32.gmra.mrb[148].mxu1 %vm491_vm1, %v1428_v30  ;;  %8260 = vmatmul.mubr.msk.f32.gmra.mrb[10].mxu0 %vm491_vm1, %v4993_v8  ;;  %v1432_v8 = vld [vmem:[%s9369_s12 + $0x120] sm:$0xff] }
 0x31f   : > { %12277 = vst [vmem:[#allocation7_spill] sm:$0xff] %v11170_v37  ;;  %v5878_v15 = vmul.f32 %v9242_v52, %v5764_v44  ;;  %7429 = vmatprep.mubr.msk.f32.mxu1 %vm9270_vm0, %v9271_v7  ;;  %8262 = vmatprep.mubr.msk.f32.mxu0 %vm9270_vm0, %v9271_v7  ;;  %v4997_v44 = vld [vmem:[%s9369_s12 + $0x66] sm:$0xff] }
 0x321   : > { %v11182_v40 = vadd.f32 %v5878_v15, %v10562_v46  ;;  %v9246_v15 = vld [vmem:[%s10507_s28 + $0xd0] sm:$0xff] }
 0x322   : > { %v5769_v39 = vpop.permute.xlu1 %5768  ;;  %7430 = vmatmul.mubr.msk.f32.gmra.mrb[150].mxu1 %vm491_vm1, %v1429_v14  ;;  %8263 = vmatmul.mubr.msk.f32.gmra.mrb[12].mxu0 %vm491_vm1, %v4994_v35  ;;  %v1433_v35 = vld [vmem:[%s9369_s12 + $0x128] sm:$0xff] }
 0x323   : > { %12278 = vst [vmem:[#allocation8_spill] sm:$0xff] %v11182_v40  ;;  %v5879_v20 = vmul.f32 %v9243_v59, %v5769_v39  ;;  %7432 = vmatprep.mubr.msk.f32.mxu1 %vm9270_vm0, %v9271_v7  ;;  %8265 = vmatprep.mubr.msk.f32.mxu0 %vm9270_vm0, %v9271_v7  ;;  %v4998_v39 = vld [vmem:[%s9369_s12 + $0x6e] sm:$0xff] }
 0x325   : > { %v11194_v46 = vadd.f32 %v5879_v20, %v10565_v38  ;;  %v9247_v20 = vld [vmem:[%s10507_s28 + $0xd8] sm:$0xff] }
 0x326   : > { %v5774_v28 = vpop.permute.xlu0 %5773  ;;  %7433 = vmatmul.mubr.msk.f32.gmra.mrb[152].mxu1 %vm491_vm1, %v1430_v11  ;;  %8266 = vmatmul.mubr.msk.f32.gmra.mrb[14].mxu0 %vm491_vm1, %v4995_v12  ;;  %v1434_v12 = vld [vmem:[%s9369_s12 + $0x130] sm:$0xff] }
 0x327   : > { %12279 = vst [vmem:[#allocation9_spill] sm:$0xff] %v11194_v46  ;;  %v5880_v3 = vmul.f32 %v9244_v34, %v5774_v28  ;;  %7435 = vmatprep.mubr.msk.f32.mxu1 %vm9270_vm0, %v9271_v7  ;;  %8268 = vmatprep.mubr.msk.f32.mxu0 %vm9270_vm0, %v9271_v7  ;;  %v4999_v28 = vld [vmem:[%s9369_s12 + $0x76] sm:$0xff]  ;;  %v2313_v46 = vld [vmem:[%s9369_s12 + $0x142] sm:$0xf] }
 0x329   : > { %v11206_v38 = vadd.f32 %v5880_v3, %v10568_v42  ;;  %v9248_v3 = vld [vmem:[%s10507_s28 + $0xe0] sm:$0xff] }
 0x32a   : > { %v5779_v60 = vpop.permute.xlu1 %5778  ;;  %7436 = vmatmul.mubr.msk.f32.gmra.mrb[154].mxu1 %vm491_vm1, %v1431_v33  ;;  %8269 = vmatmul.mubr.msk.f32.gmra.mrb[16].mxu0 %vm491_vm1, %v4996_v47  ;;  %v1435_v47 = vld [vmem:[%s9369_s12 + $0x138] sm:$0xff] }
 0x32b   : > { %12280 = vst [vmem:[#allocation10_spill] sm:$0xff] %v11206_v38  ;;  %v5881_v30 = vmul.f32 %v9245_v55, %v5779_v60  ;;  %7438 = vmatprep.mubr.msk.f32.mxu1 %vm9270_vm0, %v9271_v7  ;;  %8271 = vmatprep.mubr.msk.f32.mxu0 %vm9270_vm0, %v9271_v7  ;;  %v5000_v60 = vld [vmem:[%s9369_s12 + $0x7e] sm:$0xff] }
 0x32c   : > { %v11709_v38 = vld [vmem:[%s9369_s12 + $0x13a] sm:$0xff] }
 0x32d   : > { %v11218_v42 = vadd.f32 %v5881_v30, %v10574_v6  ;;  %v9249_v30 = vld [vmem:[%s10507_s28 + $0xe8] sm:$0xff] }
 0x32e   : > { %v5784_v52 = vpop.permute.xlu0 %5783  ;;  %7439 = vmatmul.mubr.msk.f32.gmra.mrb[156].mxu1 %vm491_vm1, %v1432_v8  ;;  %8272 = vmatmul.mubr.msk.f32.gmra.mrb[18].mxu0 %vm491_vm1, %v4997_v44  ;;  %v1436_v44 = vld [vmem:[%s9369_s12 + $0x140] sm:$0xf] }
 0x32f   : > { %12281 = vst [vmem:[#allocation11_spill] sm:$0xff] %v11218_v42  ;;  %v5882_v14 = vmul.f32 %v9246_v15, %v5784_v52  ;;  %7441 = vmatprep.mubr.msk.f32.mxu1 %vm9270_vm0, %v9271_v7  ;;  %8274 = vmatprep.mubr.msk.f32.mxu0 %vm9270_vm0, %v9271_v7  ;;  %v5001_v52 = vld [vmem:[%s9369_s12 + $0x86] sm:$0xff]  ;;  %v11702_v42 = vld [vmem:[%s9369_s12 + $0x132] sm:$0xff] }
 0x330   : > { %v6314_v15 = vld [vmem:[%s12269_s8 + $0x68] sm:$0xff] }
 0x331   : > { %v11230_v6 = vadd.f32 %v5882_v14, %v10577_v17 }
 0x332   : > { %v5789_v59 = vpop.permute.xlu1 %5788  ;;  %7442 = vmatmul.mubr.msk.f32.gmra.mrb[158].mxu1 %vm491_vm1, %v1433_v35  ;;  %8275 = vmatmul.mubr.msk.f32.gmra.mrb[20].mxu0 %vm491_vm1, %v4998_v39  ;;  %v9250_v39 = vld [vmem:[%s10507_s28 + $0xf0] sm:$0xff] }
 0x333   : > { %12282 = vst [vmem:[#allocation12_spill] sm:$0xff] %v11230_v6  ;;  %v5883_v11 = vmul.f32 %v9247_v20, %v5789_v59  ;;  %7444 = vmatprep.mubr.msk.f32.mxu1 %vm9270_vm0, %v9271_v7  ;;  %8277 = vmatprep.mubr.msk.f32.mxu0 %vm9270_vm0, %v9271_v7  ;;  %v2273_v20 = vld [vmem:[%s9369_s12 + $0x2] sm:$0xff]  ;;  %v11695_v6 = vld [vmem:[%s9369_s12 + $0x12a] sm:$0xff] }
 0x335   : > { %v11242_v17 = vadd.f32 %v5883_v11, %v10580_v23  ;;  %v5002_v11 = vld [vmem:[%s9369_s12 + $0x8e] sm:$0xff] }
 0x336   : > { %v5794_v34 = vpop.permute.xlu0 %5793  ;;  %7445 = vmatmul.mubr.msk.f32.gmra.mrb[160].mxu1 %vm491_vm1, %v1434_v12  ;;  %8278 = vmatmul.mubr.msk.f32.gmra.mrb[22].mxu0 %vm491_vm1, %v4999_v28  ;;  %v6315_v28 = vld [vmem:[%s12269_s8 + $0x70] sm:$0xff] }
 0x337   : > { %12283 = vst [vmem:[#allocation13_spill] sm:$0xff] %v11242_v17  ;;  %v5884_v33 = vmul.f32 %v9248_v3, %v5794_v34  ;;  %7447 = vmatprep.mubr.msk.f32.mxu1 %vm9270_vm0, %v9271_v7  ;;  %8280 = vmatprep.mubr.msk.f32.mxu0 %vm9270_vm0, %v9271_v7  ;;  %v6316_v34 = vld [vmem:[%s12269_s8 + $0x78] sm:$0xff]  ;;  %v11688_v17 = vld [vmem:[%s9369_s12 + $0x122] sm:$0xff] }
 0x339   : > { %v11254_v23 = vadd.f32 %v5884_v33, %v10590_v63  ;;  %v6313_v63 = vld [vmem:[%s12269_s8 + $0x60] sm:$0xff]  ;;  %v9251_v33 = vld [vmem:[%s10507_s28 + $0xf8] sm:$0xff] }
 0x33a   : > { %v5799_v55 = vpop.permute.xlu1 %5798  ;;  %7448 = vmatmul.mubr.msk.f32.gmra.mrb[162].mxu1 %vm491_vm1, %v1435_v47  ;;  %8281 = vmatmul.mubr.msk.f32.gmra.mrb[24].mxu0 %vm491_vm1, %v5000_v60  ;;  %v5003_v60 = vld [vmem:[%s9369_s12 + $0x96] sm:$0xff] }
 0x33b   : > { %12284 = vst [vmem:[#allocation14_spill] sm:$0xff] %v11254_v23  ;;  %v5885_v8 = vmul.f32 %v9249_v30, %v5799_v55  ;;  %7450 = vmatprep.mubr.msk.f32.mxu1 %vm9270_vm0, %v9271_v7  ;;  %8283 = vmatprep.mubr.msk.f32.mxu0 %vm9270_vm0, %v9271_v7  ;;  %v8404_v55 = vpack.c.bf16 %v6316_v34, %v6315_v28  ;;  %v11343_v34 = vld [vmem:[%s9369_s12 + $0x22] sm:$0xff]  ;;  %v11681_v23 = vld [vmem:[%s9369_s12 + $0x11a] sm:$0xff] }
 0x33d   : > { %v11272_v14 = vadd.f32 %v5885_v8, %v10593_v2  ;;  %v8401_v2 = vpack.c.bf16 %v6314_v15, %v6313_v63  ;;  %v5004_v63 = vld [vmem:[%s9369_s12 + $0x9e] sm:$0xff] }
 0x33e   : > { %v5804_v35 = vpop.permute.xlu0 %5803  ;;  %7451 = vmatmul.mubr.msk.f32.gmra.mrb[164].mxu1 %vm491_vm1, %v1436_v44  ;;  %8284 = vmatmul.mubr.msk.f32.gmra.mrb[26].mxu0 %vm491_vm1, %v5001_v52  ;;  %v9252_v44 = vld [vmem:[%s10507_s28 + $0x100] sm:$0xff] }
 0x33f   : > { %12285 = vst [vmem:[#allocation15_spill] sm:$0xff] %v11272_v14  ;;  %v5886_v59 = vmul.f32 %v9250_v39, %v5804_v35  ;;  %7461 = vmatprep.mubr.msk.f32.mxu1 %vm9270_vm0, %v9271_v7  ;;  %8286 = vmatprep.mubr.msk.f32.mxu0 %vm9270_vm0, %v9271_v7  ;;  %v9253_v35 = vld [vmem:[%s10507_s28 + $0x108] sm:$0xff]  ;;  %v11674_v14 = vld [vmem:[%s9369_s12 + $0x112] sm:$0xff] }
 0x341   : > { %v11284_v12 = vadd.f32 %v5886_v59, %v10602_v41  ;;  %v2274_v41 = vld [vmem:[%s9369_s12 + $0xa] sm:$0xff]  ;;  %v11328_v59 = vld [vmem:[%s9369_s12 + $0x1a] sm:$0xff] }
 0x342   : > { %v5809_v3 = vpop.permute.xlu1 %5808  ;;  %7462 = vmatmul.mubr.msk.f32.vlgmr.msra.gmra.mrb[84].mxu1 %vm491_vm1, %v2273_v20  ;;  %8287 = vmatmul.mubr.msk.f32.gmra.mrb[28].mxu0 %vm491_vm1, %v5002_v11 }
 0x343   : > { %12286 = vst [vmem:[#allocation16_spill] sm:$0xff] %v11284_v12  ;;  %v5887_v47 = vmul.f32 %v9251_v33, %v5809_v3  ;;  %8402 = vmatpush3.bf16.msra.mxu1 %v8401_v2  ;;  %7464 = vmatprep.mubr.msk.f32.mxu1 %vm9270_vm0, %v9271_v7  ;;  %v9254_v2 = vld [vmem:[%s10507_s28 + $0x110] sm:$0xff] }
 0x344   : > { %8289 = vmatprep.mubr.msk.f32.mxu0 %vm9270_vm0, %v9271_v7  ;;  %8403 = vmatprep.subr.bf16.mxu1 %v9269_v4  ;;  %v11313_v4 = vld [vmem:[%s9369_s12 + $0x12] sm:$0xff]  ;;  %v11667_v12 = vld [vmem:[%s9369_s12 + $0x10a] sm:$0xff] }
 0x345   : > { %v11303_v30 = vadd.f32 %v5887_v47, %v10605_v0  ;;  %v9255_v47 = vld [vmem:[%s10507_s28 + $0x118] sm:$0xff] }
 0x346   : > { %v5814_v8 = vpop.permute.xlu0 %5813  ;;  %7465 = vmatmul.mubr.msk.f32.gmra.mrb[86].mxu1 %vm491_vm1, %v2274_v41  ;;  %8290 = vmatmul.mubr.msk.f32.gmra.mrb[30].mxu0 %vm491_vm1, %v5003_v60  ;;  %v11358_v60 = vld [vmem:[%s9369_s12 + $0x2a] sm:$0xff] }
 0x347   : > { %12287 = vst [vmem:[#allocation17_spill] sm:$0xff] %v11303_v30  ;;  %v5888_v52 = vmul.f32 %v9252_v44, %v5814_v8  ;;  %7467 = vmatprep.mubr.msk.f32.mxu1 %vm9270_vm0, %v9271_v7  ;;  %8292 = vmatprep.mubr.msk.f32.mxu0 %vm9270_vm0, %v9271_v7  ;;  %v9256_v44 = vld [vmem:[%s10507_s28 + $0x120] sm:$0xff] }
 0x348   : > { %8405 = vmatpush3.bf16.msra.mxu1 %v8404_v55  ;;  %v11660_v30 = vld [vmem:[%s9369_s12 + $0x102] sm:$0xff] }
 0x349   : > { %v11317_v0 = vadd.f32 %v5888_v52, %v10608_v48  ;;  %v5005_v48 = vld [vmem:[%s9369_s12 + $0xa6] sm:$0xff] }
 0x34a   : > { %v5819_v15 = vpop.permute.xlu1 %5818  ;;  %7468 = vmatmul.mubr.msk.f32.gmra.mrb[88].mxu1 %vm491_vm1, %v11313_v4  ;;  %8293 = vmatmul.mubr.msk.f32.gmra.mrb[32].mxu0 %vm491_vm1, %v5004_v63  ;;  %v11373_v63 = vld [vmem:[%s9369_s12 + $0x32] sm:$0xff] }
 0x34b   : > { %12288 = vst [vmem:[#allocation18_spill] sm:$0xff] %v11317_v0  ;;  %v5889_v39 = vmul.f32 %v9253_v35, %v5819_v15  ;;  %7470 = vmatprep.mubr.msk.f32.mxu1 %vm9270_vm0, %v9271_v7  ;;  %8295 = vmatprep.mubr.msk.f32.mxu0 %vm9270_vm0, %v9271_v7  ;;  %v11653_v0 = vld [vmem:[%s9369_s12 + $0xfa] sm:$0xff] }
 0x34d   : > { %v11332_v20 = vadd.f32 %v5889_v39, %v10615_v50  ;;  %v5006_v50 = vld [vmem:[%s9369_s12 + $0xae] sm:$0xff] }
 0x34e   : > { %v5824_v11 = vpop.permute.xlu0 %5823  ;;  %7471 = vmatmul.mubr.msk.f32.gmra.mrb[90].mxu1 %vm491_vm1, %v11328_v59  ;;  %8296 = vmatmul.mubr.msk.f32.gmra.mrb[34].mxu0 %vm491_vm1, %v5005_v48  ;;  %v9257_v39 = vld [vmem:[%s10507_s28 + $0x128] sm:$0xff] }
 0x34f   : > { %12289 = vst [vmem:[#allocation19_spill] sm:$0xff] %v11332_v20  ;;  %v5890_v28 = vmul.f32 %v9254_v2, %v5824_v11  ;;  %7473 = vmatprep.mubr.msk.f32.mxu1 %vm9270_vm0, %v9271_v7  ;;  %8298 = vmatprep.mubr.msk.f32.mxu0 %vm9270_vm0, %v9271_v7  ;;  %v11388_v11 = vld [vmem:[%s9369_s12 + $0x3a] sm:$0xff]  ;;  %v11639_v20 = vld [vmem:[%s9369_s12 + $0xea] sm:$0xff] }
 0x351   : > { %v11347_v3 = vadd.f32 %v5890_v28, %v10618_v53  ;;  %v5007_v53 = vld [vmem:[%s9369_s12 + $0xb6] sm:$0xff] }
 0x352   : > { %v5829_v33 = vpop.permute.xlu1 %5828  ;;  %7474 = vmatmul.mubr.msk.f32.gmra.mrb[92].mxu1 %vm491_vm1, %v11343_v34  ;;  %8299 = vmatmul.mubr.msk.f32.gmra.mrb[36].mxu0 %vm491_vm1, %v5006_v50  ;;  %v9258_v50 = vld [vmem:[%s10507_s28 + $0x130] sm:$0xff] }
 0x353   : > { %12290 = vst [vmem:[#allocation20_spill] sm:$0xff] %v11347_v3  ;;  %v5891_v41 = vmul.f32 %v9255_v47, %v5829_v33  ;;  %7476 = vmatprep.mubr.msk.f32.mxu1 %vm9270_vm0, %v9271_v7  ;;  %8301 = vmatprep.mubr.msk.f32.mxu0 %vm9270_vm0, %v9271_v7  ;;  %v11403_v47 = vld [vmem:[%s9369_s12 + $0x42] sm:$0xff] }
 0x354   : > { %v5029_v3 = vld [vmem:[%s9369_s12 + $0x166] sm:$0xf] }
 0x355   : > { %v11362_v55 = vadd.f32 %v5891_v41, %v10621_v57  ;;  %v5008_v57 = vld [vmem:[%s9369_s12 + $0xbe] sm:$0xff] }
 0x356   : > { %v5834_v8 = vpop.permute.xlu0 %5833  ;;  %7477 = vmatmul.mubr.msk.f32.gmra.mrb[94].mxu1 %vm491_vm1, %v11358_v60  ;;  %8302 = vmatmul.mubr.msk.f32.gmra.mrb[38].mxu0 %vm491_vm1, %v5007_v53 }
 0x357   : > { %12291 = vst [vmem:[#allocation21_spill] sm:$0xff] %v11362_v55  ;;  %v5892_v52 = vmul.f32 %v9256_v44, %v5834_v8  ;;  %7479 = vmatprep.mubr.msk.f32.mxu1 %vm9270_vm0, %v9271_v7  ;;  %8304 = vmatprep.mubr.msk.f32.mxu0 %vm9270_vm0, %v9271_v7  ;;  %v9259_v8 = vld [vmem:[%s10507_s28 + $0x138] sm:$0xff] }
 0x358   : > { %v5028_v55 = vld [vmem:[%s9369_s12 + $0x15e] sm:$0xff] }
 0x359   : > { %v11377_v15 = vadd.f32 %v5892_v52, %v10624_v26  ;;  %v5009_v26 = vld [vmem:[%s9369_s12 + $0xc6] sm:$0xff] }
 0x35a   : > { %v5839_v35 = vpop.permute.xlu1 %5838  ;;  %7480 = vmatmul.mubr.msk.f32.gmra.mrb[96].mxu1 %vm491_vm1, %v11373_v63  ;;  %8305 = vmatmul.mubr.msk.f32.gmra.mrb[40].mxu0 %vm491_vm1, %v5008_v57  ;;  %v11418_v52 = vld [vmem:[%s9369_s12 + $0x4a] sm:$0xff] }
 0x35b   : > { %12292 = vst [vmem:[#allocation22_spill] sm:$0xff] %v11377_v15  ;;  %v5893_v48 = vmul.f32 %v9257_v39, %v5839_v35  ;;  %7482 = vmatprep.mubr.msk.f32.mxu1 %vm9270_vm0, %v9271_v7  ;;  %8307 = vmatprep.mubr.msk.f32.mxu0 %vm9270_vm0, %v9271_v7  ;;  %v9260_v39 = vld [vmem:[%s10507_s28 + $0x140] sm:$0xf]  ;;  %v5027_v15 = vld [vmem:[%s9369_s12 + $0x156] sm:$0xff] }
 0x35d   : > { %v11392_v2 = vadd.f32 %v5893_v48, %v10627_v9  ;;  %v5010_v9 = vld [vmem:[%s9369_s12 + $0xce] sm:$0xff] }
 0x35e   : > { %v5844_v28 = vpop.permute.xlu0 %5843  ;;  %7483 = vmatmul.mubr.msk.f32.gmra.mrb[98].mxu1 %vm491_vm1, %v11388_v11  ;;  %8308 = vmatmul.mubr.msk.f32.gmra.mrb[42].mxu0 %vm491_vm1, %v5009_v26  ;;  %v11433_v26 = vld [vmem:[%s9369_s12 + $0x52] sm:$0xff] }
 0x35f   : > { %12293 = vst [vmem:[#allocation23_spill] sm:$0xff] %v11392_v2  ;;  %v5894_v33 = vmul.f32 %v9258_v50, %v5844_v28  ;;  %7485 = vmatprep.mubr.msk.f32.mxu1 %vm9270_vm0, %v9271_v7  ;;  %8310 = vmatprep.mubr.msk.f32.mxu0 %vm9270_vm0, %v9271_v7  ;;  %v11447_v50 = vld [vmem:[%s9369_s12 + $0x5a] sm:$0xff]  ;;  %v5026_v2 = vld [vmem:[%s9369_s12 + $0x14e] sm:$0xff] }
 0x361   : > { %v11407_v41 = vadd.f32 %v5894_v33, %v10630_v10  ;;  %v5011_v10 = vld [vmem:[%s9369_s12 + $0xd6] sm:$0xff]  ;;  %v5013_v33 = vld [vmem:[%s9369_s12 + $0xe6] sm:$0xff] }
 0x362   : > { %v5849_v53 = vpop.permute.xlu1 %5848  ;;  %7486 = vmatmul.mubr.msk.f32.gmra.mrb[100].mxu1 %vm491_vm1, %v11403_v47  ;;  %8311 = vmatmul.mubr.msk.f32.gmra.mrb[44].mxu0 %vm491_vm1, %v5010_v9  ;;  %v5014_v9 = vld [vmem:[%s9369_s12 + $0xee] sm:$0xff] }
 0x363   : > { %12294 = vst [vmem:[#allocation24_spill] sm:$0xff] %v11407_v41  ;;  %v5895_v44 = vmul.f32 %v9259_v8, %v5849_v53  ;;  %7488 = vmatprep.mubr.msk.f32.mxu1 %vm9270_vm0, %v9271_v7  ;;  %8313 = vmatprep.mubr.msk.f32.mxu0 %vm9270_vm0, %v9271_v7  ;;  %v11469_v53 = vld [vmem:[%s9369_s12 + $0x6a] sm:$0xff]  ;;  %v5015_v8 = vld [vmem:[%s9369_s12 + $0xf6] sm:$0xff] }
 0x364   : > { %v5025_v41 = vld [vmem:[%s9369_s12 + $0x146] sm:$0xff] }
 0x365   : > { %v11422_v57 = vadd.f32 %v5895_v44, %v10637_v16  ;;  %v5012_v16 = vld [vmem:[%s9369_s12 + $0xde] sm:$0xff]  ;;  %v11480_v44 = vld [vmem:[%s9369_s12 + $0x72] sm:$0xff] }
 0x366   : > { %v5854_v35 = vpop.permute.xlu0 %5853  ;;  %7489 = vmatmul.mubr.msk.f32.gmra.mrb[102].mxu1 %vm491_vm1, %v11418_v52  ;;  %8314 = vmatmul.mubr.msk.f32.gmra.mrb[46].mxu0 %vm491_vm1, %v5011_v10  ;;  %v5016_v10 = vld [vmem:[%s9369_s12 + $0xfe] sm:$0xff] }
 0x367   : > { %12295 = vst [vmem:[#allocation25_spill] sm:$0xff] %v11422_v57  ;;  %v5896_v48 = vmul.f32 %v9260_v39, %v5854_v35  ;;  %7491 = vmatprep.mubr.msk.f32.mxu1 %vm9270_vm0, %v9271_v7  ;;  %8316 = vmatprep.mubr.msk.f32.mxu0 %vm9270_vm0, %v9271_v7  ;;  %v11491_v35 = vld [vmem:[%s9369_s12 + $0x7a] sm:$0xff]  ;;  %v5017_v39 = vld [vmem:[%s9369_s12 + $0x106] sm:$0xff] }
 0x368   : > { %v5024_v57 = vld [vmem:[%s9369_s12 + $0x13e] sm:$0xff] }
 0x369   : > { %v11437_v28 = vadd.f32 %v5896_v48, %v10640_v25  ;;  %v11458_v25 = vld [vmem:[%s9369_s12 + $0x62] sm:$0xff] }
 0x36a   : > { %7492 = vmatmul.mubr.msk.f32.gmra.mrb[104].mxu1 %vm491_vm1, %v11433_v26  ;;  %8317 = vmatmul.mubr.msk.f32.gmra.mrb[48].mxu0 %vm491_vm1, %v5012_v16  ;;  %v11502_v48 = vld [vmem:[%s9369_s12 + $0x82] sm:$0xff]  ;;  %v5018_v16 = vld [vmem:[%s9369_s12 + $0x10e] sm:$0xff] }
 0x36b   : > { %12296 = vst [vmem:[#allocation26_spill] sm:$0xff] %v11437_v28  ;;  %7494 = vmatprep.mubr.msk.f32.mxu1 %vm9270_vm0, %v9271_v7  ;;  %8319 = vmatprep.mubr.msk.f32.mxu0 %vm9270_vm0, %v9271_v7  ;;  %v5023_v28 = vld [vmem:[%s9369_s12 + $0x136] sm:$0xff] }
 0x36e   : > { %7495 = vmatmul.mubr.msk.f32.gmra.mrb[106].mxu1 %vm491_vm1, %v11447_v50  ;;  %8320 = vmatmul.mubr.msk.f32.gmra.mrb[50].mxu0 %vm491_vm1, %v5013_v33  ;;  %v11513_v33 = vld [vmem:[%s9369_s12 + $0x8a] sm:$0xff] }
 0x36f   : > { %7497 = vmatprep.mubr.msk.f32.mxu1 %vm9270_vm0, %v9271_v7  ;;  %8322 = vmatprep.mubr.msk.f32.mxu0 %vm9270_vm0, %v9271_v7 }
 0x372   : > { %7498 = vmatmul.mubr.msk.f32.gmra.mrb[108].mxu1 %vm491_vm1, %v11458_v25  ;;  %8323 = vmatmul.mubr.msk.f32.gmra.mrb[52].mxu0 %vm491_vm1, %v5014_v9  ;;  %v5019_v9 = vld [vmem:[%s9369_s12 + $0x116] sm:$0xff] }
 0x373   : > { %7500 = vmatprep.mubr.msk.f32.mxu1 %vm9270_vm0, %v9271_v7  ;;  %8325 = vmatprep.mubr.msk.f32.mxu0 %vm9270_vm0, %v9271_v7 }
 0x376   : > { %7501 = vmatmul.mubr.msk.f32.gmra.mrb[110].mxu1 %vm491_vm1, %v11469_v53  ;;  %8326 = vmatmul.mubr.msk.f32.gmra.mrb[54].mxu0 %vm491_vm1, %v5015_v8  ;;  %v11524_v8 = vld [vmem:[%s9369_s12 + $0x92] sm:$0xff] }
 0x377   : > { %7503 = vmatprep.mubr.msk.f32.mxu1 %vm9270_vm0, %v9271_v7  ;;  %8328 = vmatprep.mubr.msk.f32.mxu0 %vm9270_vm0, %v9271_v7 }
 0x37a   : > { %7504 = vmatmul.mubr.msk.f32.gmra.mrb[112].mxu1 %vm491_vm1, %v11480_v44  ;;  %8329 = vmatmul.mubr.msk.f32.gmra.mrb[56].mxu0 %vm491_vm1, %v5016_v10  ;;  %v5020_v10 = vld [vmem:[%s9369_s12 + $0x11e] sm:$0xff] }
 0x37b   : > { %7506 = vmatprep.mubr.msk.f32.mxu1 %vm9270_vm0, %v9271_v7  ;;  %8331 = vmatprep.mubr.msk.f32.mxu0 %vm9270_vm0, %v9271_v7 }
 0x37e   : > { %7507 = vmatmul.mubr.msk.f32.gmra.mrb[114].mxu1 %vm491_vm1, %v11491_v35  ;;  %8332 = vmatmul.mubr.msk.f32.gmra.mrb[58].mxu0 %vm491_vm1, %v5017_v39  ;;  %v11535_v39 = vld [vmem:[%s9369_s12 + $0x9a] sm:$0xff] }
 0x37f   : > { %7509 = vmatprep.mubr.msk.f32.mxu1 %vm9270_vm0, %v9271_v7  ;;  %8334 = vmatprep.mubr.msk.f32.mxu0 %vm9270_vm0, %v9271_v7 }
 0x382   : > { %7510 = vmatmul.mubr.msk.f32.gmra.mrb[116].mxu1 %vm491_vm1, %v11502_v48  ;;  %8335 = vmatmul.mubr.msk.f32.gmra.mrb[60].mxu0 %vm491_vm1, %v5018_v16  ;;  %v5021_v16 = vld [vmem:[%s9369_s12 + $0x126] sm:$0xff] }
 0x383   : > { %7512 = vmatprep.mubr.msk.f32.mxu1 %vm9270_vm0, %v9271_v7  ;;  %8337 = vmatprep.mubr.msk.f32.mxu0 %vm9270_vm0, %v9271_v7 }
 0x386   : > { %7513 = vmatmul.mubr.msk.f32.gmra.mrb[118].mxu1 %vm491_vm1, %v11513_v33  ;;  %8338 = vmatmul.mubr.msk.f32.gmra.mrb[62].mxu0 %vm491_vm1, %v5019_v9  ;;  %v11546_v9 = vld [vmem:[%s9369_s12 + $0xa2] sm:$0xff] }
 0x387   : > { %7515 = vmatprep.mubr.msk.f32.mxu1 %vm9270_vm0, %v9271_v7  ;;  %8340 = vmatprep.mubr.msk.f32.mxu0 %vm9270_vm0, %v9271_v7 }
 0x38a   : > { %7516 = vmatmul.mubr.msk.f32.gmra.mrb[120].mxu1 %vm491_vm1, %v11524_v8  ;;  %8341 = vmatmul.mubr.msk.f32.gmra.mrb[64].mxu0 %vm491_vm1, %v5020_v10  ;;  %v5022_v10 = vld [vmem:[%s9369_s12 + $0x12e] sm:$0xff] }
 0x38b   : > { %7518 = vmatprep.mubr.msk.f32.mxu1 %vm9270_vm0, %v9271_v7  ;;  %8343 = vmatprep.mubr.msk.f32.mxu0 %vm9270_vm0, %v9271_v7 }
 0x38e   : > { %7519 = vmatmul.mubr.msk.f32.gmra.mrb[122].mxu1 %vm491_vm1, %v11535_v39  ;;  %8344 = vmatmul.mubr.msk.f32.gmra.mrb[66].mxu0 %vm491_vm1, %v5021_v16  ;;  %v11557_v16 = vld [vmem:[%s9369_s12 + $0xaa] sm:$0xff] }
 0x38f   : > { %7521 = vmatprep.mubr.msk.f32.mxu1 %vm9270_vm0, %v9271_v7  ;;  %8346 = vmatprep.mubr.msk.f32.mxu0 %vm9270_vm0, %v9271_v7 }
 0x392   : > { %7522 = vmatmul.mubr.msk.f32.gmra.mrb[124].mxu1 %vm491_vm1, %v11546_v9  ;;  %8347 = vmatmul.mubr.msk.f32.gmra.mrb[68].mxu0 %vm491_vm1, %v5022_v10  ;;  %v11568_v10 = vld [vmem:[%s9369_s12 + $0xb2] sm:$0xff] }
 0x393   : > { %7524 = vmatprep.mubr.msk.f32.mxu1 %vm9270_vm0, %v9271_v7  ;;  %8349 = vmatprep.mubr.msk.f32.mxu0 %vm9270_vm0, %v9271_v7 }
 0x396   : > { %7525 = vmatmul.mubr.msk.f32.gmra.mrb[126].mxu1 %vm491_vm1, %v11557_v16  ;;  %8350 = vmatmul.mubr.msk.f32.gmra.mrb[70].mxu0 %vm491_vm1, %v5023_v28  ;;  %v11579_v28 = vld [vmem:[%s9369_s12 + $0xba] sm:$0xff] }
 0x397   : > { %7527 = vmatprep.mubr.msk.f32.mxu1 %vm9270_vm0, %v9271_v7  ;;  %8352 = vmatprep.mubr.msk.f32.mxu0 %vm9270_vm0, %v9271_v7 }
 0x39a   : > { %7528 = vmatmul.mubr.msk.f32.gmra.mrb[128].mxu1 %vm491_vm1, %v11568_v10  ;;  %8353 = vmatmul.mubr.msk.f32.gmra.mrb[72].mxu0 %vm491_vm1, %v5024_v57  ;;  %v11590_v57 = vld [vmem:[%s9369_s12 + $0xc2] sm:$0xff] }
 0x39b   : > { %7530 = vmatprep.mubr.msk.f32.mxu1 %vm9270_vm0, %v9271_v7  ;;  %8355 = vmatprep.mubr.msk.f32.mxu0 %vm9270_vm0, %v9271_v7 }
 0x39e   : > { %7531 = vmatmul.mubr.msk.f32.gmra.mrb[130].mxu1 %vm491_vm1, %v11579_v28  ;;  %8356 = vmatmul.mubr.msk.f32.gmra.mrb[74].mxu0 %vm491_vm1, %v5025_v41  ;;  %v11601_v41 = vld [vmem:[%s9369_s12 + $0xca] sm:$0xff] }
 0x39f   : > { %7533 = vmatprep.mubr.msk.f32.mxu1 %vm9270_vm0, %v9271_v7  ;;  %8358 = vmatprep.mubr.msk.f32.mxu0 %vm9270_vm0, %v9271_v7 }
 0x3a2   : > { %7534 = vmatmul.mubr.msk.f32.gmra.mrb[132].mxu1 %vm491_vm1, %v11590_v57  ;;  %8359 = vmatmul.mubr.msk.f32.gmra.mrb[76].mxu0 %vm491_vm1, %v5026_v2  ;;  %v11612_v2 = vld [vmem:[%s9369_s12 + $0xd2] sm:$0xff] }
 0x3a3   : > { %7536 = vmatprep.mubr.msk.f32.mxu1 %vm9270_vm0, %v9271_v7  ;;  %8361 = vmatprep.mubr.msk.f32.mxu0 %vm9270_vm0, %v9271_v7 }
 0x3a6   : > { %7537 = vmatmul.mubr.msk.f32.gmra.mrb[134].mxu1 %vm491_vm1, %v11601_v41  ;;  %8362 = vmatmul.mubr.msk.f32.gmra.mrb[78].mxu0 %vm491_vm1, %v5027_v15  ;;  %v11623_v15 = vld [vmem:[%s9369_s12 + $0xda] sm:$0xff] }
 0x3a7   : > { %7539 = vmatprep.mubr.msk.f32.mxu1 %vm9270_vm0, %v9271_v7  ;;  %8364 = vmatprep.mubr.msk.f32.mxu0 %vm9270_vm0, %v9271_v7 }
 0x3aa   : > { %7540 = vmatmul.mubr.msk.f32.gmra.mrb[136].mxu1 %vm491_vm1, %v11612_v2  ;;  %8365 = vmatmul.mubr.msk.f32.gmra.mrb[80].mxu0 %vm491_vm1, %v5028_v55  ;;  %v11632_v55 = vld [vmem:[%s9369_s12 + $0xe2] sm:$0xff] }
 0x3ab   : > { %7542 = vmatprep.mubr.msk.f32.mxu1 %vm9270_vm0, %v9271_v7  ;;  %8367 = vmatprep.mubr.msk.f32.mxu0 %vm9270_vm0, %v9271_v7 }
 0x3ae   : > { %7543 = vmatmul.mubr.msk.f32.gmra.mrb[138].mxu1 %vm491_vm1, %v11623_v15  ;;  %8368 = vmatmul.mubr.msk.f32.gmra.mrb[82].mxu0 %vm491_vm1, %v5029_v3  ;;  %v11646_v3 = vld [vmem:[%s9369_s12 + $0xf2] sm:$0xff] }
 0x3af   : > { %7545 = vmatprep.mubr.msk.f32.mxu1 %vm9270_vm0, %v9271_v7 }
 0x3b2   : > { %7546 = vmatmul.mubr.msk.f32.gmra.mrb[140].mxu1 %vm491_vm1, %v11632_v55 }
 0x3b3   : > { %7548 = vmatprep.mubr.msk.f32.mxu1 %vm9270_vm0, %v9271_v7 }
 0x3b6   : > { %7549 = vmatmul.mubr.msk.f32.gmra.mrb[142].mxu1 %vm491_vm1, %v11639_v20 }
 0x3b7   : > { %7551 = vmatprep.mubr.msk.f32.mxu1 %vm9270_vm0, %v9271_v7 }
 0x3ba   : > { %7552 = vmatmul.mubr.msk.f32.gmra.mrb[144].mxu1 %vm491_vm1, %v11646_v3 }
 0x3bb   : > { %7554 = vmatprep.mubr.msk.f32.mxu1 %vm9270_vm0, %v9271_v7 }
 0x3be   : > { %7555 = vmatmul.mubr.msk.f32.gmra.mrb[146].mxu1 %vm491_vm1, %v11653_v0 }
 0x3bf   : > { %7557 = vmatprep.mubr.msk.f32.mxu1 %vm9270_vm0, %v9271_v7 }
 0x3c2   : > { %7558 = vmatmul.mubr.msk.f32.gmra.mrb[148].mxu1 %vm491_vm1, %v11660_v30 }
 0x3c3   : > { %7560 = vmatprep.mubr.msk.f32.mxu1 %vm9270_vm0, %v9271_v7 }
 0x3c6   : > { %7561 = vmatmul.mubr.msk.f32.gmra.mrb[150].mxu1 %vm491_vm1, %v11667_v12 }
 0x3c7   : > { %7563 = vmatprep.mubr.msk.f32.mxu1 %vm9270_vm0, %v9271_v7 }
 0x3ca   : > { %7564 = vmatmul.mubr.msk.f32.gmra.mrb[152].mxu1 %vm491_vm1, %v11674_v14 }
 0x3cb   : > { %7566 = vmatprep.mubr.msk.f32.mxu1 %vm9270_vm0, %v9271_v7 }
 0x3ce   : > { %7567 = vmatmul.mubr.msk.f32.gmra.mrb[154].mxu1 %vm491_vm1, %v11681_v23 }
 0x3cf   : > { %7569 = vmatprep.mubr.msk.f32.mxu1 %vm9270_vm0, %v9271_v7 }
 0x3d2   : > { %7570 = vmatmul.mubr.msk.f32.gmra.mrb[156].mxu1 %vm491_vm1, %v11688_v17 }
 0x3d3   : > { %7572 = vmatprep.mubr.msk.f32.mxu1 %vm9270_vm0, %v9271_v7 }
 0x3d6   : > { %7573 = vmatmul.mubr.msk.f32.gmra.mrb[158].mxu1 %vm491_vm1, %v11695_v6 }
 0x3d7   : > { %7575 = vmatprep.mubr.msk.f32.mxu1 %vm9270_vm0, %v9271_v7 }
 0x3da   : > { %7576 = vmatmul.mubr.msk.f32.gmra.mrb[160].mxu1 %vm491_vm1, %v11702_v42 }
 0x3db   : > { %7578 = vmatprep.mubr.msk.f32.mxu1 %vm9270_vm0, %v9271_v7 }
 0x3de   : > { %7579 = vmatmul.mubr.msk.f32.gmra.mrb[162].mxu1 %vm491_vm1, %v11709_v38 }
 0x3df   : > { %7581 = vmatprep.mubr.msk.f32.mxu1 %vm9270_vm0, %v9271_v7 }
 0x3e1   : > { %v11716_v40 = vpop.f32.mrb[2].mxu0 }
 0x3e2   : > { %7582 = vmatmul.mubr.msk.f32.gmra.mrb[164].mxu1 %vm491_vm1, %v2313_v46  ;;  %v8249_v37 = vpop.f32.mrb[3].mxu0 }
 0x3e3   : > { %7592 = vmatprep.mubr.msk.f32.mxu1 %vm9270_vm0, %v9271_v7 }
 0x3e5   : > { %v11721_v61 = vpop.f32.mrb[4].mxu0 }
 0x3e6   : > { %7593 = vmatmul.mubr.msk.f32.vlgmr.msra.gmra.mrb[84].mxu1 %vm491_vm1, %v11313_v4  ;;  %v8252_v22 = vpop.f32.mrb[5].mxu0 }
 0x3e7   : > { %7595 = vmatprep.mubr.msk.f32.mxu1 %vm9270_vm0, %v9271_v7 }
 0x3e9   : > { %v11727_v19 = vpop.f32.mrb[6].mxu0 }
 0x3ea   : > { %7596 = vmatmul.mubr.msk.f32.gmra.mrb[86].mxu1 %vm491_vm1, %v11328_v59  ;;  %v8255_v32 = vpop.f32.mrb[7].mxu0 }
 0x3eb   : > { %7598 = vmatprep.mubr.msk.f32.mxu1 %vm9270_vm0, %v9271_v7 }
 0x3ed   : > { %v11733_v37 = vpop.f32.mrb[8].mxu0 }
 0x3ee   : > { %7599 = vmatmul.mubr.msk.f32.gmra.mrb[88].mxu1 %vm491_vm1, %v11343_v34  ;;  %v8258_v46 = vpop.f32.mrb[9].mxu0 }
 0x3ef   : > { %7601 = vmatprep.mubr.msk.f32.mxu1 %vm9270_vm0, %v9271_v7 }
 0x3f1   : > { %v11739_v22 = vpop.f32.mrb[10].mxu0 }
 0x3f2   : > { %7602 = vmatmul.mubr.msk.f32.gmra.mrb[90].mxu1 %vm491_vm1, %v11358_v60  ;;  %v8261_v4 = vpop.f32.mrb[11].mxu0 }
 0x3f3   : > { %7604 = vmatprep.mubr.msk.f32.mxu1 %vm9270_vm0, %v9271_v7 }
 0x3f5   : > { %v11745_v32 = vpop.f32.mrb[12].mxu0 }
 0x3f6   : > { %7605 = vmatmul.mubr.msk.f32.gmra.mrb[92].mxu1 %vm491_vm1, %v11373_v63  ;;  %v8264_v59 = vpop.f32.mrb[13].mxu0 }
 0x3f7   : > { %7607 = vmatprep.mubr.msk.f32.mxu1 %vm9270_vm0, %v9271_v7 }
 0x3f9   : > { %v11751_v34 = vpop.f32.mrb[14].mxu0 }
 0x3fa   : > { %7608 = vmatmul.mubr.msk.f32.gmra.mrb[94].mxu1 %vm491_vm1, %v11388_v11  ;;  %v8267_v46 = vpop.f32.mrb[15].mxu0 }
 0x3fb   : > { %7610 = vmatprep.mubr.msk.f32.mxu1 %vm9270_vm0, %v9271_v7 }
 0x3fd   : > { %v11757_v60 = vpop.f32.mrb[16].mxu0 }
 0x3fe   : > { %7611 = vmatmul.mubr.msk.f32.gmra.mrb[96].mxu1 %vm491_vm1, %v11403_v47  ;;  %v8270_v4 = vpop.f32.mrb[17].mxu0 }
 0x3ff   : > { %7613 = vmatprep.mubr.msk.f32.mxu1 %vm9270_vm0, %v9271_v7 }
 0x401   : > { %v11763_v63 = vpop.f32.mrb[18].mxu0 }
 0x402   : > { %7614 = vmatmul.mubr.msk.f32.gmra.mrb[98].mxu1 %vm491_vm1, %v11418_v52  ;;  %v8273_v59 = vpop.f32.mrb[19].mxu0 }
 0x403   : > { %7616 = vmatprep.mubr.msk.f32.mxu1 %vm9270_vm0, %v9271_v7 }
 0x405   : > { %v11769_v11 = vpop.f32.mrb[20].mxu0 }
 0x406   : > { %7617 = vmatmul.mubr.msk.f32.gmra.mrb[100].mxu1 %vm491_vm1, %v11433_v26  ;;  %v8276_v46 = vpop.f32.mrb[21].mxu0 }
 0x407   : > { %7619 = vmatprep.mubr.msk.f32.mxu1 %vm9270_vm0, %v9271_v7 }
 0x409   : > { %v11775_v47 = vpop.f32.mrb[22].mxu0 }
 0x40a   : > { %7620 = vmatmul.mubr.msk.f32.gmra.mrb[102].mxu1 %vm491_vm1, %v11447_v50  ;;  %v8279_v4 = vpop.f32.mrb[23].mxu0 }
 0x40b   : > { %7622 = vmatprep.mubr.msk.f32.mxu1 %vm9270_vm0, %v9271_v7 }
 0x40d   : > { %v11781_v52 = vpop.f32.mrb[24].mxu0 }
 0x40e   : > { %7623 = vmatmul.mubr.msk.f32.gmra.mrb[104].mxu1 %vm491_vm1, %v11458_v25  ;;  %v8282_v59 = vpop.f32.mrb[25].mxu0 }
 0x40f   : > { %7625 = vmatprep.mubr.msk.f32.mxu1 %vm9270_vm0, %v9271_v7 }
 0x411   : > { %v11787_v26 = vpop.f32.mrb[26].mxu0 }
 0x412   : > { %7626 = vmatmul.mubr.msk.f32.gmra.mrb[106].mxu1 %vm491_vm1, %v11469_v53  ;;  %v8285_v46 = vpop.f32.mrb[27].mxu0 }
 0x413   : > { %7628 = vmatprep.mubr.msk.f32.mxu1 %vm9270_vm0, %v9271_v7 }
 0x415   : > { %v11793_v50 = vpop.f32.mrb[28].mxu0 }
 0x416   : > { %7629 = vmatmul.mubr.msk.f32.gmra.mrb[108].mxu1 %vm491_vm1, %v11480_v44  ;;  %v8288_v4 = vpop.f32.mrb[29].mxu0 }
 0x417   : > { %7631 = vmatprep.mubr.msk.f32.mxu1 %vm9270_vm0, %v9271_v7 }
 0x419   : > { %v11799_v25 = vpop.f32.mrb[30].mxu0 }
 0x41a   : > { %7632 = vmatmul.mubr.msk.f32.gmra.mrb[110].mxu1 %vm491_vm1, %v11491_v35  ;;  %v8291_v59 = vpop.f32.mrb[31].mxu0 }
 0x41b   : > { %7634 = vmatprep.mubr.msk.f32.mxu1 %vm9270_vm0, %v9271_v7 }
 0x41d   : > { %v11805_v53 = vpop.f32.mrb[32].mxu0 }
 0x41e   : > { %7635 = vmatmul.mubr.msk.f32.gmra.mrb[112].mxu1 %vm491_vm1, %v11502_v48  ;;  %v8294_v46 = vpop.f32.mrb[33].mxu0 }
 0x41f   : > { %7637 = vmatprep.mubr.msk.f32.mxu1 %vm9270_vm0, %v9271_v7 }
 0x421   : > { %v11811_v44 = vpop.f32.mrb[34].mxu0 }
 0x422   : > { %7638 = vmatmul.mubr.msk.f32.gmra.mrb[114].mxu1 %vm491_vm1, %v11513_v33  ;;  %v8297_v4 = vpop.f32.mrb[35].mxu0 }
 0x423   : > { %7640 = vmatprep.mubr.msk.f32.mxu1 %vm9270_vm0, %v9271_v7 }
 0x425   : > { %v11817_v35 = vpop.f32.mrb[36].mxu0 }
 0x426   : > { %7641 = vmatmul.mubr.msk.f32.gmra.mrb[116].mxu1 %vm491_vm1, %v11524_v8  ;;  %v8300_v59 = vpop.f32.mrb[37].mxu0 }
 0x427   : > { %7643 = vmatprep.mubr.msk.f32.mxu1 %vm9270_vm0, %v9271_v7 }
 0x429   : > { %v11823_v48 = vpop.f32.mrb[38].mxu0 }
 0x42a   : > { %7644 = vmatmul.mubr.msk.f32.gmra.mrb[118].mxu1 %vm491_vm1, %v11535_v39  ;;  %v8303_v46 = vpop.f32.mrb[39].mxu0 }
 0x42b   : > { %7646 = vmatprep.mubr.msk.f32.mxu1 %vm9270_vm0, %v9271_v7 }
 0x42d   : > { %v11829_v33 = vpop.f32.mrb[40].mxu0 }
 0x42e   : > { %7647 = vmatmul.mubr.msk.f32.gmra.mrb[120].mxu1 %vm491_vm1, %v11546_v9  ;;  %v8306_v4 = vpop.f32.mrb[41].mxu0 }
 0x42f   : > { %7649 = vmatprep.mubr.msk.f32.mxu1 %vm9270_vm0, %v9271_v7 }
 0x431   : > { %v11835_v8 = vpop.f32.mrb[42].mxu0 }
 0x432   : > { %7650 = vmatmul.mubr.msk.f32.gmra.mrb[122].mxu1 %vm491_vm1, %v11557_v16  ;;  %v8309_v59 = vpop.f32.mrb[43].mxu0 }
 0x433   : > { %7652 = vmatprep.mubr.msk.f32.mxu1 %vm9270_vm0, %v9271_v7 }
 0x435   : > { %v11841_v39 = vpop.f32.mrb[44].mxu0 }
 0x436   : > { %7653 = vmatmul.mubr.msk.f32.gmra.mrb[124].mxu1 %vm491_vm1, %v11568_v10  ;;  %v8312_v46 = vpop.f32.mrb[45].mxu0 }
 0x437   : > { %7655 = vmatprep.mubr.msk.f32.mxu1 %vm9270_vm0, %v9271_v7 }
 0x439   : > { %v11847_v9 = vpop.f32.mrb[46].mxu0 }
 0x43a   : > { %7656 = vmatmul.mubr.msk.f32.gmra.mrb[126].mxu1 %vm491_vm1, %v11579_v28  ;;  %v8315_v4 = vpop.f32.mrb[47].mxu0 }
 0x43b   : > { %7658 = vmatprep.mubr.msk.f32.mxu1 %vm9270_vm0, %v9271_v7 }
 0x43d   : > { %v11853_v16 = vpop.f32.mrb[48].mxu0 }
 0x43e   : > { %7659 = vmatmul.mubr.msk.f32.gmra.mrb[128].mxu1 %vm491_vm1, %v11590_v57  ;;  %v8318_v59 = vpop.f32.mrb[49].mxu0 }
 0x43f   : > { %7661 = vmatprep.mubr.msk.f32.mxu1 %vm9270_vm0, %v9271_v7 }
 0x441   : > { %v11859_v10 = vpop.f32.mrb[50].mxu0 }
 0x442   : > { %7662 = vmatmul.mubr.msk.f32.gmra.mrb[130].mxu1 %vm491_vm1, %v11601_v41  ;;  %v8321_v46 = vpop.f32.mrb[51].mxu0 }
 0x443   : > { %7664 = vmatprep.mubr.msk.f32.mxu1 %vm9270_vm0, %v9271_v7 }
 0x445   : > { %v11865_v28 = vpop.f32.mrb[52].mxu0 }
 0x446   : > { %7665 = vmatmul.mubr.msk.f32.gmra.mrb[132].mxu1 %vm491_vm1, %v11612_v2  ;;  %v8324_v4 = vpop.f32.mrb[53].mxu0 }
 0x447   : > { %7667 = vmatprep.mubr.msk.f32.mxu1 %vm9270_vm0, %v9271_v7 }
 0x449   : > { %v11871_v57 = vpop.f32.mrb[54].mxu0 }
 0x44a   : > { %7668 = vmatmul.mubr.msk.f32.gmra.mrb[134].mxu1 %vm491_vm1, %v11623_v15  ;;  %v8327_v59 = vpop.f32.mrb[55].mxu0 }
 0x44b   : > { %7670 = vmatprep.mubr.msk.f32.mxu1 %vm9270_vm0, %v9271_v7 }
 0x44d   : > { %v11877_v41 = vpop.f32.mrb[56].mxu0 }
 0x44e   : > { %7671 = vmatmul.mubr.msk.f32.gmra.mrb[136].mxu1 %vm491_vm1, %v11632_v55  ;;  %v8330_v46 = vpop.f32.mrb[57].mxu0 }
 0x44f   : > { %7673 = vmatprep.mubr.msk.f32.mxu1 %vm9270_vm0, %v9271_v7 }
 0x451   : > { %v11883_v2 = vpop.f32.mrb[58].mxu0 }
 0x452   : > { %7674 = vmatmul.mubr.msk.f32.gmra.mrb[138].mxu1 %vm491_vm1, %v11639_v20  ;;  %v8333_v4 = vpop.f32.mrb[59].mxu0 }
 0x453   : > { %7676 = vmatprep.mubr.msk.f32.mxu1 %vm9270_vm0, %v9271_v7 }
 0x455   : > { %v11889_v15 = vpop.f32.mrb[60].mxu0 }
 0x456   : > { %7677 = vmatmul.mubr.msk.f32.gmra.mrb[140].mxu1 %vm491_vm1, %v11646_v3  ;;  %v8336_v59 = vpop.f32.mrb[61].mxu0 }
 0x457   : > { %7679 = vmatprep.mubr.msk.f32.mxu1 %vm9270_vm0, %v9271_v7 }
 0x459   : > { %v11895_v55 = vpop.f32.mrb[62].mxu0 }
 0x45a   : > { %7680 = vmatmul.mubr.msk.f32.gmra.mrb[142].mxu1 %vm491_vm1, %v11653_v0  ;;  %v8339_v46 = vpop.f32.mrb[63].mxu0 }
 0x45b   : > { %7682 = vmatprep.mubr.msk.f32.mxu1 %vm9270_vm0, %v9271_v7 }
 0x45d   : > { %v11901_v20 = vpop.f32.mrb[64].mxu0 }
 0x45e   : > { %12297 = vst [vmem:[#allocation27_spill] sm:$0xff] %v11901_v20  ;;  %7683 = vmatmul.mubr.msk.f32.gmra.mrb[144].mxu1 %vm491_vm1, %v11660_v30  ;;  %v8342_v4 = vpop.f32.mrb[65].mxu0 }
 0x45f   : > { %7685 = vmatprep.mubr.msk.f32.mxu1 %vm9270_vm0, %v9271_v7 }
 0x461   : > { %v11907_v3 = vpop.f32.mrb[66].mxu0 }
 0x462   : > { %12298 = vst [vmem:[#allocation28_spill] sm:$0xff] %v11907_v3  ;;  %7686 = vmatmul.mubr.msk.f32.gmra.mrb[146].mxu1 %vm491_vm1, %v11667_v12  ;;  %v8345_v59 = vpop.f32.mrb[67].mxu0 }
 0x463   : > { %7688 = vmatprep.mubr.msk.f32.mxu1 %vm9270_vm0, %v9271_v7 }
 0x465   : > { %v11913_v0 = vpop.f32.mrb[68].mxu0 }
 0x466   : > { %12299 = vst [vmem:[#allocation29_spill] sm:$0xff] %v11913_v0  ;;  %7689 = vmatmul.mubr.msk.f32.gmra.mrb[148].mxu1 %vm491_vm1, %v11674_v14  ;;  %v8348_v46 = vpop.f32.mrb[69].mxu0 }
 0x467   : > { %7691 = vmatprep.mubr.msk.f32.mxu1 %vm9270_vm0, %v9271_v7 }
 0x469   : > { %v11919_v30 = vpop.f32.mrb[70].mxu0 }
 0x46a   : > { %12300 = vst [vmem:[#allocation30_spill] sm:$0xff] %v11919_v30  ;;  %7692 = vmatmul.mubr.msk.f32.gmra.mrb[150].mxu1 %vm491_vm1, %v11681_v23  ;;  %v8351_v4 = vpop.f32.mrb[71].mxu0 }
 0x46b   : > { %7694 = vmatprep.mubr.msk.f32.mxu1 %vm9270_vm0, %v9271_v7 }
 0x46d   : > { %v11925_v12 = vpop.f32.mrb[72].mxu0 }
 0x46e   : > { %12301 = vst [vmem:[#allocation31_spill] sm:$0xff] %v11925_v12  ;;  %7695 = vmatmul.mubr.msk.f32.gmra.mrb[152].mxu1 %vm491_vm1, %v11688_v17  ;;  %v8354_v14 = vpop.f32.mrb[73].mxu0 }
 0x46f   : > { %7697 = vmatprep.mubr.msk.f32.mxu1 %vm9270_vm0, %v9271_v7  ;;  %v2791_v14 = vld [vmem:[%s9369_s12 + $0x142] sm:$0xff] }
 0x471   : > { %v11931_v59 = vpop.f32.mrb[74].mxu0 }
 0x472   : > { %12302 = vst [vmem:[#allocation32_spill] sm:$0xff] %v11931_v59  ;;  %7698 = vmatmul.mubr.msk.f32.gmra.mrb[154].mxu1 %vm491_vm1, %v11695_v6  ;;  %v8357_v23 = vpop.f32.mrb[75].mxu0 }
 0x473   : > { %7700 = vmatprep.mubr.msk.f32.mxu1 %vm9270_vm0, %v9271_v7 }
 0x475   : > { %v11937_v46 = vpop.f32.mrb[76].mxu0 }
 0x476   : > { %12303 = vst [vmem:[#allocation33_spill] sm:$0xff] %v11937_v46  ;;  %7701 = vmatmul.mubr.msk.f32.gmra.mrb[156].mxu1 %vm491_vm1, %v11702_v42  ;;  %v8360_v17 = vpop.f32.mrb[77].mxu0 }
 0x477   : > { %7703 = vmatprep.mubr.msk.f32.mxu1 %vm9270_vm0, %v9271_v7  ;;  %v2792_v17 = vld [vmem:[%s9369_s12 + $0x14a] sm:$0xff] }
 0x479   : > { %v11943_v4 = vpop.f32.mrb[78].mxu0 }
 0x47a   : > { %12304 = vst [vmem:[#allocation34_spill] sm:$0xff] %v11943_v4  ;;  %7704 = vmatmul.mubr.msk.f32.gmra.mrb[158].mxu1 %vm491_vm1, %v11709_v38  ;;  %v8363_v6 = vpop.f32.mrb[79].mxu0  ;;  %v450_v4 = vld [vmem:[%s10507_s28] sm:$0xff] }
 0x47b   : > { %7706 = vmatprep.mubr.msk.f32.mxu1 %vm9270_vm0, %v9271_v7  ;;  %v2793_v6 = vld [vmem:[%s9369_s12 + $0x152] sm:$0xf]  ;;  %v5610_v59 = vmul.f32 %v10509_v5, %v450_v4 }
 0x47d   : > { %v11950_v23 = vpop.f32.mrb[80].mxu0 }
 0x47e   : > { %12305 = vst [vmem:[#allocation35_spill] sm:$0xff] %v11950_v23  ;;  %7707 = vmatmul.mubr.msk.f32.gmra.mrb[160].mxu1 %vm491_vm1, %v2791_v14  ;;  %v8366_v42 = vpop.f32.mrb[81].mxu0  ;;  %v11966_v14 = vld [vmem:[%s12270_s9] ss:$0 sm:$0xff] }
 0x47f   : > { %7709 = vmatprep.mubr.msk.f32.mxu1 %vm9270_vm0, %v9271_v7 }
 0x481   : > { %v11956_v46 = vpop.f32.mrb[82].mxu0 }
 0x482   : > { %12306 = vst [vmem:[#allocation36_spill] sm:$0xff] %v11956_v46  ;;  %7710 = vmatmul.mubr.msk.f32.gmra.mrb[162].mxu1 %vm491_vm1, %v2792_v17  ;;  %v8369_v38 = vpop.f32.mrb[83].mxu0  ;;  %v11973_v17 = vld [vmem:[%s12271_s10] ss:$0 sm:$0xff] }
 0x483   : > { %7712 = vmatprep.mubr.msk.f32.mxu1 %vm9270_vm0, %v9271_v7  ;;  %v5856_v7 = vmul.f32 %v11002_v31, %v450_v4 }
 0x485   : > { %v5897_v30 = vadd.f32 %v5856_v7, %v5610_v59 }
 0x486   : > { %7713 = vmatmul.mubr.msk.f32.gmra.mrb[164].mxu1 %vm491_vm1, %v2793_v6 }
 0x4b9   : > { %v2988_v23 = vpop.f32.mrb[84].mxu1 }
 0x4ba   : > { %v8436_v42 = vadd.f32 %v11716_v40, %v2988_v23  ;;  %v7594_v46 = vpop.f32.mrb[85].mxu1 }
 0x4bb   : > { %v451_v46 = vld [vmem:[%s10507_s28 + $0x8] sm:$0xff] }
 0x4bc   : > { %v5476_v38 = vmul.f32 %v8436_v42, %v11966_v14  ;;  %v5857_v0 = vmul.f32 %v11016_v29, %v451_v46  ;;  %v5611_v4 = vmul.f32 %v10509_v5, %v451_v46 }
 0x4bd   : > { %v2993_v6 = vpop.f32.mrb[86].mxu1 }
 0x4be   : > { %v5524_v12 = vadd.f32 %v11973_v17, %v5476_v38  ;;  %v8437_v40 = vadd.f32 %v11721_v61, %v2993_v6  ;;  %v7597_v23 = vpop.f32.mrb[87].mxu1  ;;  %v5898_v7 = vadd.f32 %v5857_v0, %v5611_v4 }
 0x4c0   : > { %v5565_v3 = vmax.f32 %v5524_v12, 0.0  ;;  %v5477_v20 = vmul.f32 %v8437_v40, %v11966_v14  ;;  %v452_v12 = vld [vmem:[%s10507_s28 + $0x10] sm:$0xff] }
 0x4c1   : > { %v2998_v31 = vpop.f32.mrb[88].mxu1  ;;  %v5858_v38 = vmul.f32 %v11012_v24, %v452_v12  ;;  %v5612_v46 = vmul.f32 %v10509_v5, %v452_v12 }
 0x4c2   : > { %v5938_v42 = vadd.f32 %v5897_v30, %v5565_v3  ;;  %v5525_v61 = vadd.f32 %v11973_v17, %v5477_v20  ;;  %v8438_v59 = vadd.f32 %v11727_v19, %v2998_v31  ;;  %v7600_v29 = vpop.f32.mrb[89].mxu1  ;;  %v453_v31 = vld [vmem:[%s10507_s28 + $0x18] sm:$0xff] }
 0x4c3   : > { %v5899_v0 = vadd.f32 %v5858_v38, %v5612_v46  ;;  %v5859_v24 = vmul.f32 %v11026_v51, %v453_v31 }
 0x4c4   : > { %5979 = vst.msk [vmem:[%s11988_s27] sm:$0xff] %vm491_vm1, %v5938_v42  ;;  %v5566_v6 = vmax.f32 %v5525_v61, 0.0  ;;  %v5478_v40 = vmul.f32 %v8438_v59, %v11966_v14  ;;  %v5613_v59 = vmul.f32 %v10509_v5, %v453_v31  ;;  %v455_v31 = vld [vmem:[%s10507_s28 + $0x28] sm:$0xff] }
 0x4c5   : > { %v3003_v23 = vpop.f32.mrb[90].mxu1 }
 0x4c6   : > { %v5939_v3 = vadd.f32 %v5898_v7, %v5566_v6  ;;  %v5526_v20 = vadd.f32 %v11973_v17, %v5478_v40  ;;  %v8439_v19 = vadd.f32 %v11733_v37, %v3003_v23  ;;  %v7603_v30 = vpop.f32.mrb[91].mxu1  ;;  %v454_v6 = vld [vmem:[%s10507_s28 + $0x20] sm:$0xff]  ;;  %v5900_v38 = vadd.f32 %v5859_v24, %v5613_v59 }
 0x4c7   : > { %v5860_v51 = vmul.f32 %v11028_v56, %v454_v6  ;;  %v5861_v56 = vmul.f32 %v11038_v1, %v455_v31 }
 0x4c8   : > { %5980 = vst.msk [vmem:[%s11988_s27 + $0x8] sm:$0xff] %vm491_vm1, %v5939_v3  ;;  %v5567_v4 = vmax.f32 %v5526_v20, 0.0  ;;  %v5479_v42 = vmul.f32 %v8439_v19, %v11966_v14  ;;  %v5614_v3 = vmul.f32 %v10509_v5, %v454_v6 }
 0x4c9   : > { %v3008_v61 = vpop.f32.mrb[92].mxu1 }
 0x4ca   : > { %v5940_v29 = vadd.f32 %v5899_v0, %v5567_v4  ;;  %v5527_v12 = vadd.f32 %v11973_v17, %v5479_v42  ;;  %v8440_v37 = vadd.f32 %v11739_v22, %v3008_v61  ;;  %v7606_v7 = vpop.f32.mrb[93].mxu1  ;;  %v5901_v0 = vadd.f32 %v5860_v51, %v5614_v3 }
 0x4cb   : > { %v5615_v61 = vmul.f32 %v10509_v5, %v455_v31 }
 0x4cc   : > { %5981 = vst.msk [vmem:[%s11988_s27 + $0x10] sm:$0xff] %vm491_vm1, %v5940_v29  ;;  %v5568_v40 = vmax.f32 %v5527_v12, 0.0  ;;  %v5480_v23 = vmul.f32 %v8440_v37, %v11966_v14  ;;  %v456_v37 = vld [vmem:[%s10507_s28 + $0x30] sm:$0xff] }
 0x4cd   : > { %v3013_v46 = vpop.f32.mrb[94].mxu1  ;;  %v5902_v7 = vadd.f32 %v5861_v56, %v5615_v61  ;;  %v5862_v1 = vmul.f32 %v11040_v49, %v456_v37 }
 0x4ce   : > { %v5941_v20 = vadd.f32 %v5900_v38, %v5568_v40  ;;  %v5528_v19 = vadd.f32 %v11973_v17, %v5480_v23  ;;  %v8441_v22 = vadd.f32 %v11745_v32, %v3013_v46  ;;  %v7609_v30 = vpop.f32.mrb[95].mxu1  ;;  %v5616_v40 = vmul.f32 %v10509_v5, %v456_v37 }
 0x4d0   : > { %5982 = vst.msk [vmem:[%s11988_s27 + $0x18] sm:$0xff] %vm491_vm1, %v5941_v20  ;;  %v5569_v24 = vmax.f32 %v5528_v19, 0.0  ;;  %v5481_v4 = vmul.f32 %v8441_v22, %v11966_v14  ;;  %v457_v20 = vld [vmem:[%s10507_s28 + $0x38] sm:$0xff]  ;;  %v5903_v19 = vadd.f32 %v5862_v1, %v5616_v40 }
 0x4d1   : > { %v3018_v42 = vpop.f32.mrb[96].mxu1  ;;  %v5863_v49 = vmul.f32 %v11050_v36, %v457_v20 }
 0x4d2   : > { %v5942_v59 = vadd.f32 %v5901_v0, %v5569_v24  ;;  %v5529_v29 = vadd.f32 %v11973_v17, %v5481_v4  ;;  %v8442_v32 = vadd.f32 %v11751_v34, %v3018_v42  ;;  %v7612_v12 = vpop.f32.mrb[97].mxu1  ;;  %v5617_v0 = vmul.f32 %v10509_v5, %v457_v20  ;;  %v458_v42 = vld [vmem:[%s10507_s28 + $0x40] sm:$0xff] }
 0x4d3   : > { %v5864_v36 = vmul.f32 %v11052_v54, %v458_v42  ;;  %v5618_v12 = vmul.f32 %v10509_v5, %v458_v42 }
 0x4d4   : > { %5983 = vst.msk [vmem:[%s11988_s27 + $0x20] sm:$0xff] %vm491_vm1, %v5942_v59  ;;  %v5570_v6 = vmax.f32 %v5529_v29, 0.0  ;;  %v5482_v38 = vmul.f32 %v8442_v32, %v11966_v14  ;;  %v5904_v61 = vadd.f32 %v5863_v49, %v5617_v0 }
 0x4d5   : > { %v3023_v51 = vpop.f32.mrb[98].mxu1 }
 0x4d6   : > { %v5943_v23 = vadd.f32 %v5902_v7, %v5570_v6  ;;  %v5530_v46 = vadd.f32 %v11973_v17, %v5482_v38  ;;  %v8443_v34 = vadd.f32 %v11757_v60, %v3023_v51  ;;  %v7615_v3 = vpop.f32.mrb[99].mxu1  ;;  %v459_v6 = vld [vmem:[%s10507_s28 + $0x48] sm:$0xff]  ;;  %v5905_v38 = vadd.f32 %v5864_v36, %v5618_v12 }
 0x4d7   : > { %v5865_v54 = vmul.f32 %v11062_v62, %v459_v6 }
 0x4d8   : > { %5984 = vst.msk [vmem:[%s11988_s27 + $0x28] sm:$0xff] %vm491_vm1, %v5943_v23  ;;  %v5571_v22 = vmax.f32 %v5530_v46, 0.0  ;;  %v5483_v30 = vmul.f32 %v8443_v34, %v11966_v14  ;;  %v5619_v46 = vmul.f32 %v10509_v5, %v459_v6 }
 0x4d9   : > { %v3028_v31 = vpop.f32.mrb[100].mxu1 }
 0x4da   : > { %v5944_v56 = vadd.f32 %v5903_v19, %v5571_v22  ;;  %v5531_v24 = vadd.f32 %v11973_v17, %v5483_v30  ;;  %v8444_v60 = vadd.f32 %v11763_v63, %v3028_v31  ;;  %v7618_v4 = vpop.f32.mrb[101].mxu1  ;;  %v460_v19 = vld [vmem:[%s10507_s28 + $0x50] sm:$0xff]  ;;  %v5906_v49 = vadd.f32 %v5865_v54, %v5619_v46  ;;  %v463_v46 = vld [vmem:[%s10507_s28 + $0x68] sm:$0xff] }
 0x4db   : > { %v5866_v62 = vmul.f32 %v11064_v13, %v460_v19  ;;  %v5620_v0 = vmul.f32 %v10509_v5, %v460_v19  ;;  %v461_v4 = vld [vmem:[%s10507_s28 + $0x58] sm:$0xff]  ;;  %v5623_v19 = vmul.f32 %v10509_v5, %v463_v46 }
 0x4dc   : > { %5985 = vst.msk [vmem:[%s11988_s27 + $0x30] sm:$0xff] %vm491_vm1, %v5944_v56  ;;  %v5572_v59 = vmax.f32 %v5531_v24, 0.0  ;;  %v5484_v29 = vmul.f32 %v8444_v60, %v11966_v14  ;;  %v5867_v13 = vmul.f32 %v11074_v27, %v461_v4 }
 0x4dd   : > { %v3033_v32 = vpop.f32.mrb[102].mxu1  ;;  %v5907_v42 = vadd.f32 %v5866_v62, %v5620_v0 }
 0x4de   : > { %v5945_v37 = vadd.f32 %v5904_v61, %v5572_v59  ;;  %v5532_v7 = vadd.f32 %v11973_v17, %v5484_v29  ;;  %v8445_v63 = vadd.f32 %v11769_v11, %v3033_v32  ;;  %v7621_v1 = vpop.f32.mrb[103].mxu1  ;;  %v5621_v29 = vmul.f32 %v10509_v5, %v461_v4 }
 0x4e0   : > { %5986 = vst.msk [vmem:[%s11988_s27 + $0x38] sm:$0xff] %vm491_vm1, %v5945_v37  ;;  %v5573_v51 = vmax.f32 %v5532_v7, 0.0  ;;  %v5485_v40 = vmul.f32 %v8445_v63, %v11966_v14  ;;  %v462_v7 = vld [vmem:[%s10507_s28 + $0x60] sm:$0xff]  ;;  %v5908_v63 = vadd.f32 %v5867_v13, %v5621_v29  ;;  %v465_v13 = vld [vmem:[%s10507_s28 + $0x78] sm:$0xff] }
 0x4e1   : > { %v3038_v23 = vpop.f32.mrb[104].mxu1  ;;  %v5868_v27 = vmul.f32 %v11076_v18, %v462_v7  ;;  %v5622_v54 = vmul.f32 %v10509_v5, %v462_v7  ;;  %v5869_v18 = vmul.f32 %v11086_v45, %v463_v46 }
 0x4e2   : > { %v5946_v34 = vadd.f32 %v5905_v38, %v5573_v51  ;;  %v5533_v3 = vadd.f32 %v11973_v17, %v5485_v40  ;;  %v8446_v11 = vadd.f32 %v11775_v47, %v3038_v23  ;;  %v7624_v20 = vpop.f32.mrb[105].mxu1 }
 0x4e4   : > { %5987 = vst.msk [vmem:[%s11988_s27 + $0x40] sm:$0xff] %vm491_vm1, %v5946_v34  ;;  %v5574_v22 = vmax.f32 %v5533_v3, 0.0  ;;  %v5486_v30 = vmul.f32 %v8446_v11, %v11966_v14  ;;  %v5909_v34 = vadd.f32 %v5868_v27, %v5622_v54 }
 0x4e5   : > { %v3043_v31 = vpop.f32.mrb[106].mxu1 }
 0x4e6   : > { %v5947_v56 = vadd.f32 %v5906_v49, %v5574_v22  ;;  %v5534_v24 = vadd.f32 %v11973_v17, %v5486_v30  ;;  %v8447_v47 = vadd.f32 %v11781_v52, %v3043_v31  ;;  %v7627_v60 = vpop.f32.mrb[107].mxu1  ;;  %v464_v30 = vld [vmem:[%s10507_s28 + $0x70] sm:$0xff]  ;;  %v5910_v31 = vadd.f32 %v5869_v18, %v5623_v19 }
 0x4e7   : > { %v5870_v45 = vmul.f32 %v11088_v58, %v464_v30 }
 0x4e8   : > { %5988 = vst.msk [vmem:[%s11988_s27 + $0x48] sm:$0xff] %vm491_vm1, %v5947_v56  ;;  %v5575_v61 = vmax.f32 %v5534_v24, 0.0  ;;  %v5487_v36 = vmul.f32 %v8447_v47, %v11966_v14  ;;  %v5624_v47 = vmul.f32 %v10509_v5, %v464_v30 }
 0x4e9   : > { %v3048_v59 = vpop.f32.mrb[108].mxu1 }
 0x4ea   : > { %v5948_v32 = vadd.f32 %v5907_v42, %v5575_v61  ;;  %v5535_v12 = vadd.f32 %v11973_v17, %v5487_v36  ;;  %v8448_v52 = vadd.f32 %v11787_v26, %v3048_v59  ;;  %v7630_v37 = vpop.f32.mrb[109].mxu1  ;;  %v5911_v61 = vadd.f32 %v5870_v45, %v5624_v47 }
 0x4eb   : > { %v5871_v36 = vmul.f32 %v11098_v21, %v465_v13 }
 0x4ec   : > { %5989 = vst.msk [vmem:[%s11988_s27 + $0x50] sm:$0xff] %vm491_vm1, %v5948_v32  ;;  %v5576_v1 = vmax.f32 %v5535_v12, 0.0  ;;  %v5488_v6 = vmul.f32 %v8448_v52, %v11966_v14  ;;  %v5625_v32 = vmul.f32 %v10509_v5, %v465_v13 }
 0x4ed   : > { %v3053_v38 = vpop.f32.mrb[110].mxu1 }
 0x4ee   : > { %v5949_v51 = vadd.f32 %v5908_v63, %v5576_v1  ;;  %v5536_v40 = vadd.f32 %v11973_v17, %v5488_v6  ;;  %v8449_v26 = vadd.f32 %v11793_v50, %v3053_v38  ;;  %v7633_v23 = vpop.f32.mrb[111].mxu1  ;;  %v5912_v7 = vadd.f32 %v5871_v36, %v5625_v32 }
 0x4f0   : > { %5990 = vst.msk [vmem:[%s11988_s27 + $0x58] sm:$0xff] %vm491_vm1, %v5949_v51  ;;  %v5577_v3 = vmax.f32 %v5536_v40, 0.0  ;;  %v5489_v11 = vmul.f32 %v8449_v26, %v11966_v14 }
 0x4f1   : > { %v3058_v20 = vpop.f32.mrb[112].mxu1 }
 0x4f2   : > { %v5950_v49 = vadd.f32 %v5909_v34, %v5577_v3  ;;  %v5537_v62 = vadd.f32 %v11973_v17, %v5489_v11  ;;  %v8450_v50 = vadd.f32 %v11799_v25, %v3058_v20  ;;  %v7636_v22 = vpop.f32.mrb[113].mxu1  ;;  %v12307_v3 = vld [vmem:[#allocation3_spill] sm:$0xff] }
 0x4f4   : > { %5991 = vst.msk [vmem:[%s11988_s27 + $0x60] sm:$0xff] %vm491_vm1, %v5950_v49  ;;  %v5578_v0 = vmax.f32 %v5537_v62, 0.0  ;;  %v5490_v56 = vmul.f32 %v8450_v50, %v11966_v14  ;;  %v12308_v50 = vld [vmem:[#allocation4_spill] sm:$0xff] }
 0x4f5   : > { %v3063_v24 = vpop.f32.mrb[114].mxu1 }
 0x4f6   : > { %v5951_v60 = vadd.f32 %v5910_v31, %v5578_v0  ;;  %v5538_v4 = vadd.f32 %v11973_v17, %v5490_v56  ;;  %v8451_v25 = vadd.f32 %v11805_v53, %v3063_v24  ;;  %v7639_v42 = vpop.f32.mrb[115].mxu1  ;;  %v12309_v24 = vld [vmem:[#allocation5_spill] sm:$0xff] }
 0x4f8   : > { %5992 = vst.msk [vmem:[%s11988_s27 + $0x68] sm:$0xff] %vm491_vm1, %v5951_v60  ;;  %v5579_v58 = vmax.f32 %v5538_v4, 0.0  ;;  %v5491_v59 = vmul.f32 %v8451_v25, %v11966_v14 }
 0x4f9   : > { %v3068_v29 = vpop.f32.mrb[116].mxu1 }
 0x4fa   : > { %v5952_v12 = vadd.f32 %v5911_v61, %v5579_v58  ;;  %v5539_v52 = vadd.f32 %v11973_v17, %v5491_v59  ;;  %v8452_v37 = vadd.f32 %v11811_v44, %v3068_v29  ;;  %v7642_v53 = vpop.f32.mrb[117].mxu1  ;;  %v12310_v61 = vld [vmem:[#allocation6_spill] sm:$0xff] }
 0x4fc   : > { %5993 = vst.msk [vmem:[%s11988_s27 + $0x70] sm:$0xff] %vm491_vm1, %v5952_v12  ;;  %v5580_v21 = vmax.f32 %v5539_v52, 0.0  ;;  %v5492_v63 = vmul.f32 %v8452_v37, %v11966_v14  ;;  %v12311_v52 = vld [vmem:[#allocation7_spill] sm:$0xff] }
 0x4fd   : > { %v3073_v27 = vpop.f32.mrb[118].mxu1 }
 0x4fe   : > { %v5953_v1 = vadd.f32 %v5912_v7, %v5580_v21  ;;  %v5540_v6 = vadd.f32 %v11973_v17, %v5492_v63  ;;  %v8453_v38 = vadd.f32 %v11817_v35, %v3073_v27  ;;  %v7645_v5 = vpop.f32.mrb[119].mxu1 }
 0x500   : > { %5994 = vst.msk [vmem:[%s11988_s27 + $0x78] sm:$0xff] %vm491_vm1, %v5953_v1  ;;  %v5581_v54 = vmax.f32 %v5540_v6, 0.0  ;;  %v5493_v44 = vmul.f32 %v8453_v38, %v11966_v14  ;;  %v12312_v1 = vld [vmem:[#allocation8_spill] sm:$0xff] }
 0x501   : > { %v3078_v51 = vpop.f32.mrb[120].mxu1 }
 0x502   : > { %v5954_v40 = vadd.f32 %v11110_v43, %v5581_v54  ;;  %v5541_v26 = vadd.f32 %v11973_v17, %v5493_v44  ;;  %v8454_v23 = vadd.f32 %v11823_v48, %v3078_v51  ;;  %v7648_v46 = vpop.f32.mrb[121].mxu1 }
 0x504   : > { %5995 = vst.msk [vmem:[%s11988_s27 + $0x80] sm:$0xff] %vm491_vm1, %v5954_v40  ;;  %v5582_v34 = vmax.f32 %v5541_v26, 0.0  ;;  %v5494_v35 = vmul.f32 %v8454_v23, %v11966_v14  ;;  %v12313_v40 = vld [vmem:[#allocation9_spill] sm:$0xff] }
 0x505   : > { %v3083_v18 = vpop.f32.mrb[122].mxu1 }
 0x506   : > { %v5955_v11 = vadd.f32 %v12307_v3, %v5582_v34  ;;  %v5542_v20 = vadd.f32 %v11973_v17, %v5494_v35  ;;  %v8455_v19 = vadd.f32 %v11829_v33, %v3083_v18  ;;  %v7651_v49 = vpop.f32.mrb[123].mxu1  ;;  %v12314_v3 = vld [vmem:[#allocation10_spill] sm:$0xff] }
 0x508   : > { %5996 = vst.msk [vmem:[%s11988_s27 + $0x88] sm:$0xff] %vm491_vm1, %v5955_v11  ;;  %v5583_v43 = vmax.f32 %v5542_v20, 0.0  ;;  %v5495_v48 = vmul.f32 %v8455_v19, %v11966_v14 }
 0x509   : > { %v3088_v62 = vpop.f32.mrb[124].mxu1 }
 0x50a   : > { %v5956_v22 = vadd.f32 %v12308_v50, %v5583_v43  ;;  %v5543_v30 = vadd.f32 %v11973_v17, %v5495_v48  ;;  %v8456_v31 = vadd.f32 %v11835_v8, %v3088_v62  ;;  %v7654_v45 = vpop.f32.mrb[125].mxu1  ;;  %v12315_v62 = vld [vmem:[#allocation11_spill] sm:$0xff] }
 0x50c   : > { %5997 = vst.msk [vmem:[%s11988_s27 + $0x90] sm:$0xff] %vm491_vm1, %v5956_v22  ;;  %v5584_v0 = vmax.f32 %v5543_v30, 0.0  ;;  %v5496_v33 = vmul.f32 %v8456_v31, %v11966_v14 }
 0x50d   : > { %v3093_v56 = vpop.f32.mrb[126].mxu1 }
 0x50e   : > { %v5957_v47 = vadd.f32 %v12309_v24, %v5584_v0  ;;  %v5544_v60 = vadd.f32 %v11973_v17, %v5496_v33  ;;  %v8457_v4 = vadd.f32 %v11841_v39, %v3093_v56  ;;  %v7657_v25 = vpop.f32.mrb[127].mxu1  ;;  %v12316_v33 = vld [vmem:[#allocation12_spill] sm:$0xff] }
 0x510   : > { %5998 = vst.msk [vmem:[%s11988_s27 + $0x98] sm:$0xff] %vm491_vm1, %v5957_v47  ;;  %v5585_v42 = vmax.f32 %v5544_v60, 0.0  ;;  %v5497_v8 = vmul.f32 %v8457_v4, %v11966_v14 }
 0x511   : > { %v3098_v13 = vpop.f32.mrb[128].mxu1 }
 0x512   : > { %v5958_v36 = vadd.f32 %v12310_v61, %v5585_v42  ;;  %v5545_v58 = vadd.f32 %v11973_v17, %v5497_v8  ;;  %v8458_v59 = vadd.f32 %v11847_v9, %v3098_v13  ;;  %v7660_v29 = vpop.f32.mrb[129].mxu1  ;;  %v12317_v42 = vld [vmem:[#allocation13_spill] sm:$0xff] }
 0x513   : > { %v12318_v29 = vld [vmem:[#allocation14_spill] sm:$0xff] }
 0x514   : > { %5999 = vst.msk [vmem:[%s11988_s27 + $0xa0] sm:$0xff] %vm491_vm1, %v5958_v36  ;;  %v5586_v32 = vmax.f32 %v5545_v58, 0.0  ;;  %v5498_v39 = vmul.f32 %v8458_v59, %v11966_v14 }
 0x515   : > { %v3103_v12 = vpop.f32.mrb[130].mxu1 }
 0x516   : > { %v5959_v37 = vadd.f32 %v12311_v52, %v5586_v32  ;;  %v5546_v53 = vadd.f32 %v11973_v17, %v5498_v39  ;;  %v8459_v7 = vadd.f32 %v11853_v16, %v3103_v12  ;;  %v7663_v21 = vpop.f32.mrb[131].mxu1 }
 0x518   : > { %6000 = vst.msk [vmem:[%s11988_s27 + $0xa8] sm:$0xff] %vm491_vm1, %v5959_v37  ;;  %v5587_v63 = vmax.f32 %v5546_v53, 0.0  ;;  %v5499_v9 = vmul.f32 %v8459_v7, %v11966_v14  ;;  %v12319_v7 = vld [vmem:[#allocation15_spill] sm:$0xff] }
 0x519   : > { %v3108_v27 = vpop.f32.mrb[132].mxu1 }
 0x51a   : > { %v5960_v6 = vadd.f32 %v12312_v1, %v5587_v63  ;;  %v5547_v38 = vadd.f32 %v11973_v17, %v5499_v9  ;;  %v8460_v5 = vadd.f32 %v11859_v10, %v3108_v27  ;;  %v7666_v54 = vpop.f32.mrb[133].mxu1  ;;  %v12320_v9 = vld [vmem:[#allocation27_spill] sm:$0xff] }
 0x51c   : > { %6001 = vst.msk [vmem:[%s11988_s27 + $0xb0] sm:$0xff] %vm491_vm1, %v5960_v6  ;;  %v5588_v44 = vmax.f32 %v5547_v38, 0.0  ;;  %v5500_v16 = vmul.f32 %v8460_v5, %v11966_v14  ;;  %v12321_v5 = vld [vmem:[#allocation16_spill] sm:$0xff] }
 0x51d   : > { %v3113_v51 = vpop.f32.mrb[134].mxu1 }
 0x51e   : > { %v5961_v26 = vadd.f32 %v12313_v40, %v5588_v44  ;;  %v5548_v23 = vadd.f32 %v11973_v17, %v5500_v16  ;;  %v8461_v46 = vadd.f32 %v11865_v28, %v3113_v51  ;;  %v7669_v34 = vpop.f32.mrb[135].mxu1  ;;  %v12322_v16 = vld [vmem:[#allocation28_spill] sm:$0xff] }
 0x51f   : > { %v12323_v34 = vld [vmem:[#allocation17_spill] sm:$0xff] }
 0x520   : > { %6002 = vst.msk [vmem:[%s11988_s27 + $0xb8] sm:$0xff] %vm491_vm1, %v5961_v26  ;;  %v5589_v35 = vmax.f32 %v5548_v23, 0.0  ;;  %v5501_v10 = vmul.f32 %v8461_v46, %v11966_v14 }
 0x521   : > { %v3118_v18 = vpop.f32.mrb[136].mxu1 }
 0x522   : > { %v5962_v11 = vadd.f32 %v12314_v3, %v5589_v35  ;;  %v5549_v20 = vadd.f32 %v11973_v17, %v5501_v10  ;;  %v8462_v19 = vadd.f32 %v11871_v57, %v3118_v18  ;;  %v7672_v49 = vpop.f32.mrb[137].mxu1  ;;  %v12324_v18 = vld [vmem:[#allocation29_spill] sm:$0xff] }
 0x524   : > { %6003 = vst.msk [vmem:[%s11988_s27 + $0xc0] sm:$0xff] %vm491_vm1, %v5962_v11  ;;  %v5590_v43 = vmax.f32 %v5549_v20, 0.0  ;;  %v5502_v28 = vmul.f32 %v8462_v19, %v11966_v14 }
 0x525   : > { %v3123_v48 = vpop.f32.mrb[138].mxu1 }
 0x526   : > { %v5963_v50 = vadd.f32 %v12315_v62, %v5590_v43  ;;  %v5550_v22 = vadd.f32 %v11973_v17, %v5502_v28  ;;  %v8463_v30 = vadd.f32 %v11877_v41, %v3123_v48  ;;  %v7675_v31 = vpop.f32.mrb[139].mxu1  ;;  %v12325_v43 = vld [vmem:[#allocation18_spill] sm:$0xff] }
 0x527   : > { %v12326_v62 = vld [vmem:[#allocation30_spill] sm:$0xff] }
 0x528   : > { %6004 = vst.msk [vmem:[%s11988_s27 + $0xc8] sm:$0xff] %vm491_vm1, %v5963_v50  ;;  %v5591_v45 = vmax.f32 %v5550_v22, 0.0  ;;  %v5503_v57 = vmul.f32 %v8463_v30, %v11966_v14 }
 0x529   : > { %v3128_v0 = vpop.f32.mrb[140].mxu1 }
 0x52a   : > { %v5964_v56 = vadd.f32 %v12316_v33, %v5591_v45  ;;  %v5551_v24 = vadd.f32 %v11973_v17, %v5503_v57  ;;  %v8464_v47 = vadd.f32 %v11883_v2, %v3128_v0  ;;  %v7678_v60 = vpop.f32.mrb[141].mxu1  ;;  %v12327_v57 = vld [vmem:[#allocation19_spill] sm:$0xff] }
 0x52c   : > { %6005 = vst.msk [vmem:[%s11988_s27 + $0xd0] sm:$0xff] %vm491_vm1, %v5964_v56  ;;  %v5592_v4 = vmax.f32 %v5551_v24, 0.0  ;;  %v5504_v41 = vmul.f32 %v8464_v47, %v11966_v14  ;;  %v12328_v56 = vld [vmem:[#allocation31_spill] sm:$0xff] }
 0x52d   : > { %v3133_v25 = vpop.f32.mrb[142].mxu1 }
 0x52e   : > { %v5965_v8 = vadd.f32 %v12317_v42, %v5592_v4  ;;  %v5552_v13 = vadd.f32 %v11973_v17, %v5504_v41  ;;  %v8465_v61 = vadd.f32 %v11889_v15, %v3133_v25  ;;  %v7681_v36 = vpop.f32.mrb[143].mxu1  ;;  %v12329_v25 = vld [vmem:[#allocation20_spill] sm:$0xff] }
 0x530   : > { %6006 = vst.msk [vmem:[%s11988_s27 + $0xd8] sm:$0xff] %vm491_vm1, %v5965_v8  ;;  %v5593_v58 = vmax.f32 %v5552_v13, 0.0  ;;  %v5505_v2 = vmul.f32 %v8465_v61, %v11966_v14  ;;  %v12330_v13 = vld [vmem:[#allocation32_spill] sm:$0xff] }
 0x531   : > { %v3138_v59 = vpop.f32.mrb[144].mxu1 }
 0x532   : > { %v5966_v32 = vadd.f32 %v12318_v29, %v5593_v58  ;;  %v5553_v39 = vadd.f32 %v11973_v17, %v5505_v2  ;;  %v8466_v12 = vadd.f32 %v11895_v55, %v3138_v59  ;;  %v7684_v52 = vpop.f32.mrb[145].mxu1  ;;  %v12331_v29 = vld [vmem:[#allocation21_spill] sm:$0xff] }
 0x534   : > { %6007 = vst.msk [vmem:[%s11988_s27 + $0xe0] sm:$0xff] %vm491_vm1, %v5966_v32  ;;  %v5594_v37 = vmax.f32 %v5553_v39, 0.0  ;;  %v5506_v15 = vmul.f32 %v8466_v12, %v11966_v14  ;;  %v12332_v12 = vld [vmem:[#allocation33_spill] sm:$0xff] }
 0x535   : > { %v3143_v53 = vpop.f32.mrb[146].mxu1 }
 0x536   : > { %v5967_v21 = vadd.f32 %v12319_v7, %v5594_v37  ;;  %v5554_v63 = vadd.f32 %v11973_v17, %v5506_v15  ;;  %v8467_v27 = vadd.f32 %v12320_v9, %v3143_v53  ;;  %v7687_v1 = vpop.f32.mrb[147].mxu1 }
 0x538   : > { %6008 = vst.msk [vmem:[%s11988_s27 + $0xe8] sm:$0xff] %vm491_vm1, %v5967_v21  ;;  %v5595_v6 = vmax.f32 %v5554_v63, 0.0  ;;  %v5507_v55 = vmul.f32 %v8467_v27, %v11966_v14  ;;  %v12333_v21 = vld [vmem:[#allocation22_spill] sm:$0xff] }
 0x539   : > { %v3148_v38 = vpop.f32.mrb[148].mxu1  ;;  %v12334_v27 = vld [vmem:[#allocation34_spill] sm:$0xff] }
 0x53a   : > { %v5968_v54 = vadd.f32 %v12321_v5, %v5595_v6  ;;  %v5555_v44 = vadd.f32 %v11973_v17, %v5507_v55  ;;  %v8468_v51 = vadd.f32 %v12322_v16, %v3148_v38  ;;  %v7690_v40 = vpop.f32.mrb[149].mxu1 }
 0x53c   : > { %6009 = vst.msk [vmem:[%s11988_s27 + $0xf0] sm:$0xff] %vm491_vm1, %v5968_v54  ;;  %v5596_v26 = vmax.f32 %v5555_v44, 0.0  ;;  %v5508_v23 = vmul.f32 %v8468_v51, %v11966_v14  ;;  %v12335_v54 = vld [vmem:[#allocation23_spill] sm:$0xff] }
 0x53d   : > { %v3153_v46 = vpop.f32.mrb[150].mxu1  ;;  %v12336_v51 = vld [vmem:[#allocation35_spill] sm:$0xff] }
 0x53e   : > { %v5969_v35 = vadd.f32 %v12323_v34, %v5596_v26  ;;  %v5556_v10 = vadd.f32 %v11973_v17, %v5508_v23  ;;  %v8469_v3 = vadd.f32 %v12324_v18, %v3153_v46  ;;  %v7693_v11 = vpop.f32.mrb[151].mxu1 }
 0x540   : > { %6010 = vst.msk [vmem:[%s11988_s27 + $0xf8] sm:$0xff] %vm491_vm1, %v5969_v35  ;;  %v5597_v20 = vmax.f32 %v5556_v10, 0.0  ;;  %v5509_v19 = vmul.f32 %v8469_v3, %v11966_v14  ;;  %v12337_v35 = vld [vmem:[#allocation24_spill] sm:$0xff] }
 0x541   : > { %v3158_v49 = vpop.f32.mrb[152].mxu1  ;;  %v12338_v3 = vld [vmem:[#allocation36_spill] sm:$0xff] }
 0x542   : > { %v5970_v28 = vadd.f32 %v12325_v43, %v5597_v20  ;;  %v5557_v48 = vadd.f32 %v11973_v17, %v5509_v19  ;;  %v8470_v50 = vadd.f32 %v12326_v62, %v3158_v49  ;;  %v7696_v22 = vpop.f32.mrb[153].mxu1  ;;  %v12339_v43 = vld [vmem:[#allocation25_spill] sm:$0xff] }
 0x544   : > { %6011 = vst.msk [vmem:[%s11988_s27 + $0x100] sm:$0xff] %vm491_vm1, %v5970_v28  ;;  %v5598_v30 = vmax.f32 %v5557_v48, 0.0  ;;  %v5510_v31 = vmul.f32 %v8470_v50, %v11966_v14  ;;  %v12340_v50 = vld [vmem:[#allocation26_spill] sm:$0xff] }
 0x545   : > { %v3163_v45 = vpop.f32.mrb[154].mxu1 }
 0x546   : > { %v5971_v0 = vadd.f32 %v12327_v57, %v5598_v30  ;;  %v5558_v33 = vadd.f32 %v11973_v17, %v5510_v31  ;;  %v8471_v24 = vadd.f32 %v12328_v56, %v3163_v45  ;;  %v7699_v47 = vpop.f32.mrb[155].mxu1 }
 0x548   : > { %6012 = vst.msk [vmem:[%s11988_s27 + $0x108] sm:$0xff] %vm491_vm1, %v5971_v0  ;;  %v5599_v60 = vmax.f32 %v5558_v33, 0.0  ;;  %v5511_v4 = vmul.f32 %v8471_v24, %v11966_v14 }
 0x549   : > { %v3168_v41 = vpop.f32.mrb[156].mxu1 }
 0x54a   : > { %v5972_v42 = vadd.f32 %v12329_v25, %v5599_v60  ;;  %v5559_v8 = vadd.f32 %v11973_v17, %v5511_v4  ;;  %v8472_v61 = vadd.f32 %v12330_v13, %v3168_v41  ;;  %v7702_v36 = vpop.f32.mrb[157].mxu1 }
 0x54c   : > { %6013 = vst.msk [vmem:[%s11988_s27 + $0x110] sm:$0xff] %vm491_vm1, %v5972_v42  ;;  %v5600_v58 = vmax.f32 %v5559_v8, 0.0  ;;  %v5512_v2 = vmul.f32 %v8472_v61, %v11966_v14 }
 0x54d   : > { %v3173_v59 = vpop.f32.mrb[158].mxu1 }
 0x54e   : > { %v5973_v32 = vadd.f32 %v12331_v29, %v5600_v58  ;;  %v5560_v39 = vadd.f32 %v11973_v17, %v5512_v2  ;;  %v8473_v52 = vadd.f32 %v12332_v12, %v3173_v59  ;;  %v7705_v37 = vpop.f32.mrb[159].mxu1 }
 0x550   : > { %6014 = vst.msk [vmem:[%s11988_s27 + $0x118] sm:$0xff] %vm491_vm1, %v5973_v32  ;;  %v5601_v15 = vmax.f32 %v5560_v39, 0.0  ;;  %v5513_v53 = vmul.f32 %v8473_v52, %v11966_v14 }
 0x551   : > { %v3178_v7 = vpop.f32.mrb[160].mxu1 }
 0x552   : > { %v5974_v63 = vadd.f32 %v12333_v21, %v5601_v15  ;;  %v5561_v9 = vadd.f32 %v11973_v17, %v5513_v53  ;;  %v8474_v1 = vadd.f32 %v12334_v27, %v3178_v7  ;;  %v7708_v6 = vpop.f32.mrb[161].mxu1 }
 0x554   : > { %6015 = vst.msk [vmem:[%s11988_s27 + $0x120] sm:$0xff] %vm491_vm1, %v5974_v63  ;;  %v5602_v55 = vmax.f32 %v5561_v9, 0.0  ;;  %v5514_v38 = vmul.f32 %v8474_v1, %v11966_v14 }
 0x555   : > { %v3183_v5 = vpop.f32.mrb[162].mxu1 }
 0x556   : > { %v5975_v44 = vadd.f32 %v12335_v54, %v5602_v55  ;;  %v5562_v16 = vadd.f32 %v11973_v17, %v5514_v38  ;;  %v8475_v40 = vadd.f32 %v12336_v51, %v3183_v5  ;;  %v7711_v26 = vpop.f32.mrb[163].mxu1 }
 0x558   : > { %6016 = vst.msk [vmem:[%s11988_s27 + $0x128] sm:$0xff] %vm491_vm1, %v5975_v44  ;;  %v5603_v23 = vmax.f32 %v5562_v16, 0.0  ;;  %v5515_v46 = vmul.f32 %v8475_v40, %v11966_v14 }
 0x559   : > { %v3188_v34 = vpop.f32.mrb[164].mxu1 }
 0x55a   : > { %v5976_v10 = vadd.f32 %v12337_v35, %v5603_v23  ;;  %v5563_v18 = vadd.f32 %v11973_v17, %v5515_v46  ;;  %v8476_v11 = vadd.f32 %v12338_v3, %v3188_v34  ;;  %v7714_v20 = vpop.f32.mrb[165].mxu1 }
 0x55c   : > { %6017 = vst.msk [vmem:[%s11988_s27 + $0x130] sm:$0xff] %vm491_vm1, %v5976_v10  ;;  %v5604_v19 = vmax.f32 %v5563_v18, 0.0  ;;  %v5516_v49 = vmul.f32 %v8476_v11, %v11966_v14 }
 0x55e   : > { %v5977_v28 = vadd.f32 %v12339_v43, %v5604_v19  ;;  %v5564_v48 = vadd.f32 %v11973_v17, %v5516_v49 }
 0x560   : > { %6018 = vst.msk [vmem:[%s11988_s27 + $0x138] sm:$0xff] %vm491_vm1, %v5977_v28  ;;  %v5605_v62 = vmax.f32 %v5564_v48, 0.0 }
 0x562   : > { %v5978_v22 = vadd.f32 %v12340_v50, %v5605_v62 }
 0x564   : > { %6019 = vst.msk [vmem:[%s11988_s27 + $0x140] sm:$0xf] %vm571_vm2, %v5978_v22 }
 0x565 PF: > { %s23_s19 = sadd.s32 1, %s9267_s19  }
 0x566   : > { %p20_p4 = scmp.ge.s32.totalorder %s23_s19, 4  }
 0x568   :  { %22 = sbr.rel (!%p20_p4) target bundleno = 3 (0x3), region = 105 }

</bundles_post_ra>
